<compile_context>
chip_gen: v7x
topology: tpu7x:2x2x1
jax: 0.10.0
libtpu: 0.0.40
codegen_flags: <defaults>
</compile_context>

<pallas_src>
import jax
import jax.numpy as jnp
from jax import lax
from jax.experimental import pallas as pl
from jax.experimental.pallas import tpu as pltpu

NEG_SLOPE = 0.2
BN_EPS = 1e-5


# ----------------------------- Pallas kernels ------------------------------

def _conv_lrelu_kernel(a_ref, w_ref, b_ref, o_ref):
    # (TM, K)bf16 @ (K, N)bf16 -> f32 acc, + bias, LeakyReLU(0.2), store bf16.
    y = jnp.dot(a_ref[...], w_ref[...], preferred_element_type=jnp.float32)
    y = y + b_ref[...]
    y = jnp.where(y >= 0.0, y, NEG_SLOPE * y)
    o_ref[...] = y.astype(o_ref.dtype)


def _conv_bn_lrelu_kernel(a_ref, w_ref, b_ref, g_ref, be_ref, o_ref):
    # (M, K)bf16 @ (K, N)bf16 -> f32 acc; bias; BatchNorm2d with batch
    # statistics (training mode, biased variance) over the full M = B*Ho*Wo;
    # LeakyReLU(0.2).  Single-pass stats folded into per-channel scale/shift.
    y = jnp.dot(a_ref[...], w_ref[...], preferred_element_type=jnp.float32)
    y = y + b_ref[...]
    m = y.shape[0]
    s1 = jnp.sum(y, axis=0, keepdims=True)
    s2 = jnp.sum(y * y, axis=0, keepdims=True)
    mean = s1 * (1.0 / m)
    var = s2 * (1.0 / m) - mean * mean
    scale = g_ref[...] * lax.rsqrt(var + BN_EPS)
    shift = be_ref[...] - mean * scale
    z = y * scale + shift
    z = jnp.where(z >= 0.0, z, NEG_SLOPE * z)
    o_ref[...] = z.astype(o_ref.dtype)


def _conv_bn_lrelu_linear_sigmoid_kernel(a_ref, w_ref, b_ref, g_ref, be_ref,
                                          wf_ref, gsel_ref, bf_ref, o_ref):
    # Conv3 + BN + LeakyReLU, with the Linear(9216 -> 1) + Sigmoid head fused.
    # wf_ref: linear weight pre-permuted to (h, w, c) order, tiled per image
    #         -> (B*Ho*Wo, N) f32.
    # gsel_ref: (B, B*Ho*Wo) 0/1 selector summing the rows of each image.
    y = jnp.dot(a_ref[...], w_ref[...], preferred_element_type=jnp.float32)
    y = y + b_ref[...]
    m = y.shape[0]
    s1 = jnp.sum(y, axis=0, keepdims=True)
    s2 = jnp.sum(y * y, axis=0, keepdims=True)
    mean = s1 * (1.0 / m)
    var = s2 * (1.0 / m) - mean * mean
    scale = g_ref[...] * lax.rsqrt(var + BN_EPS)
    shift = be_ref[...] - mean * scale
    z = y * scale + shift
    z = jnp.where(z >= 0.0, z, NEG_SLOPE * z)            # (M, N) f32, stays in VMEM
    # Linear head: logit[b] = sum over image-b rows & channels of z * wf.
    t = z * wf_ref[...]                                              # (M, N)
    gt = jnp.dot(gsel_ref[...], t, preferred_element_type=jnp.float32)  # (B, N)
    logit = jnp.sum(gt, axis=1, keepdims=True) + bf_ref[...]         # (B, 1)
    o_ref[...] = 1.0 / (1.0 + jnp.exp(-logit))


# ----------------------------- pallas_call wrappers -------------------------

def _vmem():
    return pl.BlockSpec(memory_space=pltpu.MemorySpace.VMEM)


def conv_lrelu(a, w, b, *, rows_per_block):
    """M-tiled conv matmul + bias + LeakyReLU.  a:(M,K)bf16, w:(K,N)bf16."""
    M, K = a.shape
    N = w.shape[1]
    assert M % rows_per_block == 0
    return pl.pallas_call(
        _conv_lrelu_kernel,
        out_shape=jax.ShapeDtypeStruct((M, N), jnp.bfloat16),
        grid=(M // rows_per_block,),
        in_specs=[
            pl.BlockSpec((rows_per_block, K), lambda i: (i, 0)),
            pl.BlockSpec((K, N), lambda i: (0, 0)),
            pl.BlockSpec((1, N), lambda i: (0, 0)),
        ],
        out_specs=pl.BlockSpec((rows_per_block, N), lambda i: (i, 0)),
        compiler_params=pltpu.CompilerParams(
            dimension_semantics=("parallel",)),
    )(a, w, b.reshape(1, N).astype(jnp.float32))


def conv_bn_lrelu(a, w, b, gamma, beta):
    # Single block: BatchNorm needs the full M dimension for its statistics.
    M, _ = a.shape
    N = w.shape[1]
    return pl.pallas_call(
        _conv_bn_lrelu_kernel,
        out_shape=jax.ShapeDtypeStruct((M, N), jnp.bfloat16),
        in_specs=[_vmem()] * 5,
        out_specs=_vmem(),
    )(a, w, b.reshape(1, N).astype(jnp.float32),
      gamma.reshape(1, N).astype(jnp.float32),
      beta.reshape(1, N).astype(jnp.float32))


def conv_bn_lrelu_linear_sigmoid(a, w, b, gamma, beta, wf_rows, gsel, bf):
    M, _ = a.shape
    N = w.shape[1]
    B = gsel.shape[0]
    return pl.pallas_call(
        _conv_bn_lrelu_linear_sigmoid_kernel,
        out_shape=jax.ShapeDtypeStruct((B, 1), jnp.float32),
        in_specs=[_vmem()] * 8,
        out_specs=_vmem(),
    )(a, w, b.reshape(1, N).astype(jnp.float32),
      gamma.reshape(1, N).astype(jnp.float32),
      beta.reshape(1, N).astype(jnp.float32),
      wf_rows.astype(jnp.float32), gsel.astype(jnp.float32),
      bf.reshape(1, 1).astype(jnp.float32))


# ----------------------------- JAX glue -------------------------------------

def im2col_nhwc(x, k=4, stride=2, pad=1):
    """NHWC patch extraction -> ((B*Ho*Wo, k*k*C), Ho, Wo).

    Patch flattening order is (kh, kw, C); the matmul output rows are in
    (b, ho, wo) order, i.e. already NHWC — no transpose needed afterwards."""
    B, H, W, C = x.shape
    xp = jnp.pad(x, ((0, 0), (pad, pad), (pad, pad), (0, 0)))
    Ho = (H + 2 * pad - k) // stride + 1
    Wo = (W + 2 * pad - k) // stride + 1
    cols = []
    for kh in range(k):
        for kw in range(k):
            cols.append(xp[:, kh:kh + stride * (Ho - 1) + 1:stride,
                           kw:kw + stride * (Wo - 1) + 1:stride, :])
    p = jnp.stack(cols, axis=3)              # (B, Ho, Wo, k*k, C)
    return p.reshape(B * Ho * Wo, k * k * C), Ho, Wo


def _conv_weight_matrix(w_oihw):
    """(Cout, Cin, kh, kw) -> (kh*kw*Cin, Cout) bf16 matching im2col order."""
    cout = w_oihw.shape[0]
    return jnp.transpose(w_oihw, (2, 3, 1, 0)).reshape(-1, cout).astype(jnp.bfloat16)


def make_params(key, num_classes=7):
    ks = jax.random.split(key, 12)
    p = {}
    p["emb"] = jax.random.normal(ks[0], (num_classes, num_classes), jnp.float32)
    cin1 = 1 + num_classes
    p["w1"] = 0.05 * jax.random.normal(ks[1], (64, cin1, 4, 4), jnp.float32)
    p["b1"] = 0.05 * jax.random.normal(ks[2], (64,), jnp.float32)
    p["w2"] = 0.05 * jax.random.normal(ks[3], (128, 64, 4, 4), jnp.float32)
    p["b2"] = 0.05 * jax.random.normal(ks[4], (128,), jnp.float32)
    p["g2"] = 1.0 + 0.1 * jax.random.normal(ks[5], (128,), jnp.float32)
    p["be2"] = 0.1 * jax.random.normal(ks[6], (128,), jnp.float32)
    p["w3"] = 0.05 * jax.random.normal(ks[7], (256, 128, 4, 4), jnp.float32)
    p["b3"] = 0.05 * jax.random.normal(ks[8], (256,), jnp.float32)
    p["g3"] = 1.0 + 0.1 * jax.random.normal(ks[9], (256,), jnp.float32)
    p["be3"] = 0.1 * jax.random.normal(ks[10], (256,), jnp.float32)
    p["wf"] = 0.01 * jax.random.normal(ks[11], (256 * 6 * 6, 1), jnp.float32)
    p["bf"] = jnp.zeros((1,), jnp.float32)
    return p


def discriminator_forward(img, label, p, num_classes=7):
    """img: (B, 1, 48, 48) float32 NCHW (PyTorch layout), label: (B,) int32."""
    B, _, H, W = img.shape

    # Label embedding -> spatial map -> channel concat in NHWC, cast to bf16.
    emb = p["emb"][label]                                          # (B, C)
    img_nhwc = jnp.transpose(img, (0, 2, 3, 1))                    # (B, 48, 48, 1)
    lab = jnp.broadcast_to(emb[:, None, None, :], (B, H, W, num_classes))
    x = jnp.concatenate([img_nhwc, lab], axis=-1).astype(jnp.bfloat16)  # (B,48,48,8)

    # Conv1 (8 -> 64) + LeakyReLU; "parallel" grid, one image per block.
    a1, h1, w1 = im2col_nhwc(x)                                    # (B*576, 128) bf16
    y1 = conv_lrelu(a1, _conv_weight_matrix(p["w1"]), p["b1"],
                    rows_per_block=h1 * w1)                        # (B*576, 64) bf16
    x1 = y1.reshape(B, h1, w1, 64)                                 # NHWC, no transpose

    # Conv2 (64 -> 128) + BN(batch stats) + LeakyReLU; one block (BN needs all M).
    a2, h2, w2 = im2col_nhwc(x1)                                   # (B*144, 1024) bf16
    y2 = conv_bn_lrelu(a2, _conv_weight_matrix(p["w2"]),
                       p["b2"], p["g2"], p["be2"])                 # (B*144, 128) bf16
    x2 = y2.reshape(B, h2, w2, 128)

    # Conv3 (128 -> 256) + BN + LeakyReLU + Linear(9216->1) + Sigmoid, fused.
    a3, h3, w3 = im2col_nhwc(x2)                                   # (B*36, 2048) bf16
    # PyTorch flatten order is (c, h, w); permute the linear weight to (h, w, c)
    # and tile per image so the head can run directly on the NHWC conv3 rows.
    wf_hwc = p["wf"][:, 0].reshape(256, h3, w3).transpose(1, 2, 0).reshape(h3 * w3, 256)
    wf_rows = jnp.tile(wf_hwc, (B, 1))                             # (B*36, 256)
    gsel = jnp.repeat(jnp.eye(B, dtype=jnp.float32), h3 * w3, axis=1)  # (B, B*36)
    return conv_bn_lrelu_linear_sigmoid(
        a3, _conv_weight_matrix(p["w3"]), p["b3"], p["g3"], p["be3"],
        wf_rows, gsel, p["bf"])                                    # (B, 1) f32


# ----------------------------- pure-JAX references ---------------------------

def reference_forward(img, label, p, num_classes=7):
    """Pure f32 reference (matches the PyTorch module semantics)."""
    B, _, H, W = img.shape
    emb = p["emb"][label]
    lab = jnp.broadcast_to(emb[:, :, None, None], (B, num_classes, H, W))
    x = jnp.concatenate([img, lab], axis=1)

    def conv(x, w, b):
        y = lax.conv_general_dilated(
            x, w, (2, 2), ((1, 1), (1, 1)),
            dimension_numbers=("NCHW", "OIHW", "NCHW"))
        return y + b[None, :, None, None]

    def bn(x, g, be):
        mean = x.mean(axis=(0, 2, 3), keepdims=True)
        var = ((x - mean) ** 2).mean(axis=(0, 2, 3), keepdims=True)
        return g[None, :, None, None] * (x - mean) / jnp.sqrt(var + BN_EPS) \
            + be[None, :, None, None]

    lrelu = lambda v: jnp.where(v >= 0, v, NEG_SLOPE * v)
    h = lrelu(conv(x, p["w1"], p["b1"]))
    h = lrelu(bn(conv(h, p["w2"], p["b2"]), p["g2"], p["be2"]))
    h = lrelu(bn(conv(h, p["w3"], p["b3"]), p["g3"], p["be3"]))
    h = h.reshape(B, -1)
    return jax.nn.sigmoid(h @ p["wf"] + p["bf"][None, :])


def reference_forward_bf16(img, label, p, num_classes=7):
    """Reference with the same bf16-operand / f32-accumulate convs as the kernels."""
    B, _, H, W = img.shape
    emb = p["emb"][label]
    lab = jnp.broadcast_to(emb[:, :, None, None], (B, num_classes, H, W))
    x = jnp.concatenate([img, lab], axis=1).astype(jnp.bfloat16)

    def conv(x, w, b):
        y = lax.conv_general_dilated(
            x, w.astype(jnp.bfloat16), (2, 2), ((1, 1), (1, 1)),
            dimension_numbers=("NCHW", "OIHW", "NCHW"),
            preferred_element_type=jnp.float32)
        return y + b[None, :, None, None]

    def bn(x, g, be):
        mean = x.mean(axis=(0, 2, 3), keepdims=True)
        var = ((x - mean) ** 2).mean(axis=(0, 2, 3), keepdims=True)
        return g[None, :, None, None] * (x - mean) / jnp.sqrt(var + BN_EPS) \
            + be[None, :, None, None]

    lrelu = lambda v: jnp.where(v >= 0, v, NEG_SLOPE * v)
    h = lrelu(conv(x, p["w1"], p["b1"])).astype(jnp.bfloat16)
    h = lrelu(bn(conv(h, p["w2"], p["b2"]), p["g2"], p["be2"])).astype(jnp.bfloat16)
    h = lrelu(bn(conv(h, p["w3"], p["b3"]), p["g3"], p["be3"]))   # keep f32 for head
    h = h.reshape(B, -1)
    return jax.nn.sigmoid(h @ p["wf"] + p["bf"][None, :])


# ----------------------------- main ------------------------------------------

if __name__ == "__main__":
    key = jax.random.PRNGKey(0)
    k_img, k_lab, k_par = jax.random.split(key, 3)

    B, num_classes = 2, 7
    img = jax.random.normal(k_img, (B, 1, 48, 48), jnp.float32)
    label = jax.random.randint(k_lab, (B,), 0, num_classes, jnp.int32)
    params = make_params(k_par, num_classes)

    fwd = jax.jit(lambda im, lb: discriminator_forward(im, lb, params, num_classes))
    out = jax.block_until_ready(fwd(img, label))
    assert out.shape == (B, 1)

    # bf16 MXU operands + f32 accumulation: tight check vs a bf16-conv reference,
    # loose check vs the pure-f32 reference (expected small bf16 drift).
    ref_bf = jax.block_until_ready(reference_forward_bf16(img, label, params, num_classes))
    ref_32 = jax.block_until_ready(reference_forward(img, label, params, num_classes))
    assert jnp.allclose(out, ref_bf, atol=3e-3, rtol=3e-3), (out, ref_bf)
    assert jnp.allclose(out, ref_32, atol=2.5e-2, rtol=2.5e-2), (out, ref_32)

    print("KERNEL_OK")
</pallas_src>

<mosaic_0001>
module attributes {stable_mosaic.version = 11 : i64} {
  func.func @_conv_lrelu_kernel(%arg0: i32, %arg1: memref<576x128xbf16, #tpu.memory_space<vmem>>, %arg2: memref<128x64xbf16, #tpu.memory_space<vmem>>, %arg3: memref<1x64xf32, #tpu.memory_space<vmem>>, %arg4: memref<576x64xbf16, #tpu.memory_space<vmem>>) attributes {dimension_semantics = [#tpu.dimension_semantics<parallel>], iteration_bounds = array<i64: 2>, scalar_prefetch = 0 : i64, scratch_operands = 0 : i64, tpu.core_type = #tpu.core_type<tc>, window_params = [{transform_indices = @transform_0, window_bounds = array<i64: 576, 128>}, {pipeline_mode = #tpu.pipeline_mode<synchronous>, transform_indices = @transform_1, window_bounds = array<i64: 128, 64>}, {pipeline_mode = #tpu.pipeline_mode<synchronous>, transform_indices = @transform_2, window_bounds = array<i64: 1, 64>}, {transform_indices = @transform_3, window_bounds = array<i64: 576, 64>}]} {
    %c0 = arith.constant 0 : index
    %c0_0 = arith.constant 0 : index
    %0 = vector.load %arg1[%c0, %c0_0] : memref<576x128xbf16, #tpu.memory_space<vmem>>, vector<576x128xbf16>
    %c0_1 = arith.constant 0 : index
    %c0_2 = arith.constant 0 : index
    %1 = vector.load %arg2[%c0_1, %c0_2] : memref<128x64xbf16, #tpu.memory_space<vmem>>, vector<128x64xbf16>
    %cst = arith.constant dense<0.000000e+00> : vector<576x64xf32>
    %2 = tpu.matmul %0, %1, %cst {dimension_numbers = #tpu.dot_dimension_numbers<[1], [0], [0], [1], [0, 0, 1, 1], [], []>} : vector<576x128xbf16>, vector<128x64xbf16>, vector<576x64xf32> -> vector<576x64xf32>
    %c0_3 = arith.constant 0 : index
    %c0_4 = arith.constant 0 : index
    %3 = vector.load %arg3[%c0_3, %c0_4] : memref<1x64xf32, #tpu.memory_space<vmem>>, vector<1x64xf32>
    %4 = vector.broadcast %3 : vector<1x64xf32> to vector<576x64xf32>
    %5 = arith.addf %2, %4 : vector<576x64xf32>
    %cst_5 = arith.constant 0.000000e+00 : f32
    %6 = vector.broadcast %cst_5 : f32 to vector<576x64xf32>
    %7 = arith.cmpf oge, %5, %6 : vector<576x64xf32>
    %cst_6 = arith.constant 2.000000e-01 : f32
    %8 = vector.broadcast %cst_6 : f32 to vector<576x64xf32>
    %9 = arith.mulf %8, %5 : vector<576x64xf32>
    %10 = arith.select %7, %5, %9 : vector<576x64xi1>, vector<576x64xf32>
    %11 = arith.truncf %10 : vector<576x64xf32> to vector<576x64xbf16>
    %c0_7 = arith.constant 0 : index
    %c0_8 = arith.constant 0 : index
    %12 = vector.load %arg4[%c0_7, %c0_8] : memref<576x64xbf16, #tpu.memory_space<vmem>>, vector<576x64xbf16>
    tpu.vector_store %arg4[%c0_7, %c0_8], %11 {strides = array<i32>} : memref<576x64xbf16, #tpu.memory_space<vmem>>, vector<576x64xbf16>,
    return
  }
  func.func @transform_0(%arg0: i32) -> (i32, i32) {
    %c0_i32 = arith.constant 0 : i32
    %c0_i32_0 = arith.constant 0 : i32
    return %arg0, %c0_i32 : i32, i32
  }
  func.func @transform_1(%arg0: i32) -> (i32, i32) {
    %c0_i32 = arith.constant 0 : i32
    %c0_i32_0 = arith.constant 0 : i32
    %c0_i32_1 = arith.constant 0 : i32
    return %c0_i32, %c0_i32_0 : i32, i32
  }
  func.func @transform_2(%arg0: i32) -> (i32, i32) {
    %c0_i32 = arith.constant 0 : i32
    %c0_i32_0 = arith.constant 0 : i32
    %c0_i32_1 = arith.constant 0 : i32
    return %c0_i32, %c0_i32_0 : i32, i32
  }
  func.func @transform_3(%arg0: i32) -> (i32, i32) {
    %c0_i32 = arith.constant 0 : i32
    %c0_i32_0 = arith.constant 0 : i32
    return %arg0, %c0_i32 : i32, i32
  }
}

module attributes {stable_mosaic.version = 11 : i64} {
  func.func @_conv_bn_lrelu_kernel(%arg0: memref<288x1024xbf16, #tpu.memory_space<vmem>>, %arg1: memref<1024x128xbf16, #tpu.memory_space<vmem>>, %arg2: memref<1x128xf32, #tpu.memory_space<vmem>>, %arg3: memref<1x128xf32, #tpu.memory_space<vmem>>, %arg4: memref<1x128xf32, #tpu.memory_space<vmem>>, %arg5: memref<288x128xbf16, #tpu.memory_space<vmem>>) attributes {dimension_semantics = [], scalar_prefetch = 0 : i64, scratch_operands = 0 : i64, tpu.core_type = #tpu.core_type<tc>} {
    %c0 = arith.constant 0 : index
    %c0_0 = arith.constant 0 : index
    %0 = vector.load %arg0[%c0, %c0_0] : memref<288x1024xbf16, #tpu.memory_space<vmem>>, vector<288x1024xbf16>
    %c0_1 = arith.constant 0 : index
    %c0_2 = arith.constant 0 : index
    %1 = vector.load %arg1[%c0_1, %c0_2] : memref<1024x128xbf16, #tpu.memory_space<vmem>>, vector<1024x128xbf16>
    %cst = arith.constant dense<0.000000e+00> : vector<288x128xf32>
    %2 = tpu.matmul %0, %1, %cst {dimension_numbers = #tpu.dot_dimension_numbers<[1], [0], [0], [1], [0, 0, 1, 1], [], []>} : vector<288x1024xbf16>, vector<1024x128xbf16>, vector<288x128xf32> -> vector<288x128xf32>
    %c0_3 = arith.constant 0 : index
    %c0_4 = arith.constant 0 : index
    %3 = vector.load %arg2[%c0_3, %c0_4] : memref<1x128xf32, #tpu.memory_space<vmem>>, vector<1x128xf32>
    %4 = vector.broadcast %3 : vector<1x128xf32> to vector<288x128xf32>
    %5 = arith.addf %2, %4 : vector<288x128xf32>
    %cst_5 = arith.constant dense<0.000000e+00> : vector<128xf32>
    %6 = vector.multi_reduction <add>, %5, %cst_5 [0] : vector<288x128xf32> to vector<128xf32>
    %7 = vector.shape_cast %6 : vector<128xf32> to vector<1x128xf32>
    %8 = arith.mulf %5, %5 : vector<288x128xf32>
    %cst_6 = arith.constant dense<0.000000e+00> : vector<128xf32>
    %9 = vector.multi_reduction <add>, %8, %cst_6 [0] : vector<288x128xf32> to vector<128xf32>
    %10 = vector.shape_cast %9 : vector<128xf32> to vector<1x128xf32>
    %cst_7 = arith.constant 0.00347222225 : f32
    %11 = vector.broadcast %cst_7 : f32 to vector<1x128xf32>
    %12 = arith.mulf %7, %11 : vector<1x128xf32>
    %cst_8 = arith.constant 0.00347222225 : f32
    %13 = vector.broadcast %cst_8 : f32 to vector<1x128xf32>
    %14 = arith.mulf %10, %13 : vector<1x128xf32>
    %15 = arith.mulf %12, %12 : vector<1x128xf32>
    %16 = arith.subf %14, %15 : vector<1x128xf32>
    %c0_9 = arith.constant 0 : index
    %c0_10 = arith.constant 0 : index
    %17 = vector.load %arg3[%c0_9, %c0_10] : memref<1x128xf32, #tpu.memory_space<vmem>>, vector<1x128xf32>
    %cst_11 = arith.constant 9.99999974E-6 : f32
    %18 = vector.broadcast %cst_11 : f32 to vector<1x128xf32>
    %19 = arith.addf %16, %18 : vector<1x128xf32>
    %20 = math.rsqrt %19 : vector<1x128xf32>
    %21 = arith.mulf %17, %20 : vector<1x128xf32>
    %c0_12 = arith.constant 0 : index
    %c0_13 = arith.constant 0 : index
    %22 = vector.load %arg4[%c0_12, %c0_13] : memref<1x128xf32, #tpu.memory_space<vmem>>, vector<1x128xf32>
    %23 = arith.mulf %12, %21 : vector<1x128xf32>
    %24 = arith.subf %22, %23 : vector<1x128xf32>
    %25 = vector.broadcast %21 : vector<1x128xf32> to vector<288x128xf32>
    %26 = arith.mulf %5, %25 : vector<288x128xf32>
    %27 = vector.broadcast %24 : vector<1x128xf32> to vector<288x128xf32>
    %28 = arith.addf %26, %27 : vector<288x128xf32>
    %cst_14 = arith.constant 0.000000e+00 : f32
    %29 = vector.broadcast %cst_14 : f32 to vector<288x128xf32>
    %30 = arith.cmpf oge, %28, %29 : vector<288x128xf32>
    %cst_15 = arith.constant 2.000000e-01 : f32
    %31 = vector.broadcast %cst_15 : f32 to vector<288x128xf32>
    %32 = arith.mulf %31, %28 : vector<288x128xf32>
    %33 = arith.select %30, %28, %32 : vector<288x128xi1>, vector<288x128xf32>
    %34 = arith.truncf %33 : vector<288x128xf32> to vector<288x128xbf16>
    %c0_16 = arith.constant 0 : index
    %c0_17 = arith.constant 0 : index
    %35 = vector.load %arg5[%c0_16, %c0_17] : memref<288x128xbf16, #tpu.memory_space<vmem>>, vector<288x128xbf16>
    tpu.vector_store %arg5[%c0_16, %c0_17], %34 {strides = array<i32>} : memref<288x128xbf16, #tpu.memory_space<vmem>>, vector<288x128xbf16>,
    return
  }
}

module attributes {stable_mosaic.version = 11 : i64} {
  func.func @_conv_bn_lrelu_linear_sigmoid_kernel(%arg0: memref<72x2048xbf16, #tpu.memory_space<vmem>>, %arg1: memref<2048x256xbf16, #tpu.memory_space<vmem>>, %arg2: memref<1x256xf32, #tpu.memory_space<vmem>>, %arg3: memref<1x256xf32, #tpu.memory_space<vmem>>, %arg4: memref<1x256xf32, #tpu.memory_space<vmem>>, %arg5: memref<72x256xf32, #tpu.memory_space<vmem>>, %arg6: memref<2x72xf32, #tpu.memory_space<vmem>>, %arg7: memref<1x1xf32, #tpu.memory_space<vmem>>, %arg8: memref<2x1xf32, #tpu.memory_space<vmem>>) attributes {dimension_semantics = [], scalar_prefetch = 0 : i64, scratch_operands = 0 : i64, tpu.core_type = #tpu.core_type<tc>} {
    %c0 = arith.constant 0 : index
    %c0_0 = arith.constant 0 : index
    %0 = vector.load %arg0[%c0, %c0_0] : memref<72x2048xbf16, #tpu.memory_space<vmem>>, vector<72x2048xbf16>
    %c0_1 = arith.constant 0 : index
    %c0_2 = arith.constant 0 : index
    %1 = vector.load %arg1[%c0_1, %c0_2] : memref<2048x256xbf16, #tpu.memory_space<vmem>>, vector<2048x256xbf16>
    %cst = arith.constant dense<0.000000e+00> : vector<72x256xf32>
    %2 = tpu.matmul %0, %1, %cst {dimension_numbers = #tpu.dot_dimension_numbers<[1], [0], [0], [1], [0, 0, 1, 1], [], []>} : vector<72x2048xbf16>, vector<2048x256xbf16>, vector<72x256xf32> -> vector<72x256xf32>
    %c0_3 = arith.constant 0 : index
    %c0_4 = arith.constant 0 : index
    %3 = vector.load %arg2[%c0_3, %c0_4] : memref<1x256xf32, #tpu.memory_space<vmem>>, vector<1x256xf32>
    %4 = vector.broadcast %3 : vector<1x256xf32> to vector<72x256xf32>
    %5 = arith.addf %2, %4 : vector<72x256xf32>
    %cst_5 = arith.constant dense<0.000000e+00> : vector<256xf32>
    %6 = vector.multi_reduction <add>, %5, %cst_5 [0] : vector<72x256xf32> to vector<256xf32>
    %7 = vector.shape_cast %6 : vector<256xf32> to vector<1x256xf32>
    %8 = arith.mulf %5, %5 : vector<72x256xf32>
    %cst_6 = arith.constant dense<0.000000e+00> : vector<256xf32>
    %9 = vector.multi_reduction <add>, %8, %cst_6 [0] : vector<72x256xf32> to vector<256xf32>
    %10 = vector.shape_cast %9 : vector<256xf32> to vector<1x256xf32>
    %cst_7 = arith.constant 0.013888889 : f32
    %11 = vector.broadcast %cst_7 : f32 to vector<1x256xf32>
    %12 = arith.mulf %7, %11 : vector<1x256xf32>
    %cst_8 = arith.constant 0.013888889 : f32
    %13 = vector.broadcast %cst_8 : f32 to vector<1x256xf32>
    %14 = arith.mulf %10, %13 : vector<1x256xf32>
    %15 = arith.mulf %12, %12 : vector<1x256xf32>
    %16 = arith.subf %14, %15 : vector<1x256xf32>
    %c0_9 = arith.constant 0 : index
    %c0_10 = arith.constant 0 : index
    %17 = vector.load %arg3[%c0_9, %c0_10] : memref<1x256xf32, #tpu.memory_space<vmem>>, vector<1x256xf32>
    %cst_11 = arith.constant 9.99999974E-6 : f32
    %18 = vector.broadcast %cst_11 : f32 to vector<1x256xf32>
    %19 = arith.addf %16, %18 : vector<1x256xf32>
    %20 = math.rsqrt %19 : vector<1x256xf32>
    %21 = arith.mulf %17, %20 : vector<1x256xf32>
    %c0_12 = arith.constant 0 : index
    %c0_13 = arith.constant 0 : index
    %22 = vector.load %arg4[%c0_12, %c0_13] : memref<1x256xf32, #tpu.memory_space<vmem>>, vector<1x256xf32>
    %23 = arith.mulf %12, %21 : vector<1x256xf32>
    %24 = arith.subf %22, %23 : vector<1x256xf32>
    %25 = vector.broadcast %21 : vector<1x256xf32> to vector<72x256xf32>
    %26 = arith.mulf %5, %25 : vector<72x256xf32>
    %27 = vector.broadcast %24 : vector<1x256xf32> to vector<72x256xf32>
    %28 = arith.addf %26, %27 : vector<72x256xf32>
    %cst_14 = arith.constant 0.000000e+00 : f32
    %29 = vector.broadcast %cst_14 : f32 to vector<72x256xf32>
    %30 = arith.cmpf oge, %28, %29 : vector<72x256xf32>
    %cst_15 = arith.constant 2.000000e-01 : f32
    %31 = vector.broadcast %cst_15 : f32 to vector<72x256xf32>
    %32 = arith.mulf %31, %28 : vector<72x256xf32>
    %33 = arith.select %30, %28, %32 : vector<72x256xi1>, vector<72x256xf32>
    %c0_16 = arith.constant 0 : index
    %c0_17 = arith.constant 0 : index
    %34 = vector.load %arg5[%c0_16, %c0_17] : memref<72x256xf32, #tpu.memory_space<vmem>>, vector<72x256xf32>
    %35 = arith.mulf %33, %34 : vector<72x256xf32>
    %c0_18 = arith.constant 0 : index
    %c0_19 = arith.constant 0 : index
    %36 = vector.load %arg6[%c0_18, %c0_19] : memref<2x72xf32, #tpu.memory_space<vmem>>, vector<2x72xf32>
    %cst_20 = arith.constant dense<0.000000e+00> : vector<2x256xf32>
    %37 = tpu.matmul %36, %35, %cst_20 {dimension_numbers = #tpu.dot_dimension_numbers<[1], [0], [0], [1], [0, 0, 1, 1], [], []>} : vector<2x72xf32>, vector<72x256xf32>, vector<2x256xf32> -> vector<2x256xf32>
    %cst_21 = arith.constant dense<0.000000e+00> : vector<2xf32>
    %38 = vector.multi_reduction <add>, %37, %cst_21 [1] : vector<2x256xf32> to vector<2xf32>
    %39 = vector.shape_cast %38 : vector<2xf32> to vector<2x1xf32>
    %c0_22 = arith.constant 0 : index
    %c0_23 = arith.constant 0 : index
    %40 = vector.load %arg7[%c0_22, %c0_23] : memref<1x1xf32, #tpu.memory_space<vmem>>, vector<1x1xf32>
    %41 = vector.broadcast %40 : vector<1x1xf32> to vector<2x1xf32>
    %42 = arith.addf %39, %41 : vector<2x1xf32>
    %cst_24 = arith.constant 0.000000e+00 : f32
    %43 = vector.broadcast %cst_24 : f32 to vector<2x1xf32>
    %44 = arith.subf %43, %42 : vector<2x1xf32>
    %45 = math.exp %44 : vector<2x1xf32>
    %cst_25 = arith.constant 1.000000e+00 : f32
    %46 = vector.broadcast %cst_25 : f32 to vector<2x1xf32>
    %47 = arith.addf %46, %45 : vector<2x1xf32>
    %cst_26 = arith.constant 1.000000e+00 : f32
    %48 = vector.broadcast %cst_26 : f32 to vector<2x1xf32>
    %49 = arith.divf %48, %47 : vector<2x1xf32>
    %c0_27 = arith.constant 0 : index
    %c0_28 = arith.constant 0 : index
    %50 = vector.load %arg8[%c0_27, %c0_28] : memref<2x1xf32, #tpu.memory_space<vmem>>, vector<2x1xf32>
    tpu.vector_store %arg8[%c0_27, %c0_28], %49 {strides = array<i32>} : memref<2x1xf32, #tpu.memory_space<vmem>>, vector<2x1xf32>,
    return
  }
}

</mosaic_0001>

<bundles_post_ra>
// kernel: _lambda_.3
= control target key start
LH: loop header
LB: loop body
LE: loop exit
PB: predicated region body
PF: predicated region fallthrough
CT: control target
= control target key end

     0   :  { %s1914_s12 = smov 0   ;;  %s2327_s0 = inlined_call_operand.vmem [shape: bf16[1152,128], index: 0, kind: input, shape index: {}]   ;;  %s2328_s1 = inlined_call_operand.vmem [shape: bf16[128,64], index: 1, kind: input, shape index: {}]   ;;  %s2329_s2 = inlined_call_operand.vmem [shape: f32[1,64], index: 2, kind: input, shape index: {}]   ;;  %s2330_s3 = inlined_call_operand.vmem [shape: bf16[1152,64], index: 3, kind: output, shape index: {}]  }
   0x1 LB: > { %s1488_s13 = sadd.s32 4294967295, %s1892_s12   ;;  %p1492_p0 = scmp.ge.s32.totalorder %s1892_s12, 1  ;;  %s1892_s12 = sphi %s1914_s12, %s13_s12  }
   0x2   : > { %p138_p1 = scmp.lt.s32.totalorder %s1892_s12, 3 }
   0x4   : > { %p139_p2 = pnand %p1492_p0, %p138_p1 }
   0x5   : > { %v1842_v0 = vld [vmem:[%s2328_s1] sm:$0xff] (!%p139_p2)   ;;  %s162_s16 = smul.u32 (!%p139_p2), 72, %s1488_s13  ;;  %v1843_v1 = vld [vmem:[%s2328_s1 + $0x8] sm:$0xff] (!%p139_p2)   ;;  %v1844_v2 = vld [vmem:[%s2328_s1 + $0x10] sm:$0xff] (!%p139_p2)   ;;  %vm1359_vm0 = vcmask (!%p139_p2), 519168  }
   0x6   : > { %142 = sbr.rel (%p139_p2) target bundleno = 346 (0x15a), region = 32  ;;  %1730 = vmatprep.subr.bf16.mxu0 (!%p139_p2), %v1842_v0  ;;  %1818 = vmatprep.subr.bf16.mxu1 (!%p139_p2), %v1842_v0  ;;  %v1845_v3 = vld [vmem:[%s2328_s1 + $0x18] sm:$0xff] (!%p139_p2)   ;;  %v1846_v6 = vld [vmem:[%s2328_s1 + $0x20] sm:$0xff] (!%p139_p2)   ;;  %v1847_v7 = vld [vmem:[%s2328_s1 + $0x28] sm:$0xff] (!%p139_p2)  }
   0x7   : > { %p163_p3 = scmp.lt.s32.totalorder (!%p139_p2), %s162_s16, 143  ;;  %1731 = vmatpush3.bf16.msra.mxu0 (!%p139_p2), %v1842_v0  ;;  %1826 = vmatpush3.bf16.msra.mxu1 (!%p139_p2), %v1842_v0  ;;  %v1848_v8 = vld [vmem:[%s2328_s1 + $0x30] sm:$0xff] (!%p139_p2)   ;;  %v1849_v9 = vld [vmem:[%s2328_s1 + $0x38] sm:$0xff] (!%p139_p2)   ;;  %v1995_v44 = vld [vmem:[%s2329_s2] ss:$0 sm:$0xff] (!%p139_p2) }
   0x8   : > { %1732 = vmatprep.subr.bf16.mxu0 (!%p139_p2), %v1843_v1  ;;  %1819 = vmatprep.subr.bf16.mxu1 (!%p139_p2), %v1843_v1 }
   0xb   : > { %1733 = vmatpush3.bf16.msra.mxu0 (!%p139_p2), %v1843_v1  ;;  %1827 = vmatpush3.bf16.msra.mxu1 (!%p139_p2), %v1843_v1 }
   0xc   : > { %1734 = vmatprep.subr.bf16.mxu0 (!%p139_p2), %v1844_v2  ;;  %1820 = vmatprep.subr.bf16.mxu1 (!%p139_p2), %v1844_v2 }
   0xd   : > { %s2332_s16 = smov (!%p163_p3, %s162_s16), 143 }
   0xe   : > { %s1493_s21 = sshll.u32 %s2332_s16, 2 }
   0xf   : > { %s1942_s26 = scalar_lea.vmem %s2327_s0, %s1493_s21  ;;  %1735 = vmatpush3.bf16.msra.mxu0 %v1844_v2  ;;  %1828 = vmatpush3.bf16.msra.mxu1 %v1844_v2  ;;  %s2006_s13 = scalar_lea.vmem %s2330_s3, %s1493_s21 }
  0x10   : > { %v1850_v4 = vld [vmem:[%s1942_s26] sm:$0xff]   ;;  %v1851_v5 = vld [vmem:[%s1942_s26 + $0x90] sm:$0xff]   ;;  %1736 = vmatprep.subr.bf16.mxu0 %v1845_v3  ;;  %1821 = vmatprep.subr.bf16.mxu1 %v1845_v3  ;;  %v1852_v10 = vld [vmem:[%s1942_s26 + $0x8] sm:$0xff]  }
  0x11   : > { %1746 = vmatprep.mubr.bf16.mxu0 %v1850_v4  ;;  %1782 = vmatprep.mubr.bf16.mxu1 %v1851_v5  ;;  %v1853_v11 = vld [vmem:[%s1942_s26 + $0x98] sm:$0xff]   ;;  %v1854_v12 = vld [vmem:[%s1942_s26 + $0x10] sm:$0xff]   ;;  %v1855_v13 = vld [vmem:[%s1942_s26 + $0xa0] sm:$0xff]  }
  0x12   : > { %v1856_v14 = vld [vmem:[%s1942_s26 + $0x18] sm:$0xff]   ;;  %v1857_v15 = vld [vmem:[%s1942_s26 + $0xa8] sm:$0xff]   ;;  %v1858_v16 = vld [vmem:[%s1942_s26 + $0x20] sm:$0xff]  }
  0x13   : > { %1737 = vmatpush3.bf16.msra.mxu0 %v1845_v3  ;;  %1829 = vmatpush3.bf16.msra.mxu1 %v1845_v3  ;;  %v1859_v17 = vld [vmem:[%s1942_s26 + $0xb0] sm:$0xff]   ;;  %v1860_v18 = vld [vmem:[%s1942_s26 + $0x28] sm:$0xff]   ;;  %v1861_v19 = vld [vmem:[%s1942_s26 + $0xb8] sm:$0xff]  }
  0x14   : > { %1738 = vmatprep.subr.bf16.mxu0 %v1846_v6  ;;  %1822 = vmatprep.subr.bf16.mxu1 %v1846_v6  ;;  %v1862_v20 = vld [vmem:[%s1942_s26 + $0x30] sm:$0xff]   ;;  %v1863_v21 = vld [vmem:[%s1942_s26 + $0xc0] sm:$0xff]   ;;  %v1864_v22 = vld [vmem:[%s1942_s26 + $0x38] sm:$0xff]  }
  0x15   : > { %v1865_v23 = vld [vmem:[%s1942_s26 + $0xc8] sm:$0xff]   ;;  %v1866_v24 = vld [vmem:[%s1942_s26 + $0x40] sm:$0xff]   ;;  %v1867_v25 = vld [vmem:[%s1942_s26 + $0xd0] sm:$0xff]  }
  0x16   : > { %v1868_v26 = vld [vmem:[%s1942_s26 + $0x48] sm:$0xff]   ;;  %v1869_v27 = vld [vmem:[%s1942_s26 + $0xd8] sm:$0xff]   ;;  %v1870_v28 = vld [vmem:[%s1942_s26 + $0x50] sm:$0xff]  }
  0x17   : > { %1739 = vmatpush3.bf16.msra.mxu0 %v1846_v6  ;;  %1830 = vmatpush3.bf16.msra.mxu1 %v1846_v6  ;;  %v1871_v29 = vld [vmem:[%s1942_s26 + $0xe0] sm:$0xff]   ;;  %v1872_v30 = vld [vmem:[%s1942_s26 + $0x58] sm:$0xff]   ;;  %v1873_v31 = vld [vmem:[%s1942_s26 + $0xe8] sm:$0xff]  }
  0x18   : > { %1740 = vmatprep.subr.bf16.mxu0 %v1847_v7  ;;  %1823 = vmatprep.subr.bf16.mxu1 %v1847_v7  ;;  %v1874_v32 = vld [vmem:[%s1942_s26 + $0x60] sm:$0xff]   ;;  %v1875_v33 = vld [vmem:[%s1942_s26 + $0xf0] sm:$0xff]   ;;  %v1876_v34 = vld [vmem:[%s1942_s26 + $0x68] sm:$0xff]  }
  0x19   : > { %v1877_v35 = vld [vmem:[%s1942_s26 + $0xf8] sm:$0xff]   ;;  %v1878_v36 = vld [vmem:[%s1942_s26 + $0x70] sm:$0xff]   ;;  %v1879_v37 = vld [vmem:[%s1942_s26 + $0x100] sm:$0xff]  }
  0x1a   : > { %v1880_v38 = vld [vmem:[%s1942_s26 + $0x78] sm:$0xff]   ;;  %v1881_v39 = vld [vmem:[%s1942_s26 + $0x108] sm:$0xff]   ;;  %v1882_v40 = vld [vmem:[%s1942_s26 + $0x80] sm:$0xff]  }
  0x1b   : > { %1741 = vmatpush3.bf16.msra.mxu0 %v1847_v7  ;;  %1831 = vmatpush3.bf16.msra.mxu1 %v1847_v7  ;;  %v1883_v41 = vld [vmem:[%s1942_s26 + $0x110] sm:$0xff]   ;;  %v1884_v42 = vld [vmem:[%s1942_s26 + $0x88] sm:$0xff]   ;;  %v1885_v43 = vld [vmem:[%s1942_s26 + $0x118] sm:$0xff]  }
  0x1c   : > { %1742 = vmatprep.subr.bf16.mxu0 %v1848_v8  ;;  %1824 = vmatprep.subr.bf16.mxu1 %v1848_v8 }
  0x1f   : > { %1743 = vmatpush3.bf16.msra.mxu0 %v1848_v8  ;;  %1832 = vmatpush3.bf16.msra.mxu1 %v1848_v8 }
  0x20   : > { %1744 = vmatprep.subr.bf16.mxu0 %v1849_v9  ;;  %1825 = vmatprep.subr.bf16.mxu1 %v1849_v9 }
  0x23   : > { %1745 = vmatpush3.bf16.msra.mxu0 %v1849_v9  ;;  %1833 = vmatpush3.bf16.msra.mxu1 %v1849_v9 }
  0x26   : > { %1747 = vmatmul.mubr.bf16.vlgmr.msra.gmra.mrb[0].mxu0 %v1852_v10  ;;  %1783 = vmatmul.mubr.bf16.vlgmr.msra.gmra.mrb[0].mxu1 %v1853_v11 }
  0x27   : > { %1750 = vmatprep.mubr.bf16.mxu0 %v1854_v12  ;;  %1786 = vmatprep.mubr.bf16.mxu1 %v1855_v13 }
  0x2e   : > { %1751 = vmatmul.mubr.bf16.gmra.mrb[4].mxu0 %v1856_v14  ;;  %1787 = vmatmul.mubr.bf16.gmra.mrb[4].mxu1 %v1857_v15 }
  0x2f   : > { %1754 = vmatprep.mubr.bf16.mxu0 %v1858_v16  ;;  %1790 = vmatprep.mubr.bf16.mxu1 %v1859_v17 }
  0x36   : > { %1755 = vmatmul.mubr.bf16.gmra.mrb[8].mxu0 %v1860_v18  ;;  %1791 = vmatmul.mubr.bf16.gmra.mrb[8].mxu1 %v1861_v19 }
  0x37   : > { %1758 = vmatprep.mubr.bf16.mxu0 %v1862_v20  ;;  %1794 = vmatprep.mubr.bf16.mxu1 %v1863_v21 }
  0x3e   : > { %1759 = vmatmul.mubr.bf16.gmra.mrb[12].mxu0 %v1864_v22  ;;  %1795 = vmatmul.mubr.bf16.gmra.mrb[12].mxu1 %v1865_v23 }
  0x3f   : > { %1762 = vmatprep.mubr.bf16.mxu0 %v1866_v24  ;;  %1798 = vmatprep.mubr.bf16.mxu1 %v1867_v25 }
  0x46   : > { %1763 = vmatmul.mubr.bf16.gmra.mrb[16].mxu0 %v1868_v26  ;;  %1799 = vmatmul.mubr.bf16.gmra.mrb[16].mxu1 %v1869_v27 }
  0x47   : > { %1766 = vmatprep.mubr.bf16.mxu0 %v1870_v28  ;;  %1802 = vmatprep.mubr.bf16.mxu1 %v1871_v29 }
  0x4e   : > { %1767 = vmatmul.mubr.bf16.gmra.mrb[20].mxu0 %v1872_v30  ;;  %1803 = vmatmul.mubr.bf16.gmra.mrb[20].mxu1 %v1873_v31 }
  0x4f   : > { %1770 = vmatprep.mubr.bf16.mxu0 %v1874_v32  ;;  %1806 = vmatprep.mubr.bf16.mxu1 %v1875_v33 }
  0x56   : > { %1771 = vmatmul.mubr.bf16.gmra.mrb[24].mxu0 %v1876_v34  ;;  %1807 = vmatmul.mubr.bf16.gmra.mrb[24].mxu1 %v1877_v35 }
  0x57   : > { %1774 = vmatprep.mubr.bf16.mxu0 %v1878_v36  ;;  %1810 = vmatprep.mubr.bf16.mxu1 %v1879_v37 }
  0x5e   : > { %1775 = vmatmul.mubr.bf16.gmra.mrb[28].mxu0 %v1880_v38  ;;  %1811 = vmatmul.mubr.bf16.gmra.mrb[28].mxu1 %v1881_v39 }
  0x5f   : > { %1778 = vmatprep.mubr.bf16.mxu0 %v1882_v40  ;;  %1814 = vmatprep.mubr.bf16.mxu1 %v1883_v41 }
  0x66   : > { %1779 = vmatmul.mubr.bf16.gmra.mrb[32].mxu0 %v1884_v42  ;;  %1815 = vmatmul.mubr.bf16.gmra.mrb[32].mxu1 %v1885_v43 }
  0xf9   : > { %v1748_v45 = vpop.f32.mrb[0].mxu0  ;;  %v1784_v46 = vpop.f32.mrb[0].mxu1 }
  0xfa   : > { %v577_v47 = vadd.f32 %v1748_v45, %v1995_v44  ;;  %v721_v48 = vadd.f32 %v1784_v46, %v1995_v44  ;;  %v568_v49 = vpop.f32.mrb[1].mxu0  ;;  %v712_v50 = vpop.f32.mrb[1].mxu1 }
  0xfb   : > { %v569_v51 = vadd.f32 %v1995_v44, %v568_v49  ;;  %v713_v52 = vadd.f32 %v1995_v44, %v712_v50  ;;  %v1749_v53 = vpop.f32.mrb[2].mxu0  ;;  %v1785_v54 = vpop.f32.mrb[2].mxu1 }
  0xfc   : > { %vm857_vm1 = vcmp.ge.f32.partialorder %v577_v47, 0.0  ;;  %v929_v55 = vmul.f32 0.2, %v577_v47  ;;  %vm893_vm2 = vcmp.ge.f32.partialorder %v721_v48, 0.0  ;;  %v965_v56 = vmul.f32 0.2, %v721_v48 }
  0xfd   : > { %vm855_vm3 = vcmp.ge.f32.partialorder %v569_v51, 0.0  ;;  %v927_v57 = vmul.f32 0.2, %v569_v51  ;;  %vm891_vm4 = vcmp.ge.f32.partialorder %v713_v52, 0.0  ;;  %v963_v58 = vmul.f32 0.2, %v713_v52 }
  0xfe   : > { %v1001_v59 = vsel %vm857_vm1, %v577_v47, %v929_v55  ;;  %v1037_v60 = vsel %vm893_vm2, %v721_v48, %v965_v56  ;;  %v580_v61 = vadd.f32 %v1749_v53, %v1995_v44  ;;  %v724_v62 = vadd.f32 %v1785_v54, %v1995_v44  ;;  %v571_v63 = vpop.f32.mrb[3].mxu0  ;;  %v715_v0 = vpop.f32.mrb[3].mxu1 }
  0xff   : > { %v1616_v1 = vpack.c.bf16 %v1001_v59, %v1001_v59  ;;  %v1652_v2 = vpack.c.bf16 %v1037_v60, %v1037_v60  ;;  %v999_v3 = vsel %vm855_vm3, %v569_v51, %v927_v57  ;;  %v1035_v4 = vsel %vm891_vm4, %v713_v52, %v963_v58 }
 0x100   : > { %v1614_v5 = vpack.c.bf16 %v999_v3, %v999_v3  ;;  %v1650_v6 = vpack.c.bf16 %v1035_v4, %v1035_v4  ;;  %vm858_vm5 = vcmp.ge.f32.partialorder %v580_v61, 0.0  ;;  %v930_v7 = vmul.f32 0.2, %v580_v61 }
 0x101   : > { %1362 = vst.msk [vmem:[%s2006_s13 + $0x8] sm:$0xf] %vm1359_vm0, %v1616_v1  ;;  %1398 = vst.msk [vmem:[%s2006_s13 + $0x98] sm:$0xf] %vm1359_vm0, %v1652_v2  ;;  %vm894_vm6 = vcmp.ge.f32.partialorder %v724_v62, 0.0  ;;  %v572_v9 = vadd.f32 %v1995_v44, %v571_v63  ;;  %v716_v10 = vadd.f32 %v1995_v44, %v715_v0  ;;  %v1752_v11 = vpop.f32.mrb[4].mxu0 }
 0x102   : > { %v966_v8 = vmul.f32 0.2, %v724_v62  ;;  %v1788_v12 = vpop.f32.mrb[4].mxu1  ;;  %1360 = vst.msk [vmem:[%s2006_s13] sm:$0xf] %vm1359_vm0, %v1614_v5  ;;  %v1002_v13 = vsel %vm858_vm5, %v580_v61, %v930_v7  ;;  %v593_v14 = vadd.f32 %v1752_v11, %v1995_v44  ;;  %v584_v16 = vpop.f32.mrb[5].mxu0 }
 0x103   : > { %1396 = vst.msk [vmem:[%s2006_s13 + $0x90] sm:$0xf] %vm1359_vm0, %v1650_v6  ;;  %v737_v15 = vadd.f32 %v1788_v12, %v1995_v44  ;;  %v728_v17 = vpop.f32.mrb[5].mxu1  ;;  %v1617_v18 = vpack.c.bf16 %v1002_v13, %v1002_v13  ;;  %vm856_vm7 = vcmp.ge.f32.partialorder %v572_v9, 0.0  ;;  %v928_v20 = vmul.f32 0.2, %v572_v9 }
 0x104   : > { %v1038_v19 = vsel %vm894_vm6, %v724_v62, %v966_v8  ;;  %v1753_v21 = vpop.f32.mrb[6].mxu0  ;;  %v1789_v22 = vpop.f32.mrb[6].mxu1  ;;  %vm892_vm8 = vcmp.ge.f32.partialorder %v716_v10, 0.0  ;;  %v964_v24 = vmul.f32 0.2, %v716_v10  ;;  %vm861_vm9 = vcmp.ge.f32.partialorder %v593_v14, 0.0 }
 0x105   : > { %v1653_v23 = vpack.c.bf16 %v1038_v19, %v1038_v19  ;;  %v587_v25 = vpop.f32.mrb[7].mxu0  ;;  %v731_v26 = vpop.f32.mrb[7].mxu1  ;;  %1363 = vst.msk [vmem:[%s2006_s13 + $0xc] sm:$0xf] %vm1359_vm0, %v1617_v18  ;;  %v1000_v27 = vsel %vm856_vm7, %v572_v9, %v928_v20  ;;  %v933_v28 = vmul.f32 0.2, %v593_v14  ;;  %v585_v32 = vadd.f32 %v1995_v44, %v584_v16 }
 0x106   : > { %vm897_vm10 = vcmp.ge.f32.partialorder %v737_v15, 0.0  ;;  %v969_v29 = vmul.f32 0.2, %v737_v15  ;;  %v1615_v30 = vpack.c.bf16 %v1000_v27, %v1000_v27  ;;  %v1036_v31 = vsel %vm892_vm8, %v716_v10, %v964_v24 }
 0x107   : > { %1399 = vst.msk [vmem:[%s2006_s13 + $0x9c] sm:$0xf] %vm1359_vm0, %v1653_v23  ;;  %v729_v33 = vadd.f32 %v1995_v44, %v728_v17  ;;  %v1651_v34 = vpack.c.bf16 %v1036_v31, %v1036_v31  ;;  %v1005_v35 = vsel %vm861_vm9, %v593_v14, %v933_v28  ;;  %v596_v37 = vadd.f32 %v1753_v21, %v1995_v44 }
 0x108   : > { %v1041_v36 = vsel %vm897_vm10, %v737_v15, %v969_v29  ;;  %1361 = vst.msk [vmem:[%s2006_s13 + $0x4] sm:$0xf] %vm1359_vm0, %v1615_v30  ;;  %v1620_v38 = vpack.c.bf16 %v1005_v35, %v1005_v35  ;;  %vm859_vm11 = vcmp.ge.f32.partialorder %v585_v32, 0.0  ;;  %v931_v40 = vmul.f32 0.2, %v585_v32 }
 0x109   : > { %v1656_v39 = vpack.c.bf16 %v1041_v36, %v1041_v36  ;;  %1397 = vst.msk [vmem:[%s2006_s13 + $0x94] sm:$0xf] %vm1359_vm0, %v1651_v34  ;;  %vm895_vm12 = vcmp.ge.f32.partialorder %v729_v33, 0.0  ;;  %v967_v41 = vmul.f32 0.2, %v729_v33  ;;  %vm862_vm13 = vcmp.ge.f32.partialorder %v596_v37, 0.0 }
 0x10a   : > { %v934_v42 = vmul.f32 0.2, %v596_v37  ;;  %1366 = vst.msk [vmem:[%s2006_s13 + $0x18] sm:$0xf] %vm1359_vm0, %v1620_v38  ;;  %v1003_v43 = vsel %vm859_vm11, %v585_v32, %v931_v40  ;;  %v740_v45 = vadd.f32 %v1789_v22, %v1995_v44  ;;  %v588_v46 = vadd.f32 %v1995_v44, %v587_v25  ;;  %v1756_v48 = vpop.f32.mrb[8].mxu0  ;;  %v1792_v49 = vpop.f32.mrb[8].mxu1 }
 0x10b   : > { %1402 = vst.msk [vmem:[%s2006_s13 + $0xa8] sm:$0xf] %vm1359_vm0, %v1656_v39  ;;  %v732_v47 = vadd.f32 %v1995_v44, %v731_v26  ;;  %v1618_v50 = vpack.c.bf16 %v1003_v43, %v1003_v43  ;;  %v1039_v51 = vsel %vm895_vm12, %v729_v33, %v967_v41  ;;  %v609_v53 = vadd.f32 %v1756_v48, %v1995_v44  ;;  %v600_v54 = vpop.f32.mrb[9].mxu0  ;;  %v744_v55 = vpop.f32.mrb[9].mxu1 }
 0x10c   : > { %v1006_v52 = vsel %vm862_vm13, %v596_v37, %v934_v42  ;;  %v1654_v56 = vpack.c.bf16 %v1039_v51, %v1039_v51  ;;  %vm898_vm14 = vcmp.ge.f32.partialorder %v740_v45, 0.0  ;;  %v970_v58 = vmul.f32 0.2, %v740_v45  ;;  %v1757_v59 = vpop.f32.mrb[10].mxu0  ;;  %v1793_v60 = vpop.f32.mrb[10].mxu1 }
 0x10d   : > { %v1621_v57 = vpack.c.bf16 %v1006_v52, %v1006_v52  ;;  %1364 = vst.msk [vmem:[%s2006_s13 + $0x10] sm:$0xf] %vm1359_vm0, %v1618_v50  ;;  %vm860_vm15 = vcmp.ge.f32.partialorder %v588_v46, 0.0  ;;  %v932_v61 = vmul.f32 0.2, %v588_v46  ;;  %vm896_vm1 = vcmp.ge.f32.partialorder %v732_v47, 0.0 }
 0x10e   : > { %v968_v62 = vmul.f32 0.2, %v732_v47  ;;  %1400 = vst.msk [vmem:[%s2006_s13 + $0xa0] sm:$0xf] %vm1359_vm0, %v1654_v56  ;;  %v1042_v63 = vsel %vm898_vm14, %v740_v45, %v970_v58  ;;  %vm865_vm2 = vcmp.ge.f32.partialorder %v609_v53, 0.0  ;;  %v753_v1 = vadd.f32 %v1792_v49, %v1995_v44  ;;  %v603_v2 = vpop.f32.mrb[11].mxu0 }
 0x10f   : > { %1367 = vst.msk [vmem:[%s2006_s13 + $0x1c] sm:$0xf] %vm1359_vm0, %v1621_v57  ;;  %v937_v0 = vmul.f32 0.2, %v609_v53  ;;  %v747_v3 = vpop.f32.mrb[11].mxu1  ;;  %v1657_v4 = vpack.c.bf16 %v1042_v63, %v1042_v63  ;;  %v1004_v5 = vsel %vm860_vm15, %v588_v46, %v932_v61  ;;  %v601_v7 = vadd.f32 %v1995_v44, %v600_v54 }
 0x110   : > { %v1040_v6 = vsel %vm896_vm1, %v732_v47, %v968_v62  ;;  %v1619_v8 = vpack.c.bf16 %v1004_v5, %v1004_v5  ;;  %vm901_vm3 = vcmp.ge.f32.partialorder %v753_v1, 0.0  ;;  %v973_v12 = vmul.f32 0.2, %v753_v1 }
 0x111   : > { %v1655_v9 = vpack.c.bf16 %v1040_v6, %v1040_v6  ;;  %v1009_v10 = vsel %vm865_vm2, %v609_v53, %v937_v0  ;;  %1403 = vst.msk [vmem:[%s2006_s13 + $0xac] sm:$0xf] %vm1359_vm0, %v1657_v4  ;;  %vm863_vm4 = vcmp.ge.f32.partialorder %v601_v7, 0.0  ;;  %v935_v13 = vmul.f32 0.2, %v601_v7  ;;  %v1760_v14 = vpop.f32.mrb[12].mxu0 }
 0x112   : > { %v1624_v11 = vpack.c.bf16 %v1009_v10, %v1009_v10  ;;  %1365 = vst.msk [vmem:[%s2006_s13 + $0x14] sm:$0xf] %vm1359_vm0, %v1619_v8  ;;  %v745_v15 = vadd.f32 %v1995_v44, %v744_v55  ;;  %v612_v16 = vadd.f32 %v1757_v59, %v1995_v44  ;;  %v756_v17 = vadd.f32 %v1793_v60, %v1995_v44  ;;  %v1796_v19 = vpop.f32.mrb[12].mxu1  ;;  %v616_v20 = vpop.f32.mrb[13].mxu0 }
 0x113   : > { %1401 = vst.msk [vmem:[%s2006_s13 + $0xa4] sm:$0xf] %vm1359_vm0, %v1655_v9  ;;  %v604_v18 = vadd.f32 %v1995_v44, %v603_v2  ;;  %v1045_v21 = vsel %vm901_vm3, %v753_v1, %v973_v12  ;;  %v1007_v22 = vsel %vm863_vm4, %v601_v7, %v935_v13  ;;  %v748_v23 = vadd.f32 %v1995_v44, %v747_v3  ;;  %v760_v25 = vpop.f32.mrb[13].mxu1  ;;  %v1761_v26 = vpop.f32.mrb[14].mxu0 }
 0x114   : > { %1370 = vst.msk [vmem:[%s2006_s13 + $0x28] sm:$0xf] %vm1359_vm0, %v1624_v11  ;;  %v625_v24 = vadd.f32 %v1760_v14, %v1995_v44  ;;  %v1660_v27 = vpack.c.bf16 %v1045_v21, %v1045_v21  ;;  %v1622_v28 = vpack.c.bf16 %v1007_v22, %v1007_v22  ;;  %vm899_vm5 = vcmp.ge.f32.partialorder %v745_v15, 0.0  ;;  %v1797_v30 = vpop.f32.mrb[14].mxu1  ;;  %v619_v31 = vpop.f32.mrb[15].mxu0 }
 0x115   : > { %v971_v29 = vmul.f32 0.2, %v745_v15  ;;  %vm866_vm6 = vcmp.ge.f32.partialorder %v612_v16, 0.0  ;;  %v938_v32 = vmul.f32 0.2, %v612_v16  ;;  %vm902_vm7 = vcmp.ge.f32.partialorder %v756_v17, 0.0 }
 0x116   : > { %v974_v33 = vmul.f32 0.2, %v756_v17  ;;  %1406 = vst.msk [vmem:[%s2006_s13 + $0xb8] sm:$0xf] %vm1359_vm0, %v1660_v27  ;;  %1368 = vst.msk [vmem:[%s2006_s13 + $0x20] sm:$0xf] %vm1359_vm0, %v1622_v28  ;;  %v769_v48 = vadd.f32 %v1796_v19, %v1995_v44  ;;  %v617_v52 = vadd.f32 %v1995_v44, %v616_v20  ;;  %v761_v53 = vadd.f32 %v1995_v44, %v760_v25 }
 0x117   : > { %v1043_v34 = vsel %vm899_vm5, %v745_v15, %v971_v29  ;;  %vm864_vm8 = vcmp.ge.f32.partialorder %v604_v18, 0.0  ;;  %v936_v35 = vmul.f32 0.2, %v604_v18  ;;  %vm900_vm9 = vcmp.ge.f32.partialorder %v748_v23, 0.0  ;;  %v763_v36 = vpop.f32.mrb[15].mxu1 }
 0x118   : > { %v1658_v37 = vpack.c.bf16 %v1043_v34, %v1043_v34  ;;  %v1010_v38 = vsel %vm866_vm6, %v612_v16, %v938_v32  ;;  %v1046_v39 = vsel %vm902_vm7, %v756_v17, %v974_v33  ;;  %v972_v40 = vmul.f32 0.2, %v748_v23 }
 0x119   : > { %v1625_v41 = vpack.c.bf16 %v1010_v38, %v1010_v38  ;;  %v1661_v42 = vpack.c.bf16 %v1046_v39, %v1046_v39  ;;  %v1008_v43 = vsel %vm864_vm8, %v604_v18, %v936_v35  ;;  %vm869_vm10 = vcmp.ge.f32.partialorder %v625_v24, 0.0  ;;  %v1764_v49 = vpop.f32.mrb[16].mxu0  ;;  %v1800_v50 = vpop.f32.mrb[16].mxu1 }
 0x11a   : > { %1404 = vst.msk [vmem:[%s2006_s13 + $0xb0] sm:$0xf] %vm1359_vm0, %v1658_v37  ;;  %v1623_v45 = vpack.c.bf16 %v1008_v43, %v1008_v43  ;;  %v1044_v46 = vsel %vm900_vm9, %v748_v23, %v972_v40  ;;  %v941_v47 = vmul.f32 0.2, %v625_v24  ;;  %v628_v54 = vadd.f32 %v1761_v26, %v1995_v44  ;;  %v632_v55 = vpop.f32.mrb[17].mxu0  ;;  %v776_v56 = vpop.f32.mrb[17].mxu1 }
 0x11b   : > { %1371 = vst.msk [vmem:[%s2006_s13 + $0x2c] sm:$0xf] %vm1359_vm0, %v1625_v41  ;;  %1407 = vst.msk [vmem:[%s2006_s13 + $0xbc] sm:$0xf] %vm1359_vm0, %v1661_v42  ;;  %v1659_v51 = vpack.c.bf16 %v1044_v46, %v1044_v46  ;;  %vm905_vm11 = vcmp.ge.f32.partialorder %v769_v48, 0.0  ;;  %v772_v59 = vadd.f32 %v1797_v30, %v1995_v44  ;;  %v2082_v60 = vpop.f32.mrb[18].mxu0  ;;  %v620_v11 = vadd.f32 %v1995_v44, %v619_v31 }
 0x11c   : > { %1369 = vst.msk [vmem:[%s2006_s13 + $0x24] sm:$0xf] %vm1359_vm0, %v1623_v45  ;;  %v1013_v57 = vsel %vm869_vm10, %v625_v24, %v941_v47  ;;  %v977_v58 = vmul.f32 0.2, %v769_v48  ;;  %v2084_v61 = vpop.f32.mrb[18].mxu1  ;;  %vm867_vm12 = vcmp.ge.f32.partialorder %v617_v52, 0.0  ;;  %v764_v15 = vadd.f32 %v1995_v44, %v763_v36 }
 0x11d   : > { %1405 = vst.msk [vmem:[%s2006_s13 + $0xb4] sm:$0xf] %vm1359_vm0, %v1659_v51  ;;  %v1628_v62 = vpack.c.bf16 %v1013_v57, %v1013_v57  ;;  %v939_v63 = vmul.f32 0.2, %v617_v52  ;;  %vm903_vm13 = vcmp.ge.f32.partialorder %v761_v53, 0.0  ;;  %v2088_v0 = vpop.f32.mrb[19].mxu0  ;;  %v641_v18 = vadd.f32 %v1764_v49, %v1995_v44 }
 0x11e   : > { %v2090_v1 = vpop.f32.mrb[19].mxu1  ;;  %v1049_v2 = vsel %vm905_vm11, %v769_v48, %v977_v58  ;;  %v975_v3 = vmul.f32 0.2, %v761_v53  ;;  %vm870_vm14 = vcmp.ge.f32.partialorder %v628_v54, 0.0  ;;  %v942_v4 = vmul.f32 0.2, %v628_v54 }
 0x11f   : > { %1374 = vst.msk [vmem:[%s2006_s13 + $0x38] sm:$0xf] %vm1359_vm0, %v1628_v62  ;;  %v1664_v5 = vpack.c.bf16 %v1049_v2, %v1049_v2  ;;  %v1011_v6 = vsel %vm867_vm12, %v617_v52, %v939_v63  ;;  %vm906_vm15 = vcmp.ge.f32.partialorder %v772_v59, 0.0  ;;  %v978_v7 = vmul.f32 0.2, %v772_v59 }
 0x120   : > { %v1626_v8 = vpack.c.bf16 %v1011_v6, %v1011_v6  ;;  %v1047_v9 = vsel %vm903_vm13, %v761_v53, %v975_v3  ;;  %v1014_v10 = vsel %vm870_vm14, %v628_v54, %v942_v4  ;;  %vm868_vm1 = vcmp.ge.f32.partialorder %v620_v11, 0.0 }
 0x121   : > { %1410 = vst.msk [vmem:[%s2006_s13 + $0xc8] sm:$0xf] %vm1359_vm0, %v1664_v5  ;;  %v1662_v12 = vpack.c.bf16 %v1047_v9, %v1047_v9  ;;  %v1629_v13 = vpack.c.bf16 %v1014_v10, %v1014_v10  ;;  %v1050_v14 = vsel %vm906_vm15, %v772_v59, %v978_v7  ;;  %v940_v17 = vmul.f32 0.2, %v620_v11  ;;  %v1768_v19 = vpop.f32.mrb[20].mxu0  ;;  %v1804_v20 = vpop.f32.mrb[20].mxu1 }
 0x122   : > { %1372 = vst.msk [vmem:[%s2006_s13 + $0x30] sm:$0xf] %vm1359_vm0, %v1626_v8  ;;  %v1665_v16 = vpack.c.bf16 %v1050_v14, %v1050_v14  ;;  %vm904_vm2 = vcmp.ge.f32.partialorder %v764_v15, 0.0  ;;  %v976_v21 = vmul.f32 0.2, %v764_v15  ;;  %v785_v22 = vadd.f32 %v1800_v50, %v1995_v44  ;;  %v648_v24 = vpop.f32.mrb[21].mxu0 }
 0x123   : > { %1408 = vst.msk [vmem:[%s2006_s13 + $0xc0] sm:$0xf] %vm1359_vm0, %v1662_v12  ;;  %1375 = vst.msk [vmem:[%s2006_s13 + $0x3c] sm:$0xf] %vm1359_vm0, %v1629_v13  ;;  %v633_v23 = vadd.f32 %v1995_v44, %v632_v55  ;;  %v2107_v25 = vpop.f32.mrb[21].mxu1  ;;  %v1012_v26 = vsel %vm868_vm1, %v620_v11, %v940_v17  ;;  %vm873_vm3 = vcmp.ge.f32.partialorder %v641_v18, 0.0  ;;  %v777_v28 = vadd.f32 %v1995_v44, %v776_v56 }
 0x124   : > { %1411 = vst.msk [vmem:[%s2006_s13 + $0xcc] sm:$0xf] %vm1359_vm0, %v1665_v16  ;;  %v945_v27 = vmul.f32 0.2, %v641_v18  ;;  %v2112_v29 = vpop.f32.mrb[22].mxu0  ;;  %v2114_v30 = vpop.f32.mrb[22].mxu1  ;;  %v1627_v31 = vpack.c.bf16 %v1012_v26, %v1012_v26  ;;  %v1048_v32 = vsel %vm904_vm2, %v764_v15, %v976_v21  ;;  %v644_v45 = vadd.f32 %v2082_v60, %v1995_v44 }
 0x125   : > { %vm909_vm4 = vcmp.ge.f32.partialorder %v785_v22, 0.0  ;;  %v981_v33 = vmul.f32 0.2, %v785_v22  ;;  %v2116_v34 = vpop.f32.mrb[23].mxu0  ;;  %v2118_v35 = vpop.f32.mrb[23].mxu1  ;;  %v1663_v36 = vpack.c.bf16 %v1048_v32, %v1048_v32  ;;  %vm871_vm5 = vcmp.ge.f32.partialorder %v633_v23, 0.0 }
 0x126   : > { %v1017_v37 = vsel %vm873_vm3, %v641_v18, %v945_v27  ;;  %v943_v38 = vmul.f32 0.2, %v633_v23  ;;  %1373 = vst.msk [vmem:[%s2006_s13 + $0x34] sm:$0xf] %vm1359_vm0, %v1627_v31  ;;  %vm907_vm6 = vcmp.ge.f32.partialorder %v777_v28, 0.0  ;;  %v788_v46 = vadd.f32 %v2084_v61, %v1995_v44 }
 0x127   : > { %v1632_v39 = vpack.c.bf16 %v1017_v37, %v1017_v37  ;;  %v1053_v40 = vsel %vm909_vm4, %v785_v22, %v981_v33  ;;  %v979_v41 = vmul.f32 0.2, %v777_v28  ;;  %1409 = vst.msk [vmem:[%s2006_s13 + $0xc4] sm:$0xf] %vm1359_vm0, %v1663_v36  ;;  %v636_v49 = vadd.f32 %v1995_v44, %v2088_v0 }
 0x128   : > { %v1668_v42 = vpack.c.bf16 %v1053_v40, %v1053_v40  ;;  %v1015_v43 = vsel %vm871_vm5, %v633_v23, %v943_v38  ;;  %v780_v50 = vadd.f32 %v1995_v44, %v2090_v1  ;;  %vm874_vm7 = vcmp.ge.f32.partialorder %v644_v45, 0.0 }
 0x129   : > { %1378 = vst.msk [vmem:[%s2006_s13 + $0x48] sm:$0xf] %vm1359_vm0, %v1632_v39  ;;  %v1630_v47 = vpack.c.bf16 %v1015_v43, %v1015_v43  ;;  %v1051_v48 = vsel %vm907_vm6, %v777_v28, %v979_v41  ;;  %v946_v52 = vmul.f32 0.2, %v644_v45  ;;  %vm910_vm8 = vcmp.ge.f32.partialorder %v788_v46, 0.0  ;;  %v2136_v53 = vpop.f32.mrb[24].mxu0 }
 0x12a   : > { %1414 = vst.msk [vmem:[%s2006_s13 + $0xd8] sm:$0xf] %vm1359_vm0, %v1668_v42  ;;  %v1666_v51 = vpack.c.bf16 %v1051_v48, %v1051_v48  ;;  %v2138_v54 = vpop.f32.mrb[24].mxu1  ;;  %v982_v55 = vmul.f32 0.2, %v788_v46  ;;  %vm872_vm9 = vcmp.ge.f32.partialorder %v636_v49, 0.0  ;;  %v657_v59 = vadd.f32 %v1768_v19, %v1995_v44 }
 0x12b   : > { %1376 = vst.msk [vmem:[%s2006_s13 + $0x40] sm:$0xf] %vm1359_vm0, %v1630_v47  ;;  %v944_v56 = vmul.f32 0.2, %v636_v49  ;;  %vm908_vm10 = vcmp.ge.f32.partialorder %v780_v50, 0.0  ;;  %v1018_v57 = vsel %vm874_vm7, %v644_v45, %v946_v52  ;;  %v801_v60 = vadd.f32 %v1804_v20, %v1995_v44  ;;  %v2146_v61 = vpop.f32.mrb[25].mxu0 }
 0x12c   : > { %1412 = vst.msk [vmem:[%s2006_s13 + $0xd0] sm:$0xf] %vm1359_vm0, %v1666_v51  ;;  %v980_v58 = vmul.f32 0.2, %v780_v50  ;;  %v2148_v62 = vpop.f32.mrb[25].mxu1  ;;  %v1633_v63 = vpack.c.bf16 %v1018_v57, %v1018_v57  ;;  %v1054_v0 = vsel %vm910_vm8, %v788_v46, %v982_v55  ;;  %v649_v2 = vadd.f32 %v1995_v44, %v648_v24  ;;  %v2152_v3 = vpop.f32.mrb[26].mxu0 }
 0x12d   : > { %v1016_v1 = vsel %vm872_vm9, %v636_v49, %v944_v56  ;;  %v2154_v4 = vpop.f32.mrb[26].mxu1  ;;  %v1669_v5 = vpack.c.bf16 %v1054_v0, %v1054_v0  ;;  %vm877_vm11 = vcmp.ge.f32.partialorder %v657_v59, 0.0  ;;  %v2157_v8 = vpop.f32.mrb[27].mxu0  ;;  %v949_v11 = vmul.f32 0.2, %v657_v59 }
 0x12e   : > { %v1631_v6 = vpack.c.bf16 %v1016_v1, %v1016_v1  ;;  %v1052_v7 = vsel %vm908_vm10, %v780_v50, %v980_v58  ;;  %v2159_v9 = vpop.f32.mrb[27].mxu1  ;;  %1379 = vst.msk [vmem:[%s2006_s13 + $0x4c] sm:$0xf] %vm1359_vm0, %v1633_v63  ;;  %vm913_vm12 = vcmp.ge.f32.partialorder %v801_v60, 0.0  ;;  %v985_v12 = vmul.f32 0.2, %v801_v60 }
 0x12f   : > { %v1667_v10 = vpack.c.bf16 %v1052_v7, %v1052_v7  ;;  %1415 = vst.msk [vmem:[%s2006_s13 + $0xdc] sm:$0xf] %vm1359_vm0, %v1669_v5  ;;  %vm875_vm13 = vcmp.ge.f32.partialorder %v649_v2, 0.0  ;;  %v947_v13 = vmul.f32 0.2, %v649_v2  ;;  %v793_v14 = vadd.f32 %v1995_v44, %v2107_v25 }
 0x130   : > { %1377 = vst.msk [vmem:[%s2006_s13 + $0x44] sm:$0xf] %vm1359_vm0, %v1631_v6  ;;  %v660_v15 = vadd.f32 %v2112_v29, %v1995_v44  ;;  %v1021_v16 = vsel %vm877_vm11, %v657_v59, %v949_v11  ;;  %v1057_v17 = vsel %vm913_vm12, %v801_v60, %v985_v12  ;;  %v804_v18 = vadd.f32 %v2114_v30, %v1995_v44 }
 0x131   : > { %1413 = vst.msk [vmem:[%s2006_s13 + $0xd4] sm:$0xf] %vm1359_vm0, %v1667_v10  ;;  %v652_v19 = vadd.f32 %v1995_v44, %v2116_v34  ;;  %v1636_v20 = vpack.c.bf16 %v1021_v16, %v1021_v16  ;;  %v1672_v21 = vpack.c.bf16 %v1057_v17, %v1057_v17  ;;  %v1019_v22 = vsel %vm875_vm13, %v649_v2, %v947_v13  ;;  %v2177_v23 = vpop.f32.mrb[28].mxu0  ;;  %v2179_v24 = vpop.f32.mrb[28].mxu1 }
 0x132   : > { %vm911_vm14 = vcmp.ge.f32.partialorder %v793_v14, 0.0  ;;  %v1634_v25 = vpack.c.bf16 %v1019_v22, %v1019_v22  ;;  %v983_v26 = vmul.f32 0.2, %v793_v14  ;;  %vm878_vm15 = vcmp.ge.f32.partialorder %v660_v15, 0.0  ;;  %v2181_v28 = vpop.f32.mrb[29].mxu0  ;;  %v2193_v36 = vpop.f32.mrb[29].mxu1 }
 0x133   : > { %v950_v27 = vmul.f32 0.2, %v660_v15  ;;  %1382 = vst.msk [vmem:[%s2006_s13 + $0x58] sm:$0xf] %vm1359_vm0, %v1636_v20  ;;  %1418 = vst.msk [vmem:[%s2006_s13 + $0xe8] sm:$0xf] %vm1359_vm0, %v1672_v21  ;;  %v796_v33 = vadd.f32 %v1995_v44, %v2118_v35  ;;  %v673_v34 = vadd.f32 %v2136_v53, %v1995_v44  ;;  %v817_v49 = vadd.f32 %v2138_v54, %v1995_v44 }
 0x134   : > { %vm914_vm1 = vcmp.ge.f32.partialorder %v804_v18, 0.0  ;;  %v986_v29 = vmul.f32 0.2, %v804_v18  ;;  %vm876_vm2 = vcmp.ge.f32.partialorder %v652_v19, 0.0  ;;  %v948_v30 = vmul.f32 0.2, %v652_v19 }
 0x135   : > { %1380 = vst.msk [vmem:[%s2006_s13 + $0x50] sm:$0xf] %vm1359_vm0, %v1634_v25  ;;  %v1055_v31 = vsel %vm911_vm14, %v793_v14, %v983_v26  ;;  %v1022_v32 = vsel %vm878_vm15, %v660_v15, %v950_v27  ;;  %v2195_v37 = vpop.f32.mrb[30].mxu0  ;;  %v2197_v42 = vpop.f32.mrb[30].mxu1  ;;  %vm912_vm3 = vcmp.ge.f32.partialorder %v796_v33, 0.0  ;;  %vm881_vm4 = vcmp.ge.f32.partialorder %v673_v34, 0.0 }
 0x136   : > { %v1670_v38 = vpack.c.bf16 %v1055_v31, %v1055_v31  ;;  %v1637_v39 = vpack.c.bf16 %v1022_v32, %v1022_v32  ;;  %v1058_v40 = vsel %vm914_vm1, %v804_v18, %v986_v29  ;;  %v1020_v41 = vsel %vm876_vm2, %v652_v19, %v948_v30  ;;  %v2199_v43 = vpop.f32.mrb[31].mxu0  ;;  %v2201_v47 = vpop.f32.mrb[31].mxu1 }
 0x137   : > { %v1673_v45 = vpack.c.bf16 %v1058_v40, %v1058_v40  ;;  %v1635_v35 = vpack.c.bf16 %v1020_v41, %v1020_v41  ;;  %v984_v46 = vmul.f32 0.2, %v796_v33  ;;  %v953_v48 = vmul.f32 0.2, %v673_v34 }
 0x138   : > { %1416 = vst.msk [vmem:[%s2006_s13 + $0xe0] sm:$0xf] %vm1359_vm0, %v1670_v38  ;;  %1383 = vst.msk [vmem:[%s2006_s13 + $0x5c] sm:$0xf] %vm1359_vm0, %v1637_v39  ;;  %v665_v50 = vadd.f32 %v1995_v44, %v2146_v61  ;;  %v809_v52 = vadd.f32 %v1995_v44, %v2148_v62  ;;  %v676_v53 = vadd.f32 %v2152_v3, %v1995_v44  ;;  %vm917_vm5 = vcmp.ge.f32.partialorder %v817_v49, 0.0 }
 0x139   : > { %1419 = vst.msk [vmem:[%s2006_s13 + $0xec] sm:$0xf] %vm1359_vm0, %v1673_v45  ;;  %1381 = vst.msk [vmem:[%s2006_s13 + $0x54] sm:$0xf] %vm1359_vm0, %v1635_v35  ;;  %v1056_v51 = vsel %vm912_vm3, %v796_v33, %v984_v46  ;;  %v820_v55 = vadd.f32 %v2154_v4, %v1995_v44  ;;  %v1025_v54 = vsel %vm881_vm4, %v673_v34, %v953_v48  ;;  %v989_v57 = vmul.f32 0.2, %v817_v49 }
 0x13a   : > { %v1671_v56 = vpack.c.bf16 %v1056_v51, %v1056_v51  ;;  %v2221_v58 = vpop.f32.mrb[32].mxu0  ;;  %v2223_v59 = vpop.f32.mrb[32].mxu1  ;;  %v1640_v60 = vpack.c.bf16 %v1025_v54, %v1025_v54  ;;  %vm879_vm6 = vcmp.ge.f32.partialorder %v665_v50, 0.0  ;;  %v951_v61 = vmul.f32 0.2, %v665_v50 }
 0x13b   : > { %vm915_vm7 = vcmp.ge.f32.partialorder %v809_v52, 0.0  ;;  %v2225_v62 = vpop.f32.mrb[33].mxu0  ;;  %v2227_v63 = vpop.f32.mrb[33].mxu1  ;;  %v1061_v0 = vsel %vm917_vm5, %v817_v49, %v989_v57  ;;  %v987_v1 = vmul.f32 0.2, %v809_v52  ;;  %vm882_vm8 = vcmp.ge.f32.partialorder %v676_v53, 0.0 }
 0x13c   : > { %1417 = vst.msk [vmem:[%s2006_s13 + $0xe4] sm:$0xf] %vm1359_vm0, %v1671_v56  ;;  %v954_v2 = vmul.f32 0.2, %v676_v53  ;;  %v2231_v3 = vpop.f32.mrb[34].mxu0  ;;  %v1676_v4 = vpack.c.bf16 %v1061_v0, %v1061_v0  ;;  %v1023_v5 = vsel %vm879_vm6, %v665_v50, %v951_v61  ;;  %vm918_vm9 = vcmp.ge.f32.partialorder %v820_v55, 0.0 }
 0x13d   : > { %1386 = vst.msk [vmem:[%s2006_s13 + $0x68] sm:$0xf] %vm1359_vm0, %v1640_v60  ;;  %v990_v6 = vmul.f32 0.2, %v820_v55  ;;  %v2235_v7 = vpop.f32.mrb[34].mxu1  ;;  %v2237_v10 = vpop.f32.mrb[35].mxu0  ;;  %v1638_v11 = vpack.c.bf16 %v1023_v5, %v1023_v5  ;;  %v1059_v12 = vsel %vm915_vm7, %v809_v52, %v987_v1  ;;  %v668_v14 = vadd.f32 %v1995_v44, %v2157_v8 }
 0x13e   : > { %v1026_v13 = vsel %vm882_vm8, %v676_v53, %v954_v2  ;;  %v2242_v15 = vpop.f32.mrb[35].mxu1  ;;  %1422 = vst.msk [vmem:[%s2006_s13 + $0xf8] sm:$0xf] %vm1359_vm0, %v1676_v4  ;;  %v1674_v16 = vpack.c.bf16 %v1059_v12, %v1059_v12  ;;  %v812_v19 = vadd.f32 %v1995_v44, %v2159_v9  ;;  %v689_v22 = vadd.f32 %v2177_v23, %v1995_v44 }
 0x13f   : > { %v1641_v17 = vpack.c.bf16 %v1026_v13, %v1026_v13  ;;  %v1062_v18 = vsel %vm918_vm9, %v820_v55, %v990_v6  ;;  %1384 = vst.msk [vmem:[%s2006_s13 + $0x60] sm:$0xf] %vm1359_vm0, %v1638_v11  ;;  %vm880_vm10 = vcmp.ge.f32.partialorder %v668_v14, 0.0  ;;  %v952_v21 = vmul.f32 0.2, %v668_v14 }
 0x140   : > { %v1677_v20 = vpack.c.bf16 %v1062_v18, %v1062_v18  ;;  %1420 = vst.msk [vmem:[%s2006_s13 + $0xf0] sm:$0xf] %vm1359_vm0, %v1674_v16  ;;  %vm916_vm11 = vcmp.ge.f32.partialorder %v812_v19, 0.0  ;;  %v988_v8 = vmul.f32 0.2, %v812_v19  ;;  %v833_v25 = vadd.f32 %v2179_v24, %v1995_v44 }
 0x141   : > { %1387 = vst.msk [vmem:[%s2006_s13 + $0x6c] sm:$0xf] %vm1359_vm0, %v1641_v17  ;;  %v681_v9 = vadd.f32 %v1995_v44, %v2181_v28  ;;  %v1024_v26 = vsel %vm880_vm10, %v668_v14, %v952_v21  ;;  %vm885_vm12 = vcmp.ge.f32.partialorder %v689_v22, 0.0  ;;  %v957_v27 = vmul.f32 0.2, %v689_v22 }
 0x142   : > { %1423 = vst.msk [vmem:[%s2006_s13 + $0xfc] sm:$0xf] %vm1359_vm0, %v1677_v20  ;;  %v825_v23 = vadd.f32 %v1995_v44, %v2193_v36  ;;  %v1639_v29 = vpack.c.bf16 %v1024_v26, %v1024_v26  ;;  %v1060_v30 = vsel %vm916_vm11, %v812_v19, %v988_v8  ;;  %vm921_vm13 = vcmp.ge.f32.partialorder %v833_v25, 0.0 }
 0x143   : > { %v993_v31 = vmul.f32 0.2, %v833_v25  ;;  %v1675_v32 = vpack.c.bf16 %v1060_v30, %v1060_v30  ;;  %v1029_v33 = vsel %vm885_vm12, %v689_v22, %v957_v27  ;;  %vm883_vm14 = vcmp.ge.f32.partialorder %v681_v9, 0.0 }
 0x144   : > { %v955_v24 = vmul.f32 0.2, %v681_v9  ;;  %1385 = vst.msk [vmem:[%s2006_s13 + $0x64] sm:$0xf] %vm1359_vm0, %v1639_v29  ;;  %v1644_v28 = vpack.c.bf16 %v1029_v33, %v1029_v33  ;;  %vm919_vm15 = vcmp.ge.f32.partialorder %v825_v23, 0.0  ;;  %v692_v40 = vadd.f32 %v2195_v37, %v1995_v44 }
 0x145   : > { %v1065_v34 = vsel %vm921_vm13, %v833_v25, %v993_v31  ;;  %v991_v38 = vmul.f32 0.2, %v825_v23  ;;  %1421 = vst.msk [vmem:[%s2006_s13 + $0xf4] sm:$0xf] %vm1359_vm0, %v1675_v32  ;;  %v836_v41 = vadd.f32 %v2197_v42, %v1995_v44  ;;  %v684_v46 = vadd.f32 %v1995_v44, %v2199_v43 }
 0x146   : > { %v1680_v36 = vpack.c.bf16 %v1065_v34, %v1065_v34  ;;  %v1027_v39 = vsel %vm883_vm14, %v681_v9, %v955_v24  ;;  %1390 = vst.msk [vmem:[%s2006_s13 + $0x78] sm:$0xf] %vm1359_vm0, %v1644_v28  ;;  %v828_v48 = vadd.f32 %v1995_v44, %v2201_v47  ;;  %vm886_vm1 = vcmp.ge.f32.partialorder %v692_v40, 0.0 }
 0x147   : > { %v1642_v45 = vpack.c.bf16 %v1027_v39, %v1027_v39  ;;  %v1063_v35 = vsel %vm919_vm15, %v825_v23, %v991_v38  ;;  %v958_v50 = vmul.f32 0.2, %v692_v40  ;;  %vm922_vm2 = vcmp.ge.f32.partialorder %v836_v41, 0.0 }
 0x148   : > { %1426 = vst.msk [vmem:[%s2006_s13 + $0x108] sm:$0xf] %vm1359_vm0, %v1680_v36  ;;  %v1678_v49 = vpack.c.bf16 %v1063_v35, %v1063_v35  ;;  %v994_v37 = vmul.f32 0.2, %v836_v41  ;;  %vm884_vm3 = vcmp.ge.f32.partialorder %v684_v46, 0.0  ;;  %vm920_vm4 = vcmp.ge.f32.partialorder %v828_v48, 0.0 }
 0x149   : > { %1388 = vst.msk [vmem:[%s2006_s13 + $0x70] sm:$0xf] %vm1359_vm0, %v1642_v45  ;;  %v956_v42 = vmul.f32 0.2, %v684_v46  ;;  %v1030_v51 = vsel %vm886_vm1, %v692_v40, %v958_v50  ;;  %v992_v43 = vmul.f32 0.2, %v828_v48  ;;  %v705_v47 = vadd.f32 %v2221_v58, %v1995_v44 }
 0x14a   : > { %1424 = vst.msk [vmem:[%s2006_s13 + $0x100] sm:$0xf] %vm1359_vm0, %v1678_v49  ;;  %v849_v52 = vadd.f32 %v2223_v59, %v1995_v44  ;;  %v1645_v53 = vpack.c.bf16 %v1030_v51, %v1030_v51  ;;  %v1066_v55 = vsel %vm922_vm2, %v836_v41, %v994_v37  ;;  %v697_v54 = vadd.f32 %v1995_v44, %v2225_v62 }
 0x14b   : > { %v1028_v56 = vsel %vm884_vm3, %v684_v46, %v956_v42  ;;  %v1681_v57 = vpack.c.bf16 %v1066_v55, %v1066_v55  ;;  %v1064_v61 = vsel %vm920_vm4, %v828_v48, %v992_v43  ;;  %vm889_vm5 = vcmp.ge.f32.partialorder %v705_v47, 0.0 }
 0x14c   : > { %v1643_v60 = vpack.c.bf16 %v1028_v56, %v1028_v56  ;;  %1391 = vst.msk [vmem:[%s2006_s13 + $0x7c] sm:$0xf] %vm1359_vm0, %v1645_v53  ;;  %v1679_v0 = vpack.c.bf16 %v1064_v61, %v1064_v61  ;;  %v961_v1 = vmul.f32 0.2, %v705_v47  ;;  %vm925_vm6 = vcmp.ge.f32.partialorder %v849_v52, 0.0 }
 0x14d   : > { %v997_v58 = vmul.f32 0.2, %v849_v52  ;;  %1427 = vst.msk [vmem:[%s2006_s13 + $0x10c] sm:$0xf] %vm1359_vm0, %v1681_v57  ;;  %vm887_vm7 = vcmp.ge.f32.partialorder %v697_v54, 0.0  ;;  %v841_v62 = vadd.f32 %v1995_v44, %v2227_v63  ;;  %v708_v2 = vadd.f32 %v2231_v3, %v1995_v44 }
 0x14e   : > { %1389 = vst.msk [vmem:[%s2006_s13 + $0x74] sm:$0xf] %vm1359_vm0, %v1643_v60  ;;  %v959_v59 = vmul.f32 0.2, %v697_v54  ;;  %1425 = vst.msk [vmem:[%s2006_s13 + $0x104] sm:$0xf] %vm1359_vm0, %v1679_v0  ;;  %v1033_v4 = vsel %vm889_vm5, %v705_v47, %v961_v1  ;;  %v852_v6 = vadd.f32 %v2235_v7, %v1995_v44  ;;  %v700_v11 = vadd.f32 %v1995_v44, %v2237_v10 }
 0x14f   : > { %v1069_v5 = vsel %vm925_vm6, %v849_v52, %v997_v58  ;;  %v1648_v12 = vpack.c.bf16 %v1033_v4, %v1033_v4  ;;  %vm923_vm8 = vcmp.ge.f32.partialorder %v841_v62, 0.0  ;;  %v995_v16 = vmul.f32 0.2, %v841_v62 }
 0x150   : > { %v1684_v13 = vpack.c.bf16 %v1069_v5, %v1069_v5  ;;  %v1031_v14 = vsel %vm887_vm7, %v697_v54, %v959_v59  ;;  %vm890_vm9 = vcmp.ge.f32.partialorder %v708_v2, 0.0  ;;  %v962_v17 = vmul.f32 0.2, %v708_v2 }
 0x151   : > { %v1646_v63 = vpack.c.bf16 %v1031_v14, %v1031_v14  ;;  %1394 = vst.msk [vmem:[%s2006_s13 + $0x88] sm:$0xf] %vm1359_vm0, %v1648_v12  ;;  %vm926_vm10 = vcmp.ge.f32.partialorder %v852_v6, 0.0  ;;  %v998_v3 = vmul.f32 0.2, %v852_v6  ;;  %vm888_vm11 = vcmp.ge.f32.partialorder %v700_v11, 0.0 }
 0x152   : > { %1430 = vst.msk [vmem:[%s2006_s13 + $0x118] sm:$0xf] %vm1359_vm0, %v1684_v13  ;;  %v960_v7 = vmul.f32 0.2, %v700_v11  ;;  %v1067_v10 = vsel %vm923_vm8, %v841_v62, %v995_v16  ;;  %v1034_v18 = vsel %vm890_vm9, %v708_v2, %v962_v17  ;;  %v844_v19 = vadd.f32 %v1995_v44, %v2242_v15 }
 0x153   : > { %1392 = vst.msk [vmem:[%s2006_s13 + $0x80] sm:$0xf] %vm1359_vm0, %v1646_v63  ;;  %v1682_v20 = vpack.c.bf16 %v1067_v10, %v1067_v10  ;;  %v1649_v21 = vpack.c.bf16 %v1034_v18, %v1034_v18  ;;  %v1070_v22 = vsel %vm926_vm10, %v852_v6, %v998_v3 }
 0x154   : > { %v1032_v8 = vsel %vm888_vm11, %v700_v11, %v960_v7  ;;  %v1685_v25 = vpack.c.bf16 %v1070_v22, %v1070_v22  ;;  %vm924_vm12 = vcmp.ge.f32.partialorder %v844_v19, 0.0  ;;  %v996_v26 = vmul.f32 0.2, %v844_v19 }
 0x155   : > { %v1647_v9 = vpack.c.bf16 %v1032_v8, %v1032_v8  ;;  %1428 = vst.msk [vmem:[%s2006_s13 + $0x110] sm:$0xf] %vm1359_vm0, %v1682_v20  ;;  %1395 = vst.msk [vmem:[%s2006_s13 + $0x8c] sm:$0xf] %vm1359_vm0, %v1649_v21 }
 0x156   : > { %1431 = vst.msk [vmem:[%s2006_s13 + $0x11c] sm:$0xf] %vm1359_vm0, %v1685_v25  ;;  %v1068_v27 = vsel %vm924_vm12, %v844_v19, %v996_v26 }
 0x157   : > { %1393 = vst.msk [vmem:[%s2006_s13 + $0x84] sm:$0xf] %vm1359_vm0, %v1647_v9  ;;  %v1683_v23 = vpack.c.bf16 %v1068_v27, %v1068_v27 }
 0x159   : > { %1429 = vst.msk [vmem:[%s2006_s13 + $0x114] sm:$0xf] %vm1359_vm0, %v1683_v23 }
 0x15a PF: > { %s13_s12 = sadd.s32 1, %s1892_s12  }
 0x15b   : > { %p10_p4 = scmp.ge.s32.totalorder %s13_s12, 4  }
 0x15d   :  { %12 = sbr.rel (!%p10_p4) target bundleno = 1 (0x1), region = 62 }

// kernel: _lambda_.4
= control target key start
LH: loop header
LB: loop body
LE: loop exit
PB: predicated region body
PF: predicated region fallthrough
CT: control target
= control target key end

     0   :  { %v3288_v0 = vmov 0   ;;  %s4600_s1 = inlined_call_operand.vmem [shape: bf16[1024,128], index: 1, kind: input, shape index: {}]   ;;  %s4601_s0 = inlined_call_operand.vmem [shape: bf16[288,1024], index: 0, kind: input, shape index: {}]   ;;  %s4602_s2 = inlined_call_operand.vmem [shape: f32[1,128], index: 2, kind: input, shape index: {}]   ;;  %s4603_s3 = inlined_call_operand.vmem [shape: f32[1,128], index: 3, kind: input, shape index: {}]   ;;  %s4604_s4 = inlined_call_operand.vmem [shape: f32[1,128], index: 4, kind: input, shape index: {}]   ;;  %s4605_s5 = inlined_call_operand.vmem [shape: bf16[288,128], index: 5, kind: output, shape index: {}]  }
   0x1   :  { %1404 = vmatprep.subr.bf16.mxu1 %v3288_v0  ;;  %1758 = vmatprep.subr.bf16.mxu0 %v3288_v0  ;;  %v3222_v1 = vld [vmem:[%s4600_s1] sm:$0xff]   ;;  %v3224_v3 = vld [vmem:[%s4600_s1 + $0x8] sm:$0xff]   ;;  %v3226_v5 = vld [vmem:[%s4600_s1 + $0x10] sm:$0xff]  }
   0x2   :  { %v3223_v2 = vld [vmem:[%s4600_s1 + $0x100] sm:$0xff]   ;;  %1405 = vmatpush1.bf16.msra.mxu1 %v3222_v1  ;;  %v3225_v4 = vld [vmem:[%s4600_s1 + $0x108] sm:$0xff]   ;;  %v3227_v6 = vld [vmem:[%s4600_s1 + $0x110] sm:$0xff]  }
   0x3   :  { %1759 = vmatpush1.bf16.msra.mxu0 %v3223_v2  ;;  %1406 = vmatprep.subr.bf16.mxu1 %v3288_v0  ;;  %v3228_v7 = vld [vmem:[%s4600_s1 + $0x18] sm:$0xff]   ;;  %v3230_v9 = vld [vmem:[%s4600_s1 + $0x20] sm:$0xff]   ;;  %v3232_v11 = vld [vmem:[%s4600_s1 + $0x28] sm:$0xff]  }
   0x4   :  { %1760 = vmatprep.subr.bf16.mxu0 %v3288_v0  ;;  %v3229_v8 = vld [vmem:[%s4600_s1 + $0x118] sm:$0xff]   ;;  %v3231_v10 = vld [vmem:[%s4600_s1 + $0x120] sm:$0xff]   ;;  %v3233_v12 = vld [vmem:[%s4600_s1 + $0x128] sm:$0xff]  }
   0x5   :  { %v3234_v13 = vld [vmem:[%s4600_s1 + $0x30] sm:$0xff]   ;;  %v3236_v15 = vld [vmem:[%s4600_s1 + $0x38] sm:$0xff]   ;;  %v3238_v17 = vld [vmem:[%s4600_s1 + $0x40] sm:$0xff]  }
   0x6   :  { %1407 = vmatpush1.bf16.msra.mxu1 %v3224_v3  ;;  %v3235_v14 = vld [vmem:[%s4600_s1 + $0x130] sm:$0xff]   ;;  %v3237_v16 = vld [vmem:[%s4600_s1 + $0x138] sm:$0xff]   ;;  %v3239_v18 = vld [vmem:[%s4600_s1 + $0x140] sm:$0xff]  }
   0x7   :  { %1761 = vmatpush1.bf16.msra.mxu0 %v3225_v4  ;;  %1408 = vmatprep.subr.bf16.mxu1 %v3288_v0  ;;  %v3394_v19 = vld [vmem:[%s4601_s0] sm:$0xff]  ;;  %v3404_v21 = vld [vmem:[%s4601_s0 + $0x10] sm:$0xff]  ;;  %v3240_v24 = vld [vmem:[%s4600_s1 + $0x48] sm:$0xff]  }
   0x8   :  { %1762 = vmatprep.subr.bf16.mxu0 %v3288_v0  ;;  %v3399_v20 = vld [vmem:[%s4601_s0 + $0x20] sm:$0xff]  ;;  %v27_v23 = vld [vmem:[%s4601_s0 + $0x30] sm:$0xff]  ;;  %v3241_v26 = vld [vmem:[%s4600_s1 + $0x148] sm:$0xff]  }
   0x9   :  { %v2619_v22 = vcombine.high %v3394_v19, %v3399_v20  ;;  %v2623_v25 = vcombine.high %v3404_v21, %v27_v23  ;;  %v3242_v27 = vld [vmem:[%s4600_s1 + $0x50] sm:$0xff]   ;;  %v3244_v29 = vld [vmem:[%s4600_s1 + $0x58] sm:$0xff]   ;;  %v3246_v31 = vld [vmem:[%s4600_s1 + $0x60] sm:$0xff]   ;;  %v2618_v42 = vcombine.low %v3394_v19, %v3399_v20  ;;  %v2622_v44 = vcombine.low %v3404_v21, %v27_v23 }
   0xa   :  { %1409 = vmatpush1.bf16.msra.mxu1 %v3226_v5  ;;  %v3243_v28 = vld [vmem:[%s4600_s1 + $0x150] sm:$0xff]   ;;  %v3245_v30 = vld [vmem:[%s4600_s1 + $0x158] sm:$0xff]   ;;  %v3247_v32 = vld [vmem:[%s4600_s1 + $0x160] sm:$0xff]  }
   0xb   :  { %1763 = vmatpush1.bf16.msra.mxu0 %v3227_v6  ;;  %1410 = vmatprep.subr.bf16.mxu1 %v3288_v0  ;;  %v3248_v33 = vld [vmem:[%s4600_s1 + $0x68] sm:$0xff]   ;;  %v3250_v35 = vld [vmem:[%s4600_s1 + $0x70] sm:$0xff]   ;;  %v3252_v37 = vld [vmem:[%s4600_s1 + $0x78] sm:$0xff]  }
   0xc   :  { %1764 = vmatprep.subr.bf16.mxu0 %v3288_v0  ;;  %1436 = vmatprep.mubr.bf16.mxu1 %v2619_v22  ;;  %v3249_v34 = vld [vmem:[%s4600_s1 + $0x168] sm:$0xff]   ;;  %v3251_v36 = vld [vmem:[%s4600_s1 + $0x170] sm:$0xff]   ;;  %v3253_v38 = vld [vmem:[%s4600_s1 + $0x178] sm:$0xff]  }
   0xd   :  { %1790 = vmatprep.mubr.bf16.mxu0 %v2623_v25  ;;  %v29_v39 = vld [vmem:[%s4601_s0 + $0x40] sm:$0xff]  ;;  %v31_v41 = vld [vmem:[%s4601_s0 + $0x50] sm:$0xff]  ;;  %v3256_v49 = vld [vmem:[%s4600_s1 + $0x88] sm:$0xff]  }
   0xe   :  { %1411 = vmatpush1.bf16.msra.mxu1 %v3228_v7  ;;  %v33_v40 = vld [vmem:[%s4601_s0 + $0x60] sm:$0xff]  ;;  %v35_v43 = vld [vmem:[%s4601_s0 + $0x70] sm:$0xff]  ;;  %v3257_v50 = vld [vmem:[%s4600_s1 + $0x188] sm:$0xff]  }
   0xf   :  { %1765 = vmatpush1.bf16.msra.mxu0 %v3229_v8  ;;  %1412 = vmatprep.subr.bf16.mxu1 %v3288_v0  ;;  %v3254_v45 = vld [vmem:[%s4600_s1 + $0x80] sm:$0xff]   ;;  %v2627_v47 = vcombine.high %v29_v39, %v33_v40  ;;  %v2631_v48 = vcombine.high %v31_v41, %v35_v43  ;;  %v39_v53 = vld [vmem:[%s4601_s0 + $0x90] sm:$0xff]  ;;  %v2626_v55 = vcombine.low %v29_v39, %v33_v40  ;;  %v3260_v63 = vld [vmem:[%s4600_s1 + $0x98] sm:$0xff]  }
  0x10   :  { %1766 = vmatprep.subr.bf16.mxu0 %v3288_v0  ;;  %v3255_v46 = vld [vmem:[%s4600_s1 + $0x180] sm:$0xff]   ;;  %v43_v54 = vld [vmem:[%s4601_s0 + $0xb0] sm:$0xff]  ;;  %v2630_v56 = vcombine.low %v31_v41, %v35_v43  ;;  %v3261_v3 = vld [vmem:[%s4600_s1 + $0x198] sm:$0xff]  }
  0x11   :  { %v37_v51 = vld [vmem:[%s4601_s0 + $0x80] sm:$0xff]  ;;  %v2639_v58 = vcombine.high %v39_v53, %v43_v54  ;;  %v3258_v59 = vld [vmem:[%s4600_s1 + $0x90] sm:$0xff]   ;;  %v2638_v5 = vcombine.low %v39_v53, %v43_v54  ;;  %v3273_v39 = vld [vmem:[%s4600_s1 + $0x1c8] sm:$0xff]  }
  0x12   :  { %1413 = vmatpush1.bf16.msra.mxu1 %v3230_v9  ;;  %v41_v52 = vld [vmem:[%s4601_s0 + $0xa0] sm:$0xff]  ;;  %v3259_v60 = vld [vmem:[%s4600_s1 + $0x190] sm:$0xff]  }
  0x13   :  { %1767 = vmatpush1.bf16.msra.mxu0 %v3231_v10  ;;  %1414 = vmatprep.subr.bf16.mxu1 %v3288_v0  ;;  %v2635_v57 = vcombine.high %v37_v51, %v41_v52  ;;  %v45_v61 = vld [vmem:[%s4601_s0 + $0xc0] sm:$0xff]  ;;  %v47_v1 = vld [vmem:[%s4601_s0 + $0xd0] sm:$0xff]  ;;  %v2634_v4 = vcombine.low %v37_v51, %v41_v52  ;;  %v3277_v51 = vld [vmem:[%s4600_s1 + $0x1d8] sm:$0xff]  }
  0x14   :  { %1768 = vmatprep.subr.bf16.mxu0 %v3288_v0  ;;  %v49_v62 = vld [vmem:[%s4601_s0 + $0xe0] sm:$0xff]  ;;  %v51_v2 = vld [vmem:[%s4601_s0 + $0xf0] sm:$0xff] }
  0x15   :  { %v2643_v6 = vcombine.high %v45_v61, %v49_v62  ;;  %v2647_v7 = vcombine.high %v47_v1, %v51_v2  ;;  %v3262_v8 = vld [vmem:[%s4600_s1 + $0xa0] sm:$0xff]   ;;  %v3266_v20 = vld [vmem:[%s4600_s1 + $0xb0] sm:$0xff]  }
  0x16   :  { %1415 = vmatpush1.bf16.msra.mxu1 %v3232_v11  ;;  %v3263_v9 = vld [vmem:[%s4600_s1 + $0x1a0] sm:$0xff]   ;;  %v3267_v21 = vld [vmem:[%s4600_s1 + $0x1b0] sm:$0xff]  }
  0x17   :  { %1769 = vmatpush1.bf16.msra.mxu0 %v3233_v12  ;;  %1416 = vmatprep.subr.bf16.mxu1 %v3288_v0  ;;  %v53_v10 = vld [vmem:[%s4601_s0 + $0x100] sm:$0xff]  ;;  %v55_v12 = vld [vmem:[%s4601_s0 + $0x110] sm:$0xff] }
  0x18   :  { %1770 = vmatprep.subr.bf16.mxu0 %v3288_v0  ;;  %v57_v11 = vld [vmem:[%s4601_s0 + $0x120] sm:$0xff]  ;;  %v63_v25 = vld [vmem:[%s4601_s0 + $0x150] sm:$0xff] }
  0x19   :  { %v61_v22 = vld [vmem:[%s4601_s0 + $0x140] sm:$0xff] }
  0x1a   :  { %1417 = vmatpush1.bf16.msra.mxu1 %v3234_v13  ;;  %v3264_v13 = vld [vmem:[%s4600_s1 + $0xa8] sm:$0xff]   ;;  %v65_v23 = vld [vmem:[%s4601_s0 + $0x160] sm:$0xff] }
  0x1b   :  { %1771 = vmatpush1.bf16.msra.mxu0 %v3235_v14  ;;  %1418 = vmatprep.subr.bf16.mxu1 %v3288_v0  ;;  %v59_v14 = vld [vmem:[%s4601_s0 + $0x130] sm:$0xff]  ;;  %v2658_v40 = vcombine.low %v61_v22, %v65_v23 }
  0x1c   :  { %1772 = vmatprep.subr.bf16.mxu0 %v3288_v0  ;;  %v2655_v19 = vcombine.high %v55_v12, %v59_v14 }
  0x1e   :  { %1419 = vmatpush1.bf16.msra.mxu1 %v3236_v15  ;;  %v3265_v15 = vld [vmem:[%s4600_s1 + $0x1a8] sm:$0xff]  }
  0x1f   :  { %1773 = vmatpush1.bf16.msra.mxu0 %v3237_v16  ;;  %1420 = vmatprep.subr.bf16.mxu1 %v3288_v0  ;;  %v2642_v16 = vcombine.low %v45_v61, %v49_v62  ;;  %v87_v61 = vld [vmem:[%s4601_s0 + $0x210] sm:$0xff] }
  0x20   :  { %1774 = vmatprep.subr.bf16.mxu0 %v3288_v0  ;;  %v91_v62 = vld [vmem:[%s4601_s0 + $0x230] sm:$0xff] }
  0x22   :  { %1421 = vmatpush1.bf16.msra.mxu1 %v3238_v17  ;;  %v2646_v17 = vcombine.low %v47_v1, %v51_v2 }
  0x23   :  { %1775 = vmatpush1.bf16.msra.mxu0 %v3239_v18  ;;  %1422 = vmatprep.subr.bf16.mxu1 %v3288_v0  ;;  %v2651_v18 = vcombine.high %v53_v10, %v57_v11 }
  0x24   :  { %1776 = vmatprep.subr.bf16.mxu0 %v3288_v0 }
  0x26   :  { %1423 = vmatpush1.bf16.msra.mxu1 %v3240_v24  ;;  %v3268_v24 = vld [vmem:[%s4600_s1 + $0xb8] sm:$0xff]  }
  0x27   :  { %1777 = vmatpush1.bf16.msra.mxu0 %v3241_v26  ;;  %1424 = vmatprep.subr.bf16.mxu1 %v3288_v0  ;;  %v67_v26 = vld [vmem:[%s4601_s0 + $0x170] sm:$0xff] }
  0x28   :  { %1778 = vmatprep.subr.bf16.mxu0 %v3288_v0  ;;  %v2662_v41 = vcombine.low %v63_v25, %v67_v26 }
  0x2a   :  { %1425 = vmatpush1.bf16.msra.mxu1 %v3242_v27  ;;  %v3269_v27 = vld [vmem:[%s4600_s1 + $0x1b8] sm:$0xff]  }
  0x2b   :  { %1779 = vmatpush1.bf16.msra.mxu0 %v3243_v28  ;;  %1426 = vmatprep.subr.bf16.mxu1 %v3288_v0  ;;  %v2650_v28 = vcombine.low %v53_v10, %v57_v11  ;;  %v95_v10 = vld [vmem:[%s4601_s0 + $0x250] sm:$0xff] }
  0x2c   :  { %1780 = vmatprep.subr.bf16.mxu0 %v3288_v0  ;;  %v99_v11 = vld [vmem:[%s4601_s0 + $0x270] sm:$0xff] }
  0x2e   :  { %1427 = vmatpush1.bf16.msra.mxu1 %v3244_v29  ;;  %v2654_v29 = vcombine.low %v55_v12, %v59_v14  ;;  %v3285_v12 = vld [vmem:[%s4600_s1 + $0x1f8] sm:$0xff]   ;;  %v2686_v14 = vcombine.low %v87_v61, %v91_v62 }
  0x2f   :  { %1781 = vmatpush1.bf16.msra.mxu0 %v3245_v30  ;;  %1428 = vmatprep.subr.bf16.mxu1 %v3288_v0  ;;  %v2659_v30 = vcombine.high %v61_v22, %v65_v23 }
  0x30   :  { %1782 = vmatprep.subr.bf16.mxu0 %v3288_v0 }
  0x32   :  { %1429 = vmatpush1.bf16.msra.mxu1 %v3246_v31  ;;  %v2663_v31 = vcombine.high %v63_v25, %v67_v26  ;;  %v113_v25 = vld [vmem:[%s4601_s0 + $0x2e0] sm:$0xff]  ;;  %v111_v26 = vld [vmem:[%s4601_s0 + $0x2d0] sm:$0xff] }
  0x33   :  { %1783 = vmatpush1.bf16.msra.mxu0 %v3247_v32  ;;  %1430 = vmatprep.subr.bf16.mxu1 %v3288_v0  ;;  %v3270_v32 = vld [vmem:[%s4600_s1 + $0xc0] sm:$0xff]  }
  0x34   :  { %1784 = vmatprep.subr.bf16.mxu0 %v3288_v0 }
  0x36   :  { %1431 = vmatpush1.bf16.msra.mxu1 %v3248_v33  ;;  %v3271_v33 = vld [vmem:[%s4600_s1 + $0x1c0] sm:$0xff]  }
  0x37   :  { %1785 = vmatpush1.bf16.msra.mxu0 %v3249_v34  ;;  %1432 = vmatprep.subr.bf16.mxu1 %v3288_v0  ;;  %v69_v34 = vld [vmem:[%s4601_s0 + $0x180] sm:$0xff] }
  0x38   :  { %1786 = vmatprep.subr.bf16.mxu0 %v3288_v0 }
  0x3a   :  { %1433 = vmatpush1.bf16.msra.mxu1 %v3250_v35  ;;  %v73_v35 = vld [vmem:[%s4601_s0 + $0x1a0] sm:$0xff] }
  0x3b   :  { %1787 = vmatpush1.bf16.msra.mxu0 %v3251_v36  ;;  %1434 = vmatprep.subr.bf16.mxu1 %v3288_v0  ;;  %v3272_v36 = vld [vmem:[%s4600_s1 + $0xc8] sm:$0xff]   ;;  %v2666_v52 = vcombine.low %v69_v34, %v73_v35 }
  0x3c   :  { %1788 = vmatprep.subr.bf16.mxu0 %v3288_v0 }
  0x3e   :  { %1435 = vmatpush1.bf16.msra.mxu1 %v3252_v37  ;;  %v71_v37 = vld [vmem:[%s4601_s0 + $0x190] sm:$0xff] }
  0x3f   :  { %1789 = vmatpush1.bf16.msra.mxu0 %v3253_v38  ;;  %1581 = vmatprep.subr.bf16.mxu1 %v3288_v0  ;;  %v75_v38 = vld [vmem:[%s4601_s0 + $0x1b0] sm:$0xff] }
  0x40   :  { %1935 = vmatprep.subr.bf16.mxu0 %v3288_v0  ;;  %v2671_v43 = vcombine.high %v71_v37, %v75_v38  ;;  %v2670_v53 = vcombine.low %v71_v37, %v75_v38 }
  0x41   :  { %1437 = vmatmul.mubr.bf16.vlgmr.msra.gmra.mrb[0].mxu1 %v2618_v42  ;;  %v2667_v42 = vcombine.high %v69_v34, %v73_v35  ;;  %v119_v34 = vld [vmem:[%s4601_s0 + $0x310] sm:$0xff] }
  0x42   :  { %1791 = vmatmul.mubr.bf16.vlgmr.msra.gmra.mrb[0].mxu0 %v2622_v44  ;;  %1582 = vmatpush1.bf16.msra.mxu1 %v3254_v45  ;;  %v3274_v44 = vld [vmem:[%s4600_s1 + $0xd0] sm:$0xff]  }
  0x43   :  { %1936 = vmatpush1.bf16.msra.mxu0 %v3255_v46  ;;  %1444 = vmatprep.mubr.bf16.mxu1 %v2627_v47  ;;  %v3275_v45 = vld [vmem:[%s4600_s1 + $0x1d0] sm:$0xff]   ;;  %v77_v46 = vld [vmem:[%s4601_s0 + $0x1c0] sm:$0xff] }
  0x44   :  { %1798 = vmatprep.mubr.bf16.mxu0 %v2631_v48  ;;  %1583 = vmatprep.subr.bf16.mxu1 %v3288_v0  ;;  %v81_v47 = vld [vmem:[%s4601_s0 + $0x1e0] sm:$0xff]  ;;  %v3276_v48 = vld [vmem:[%s4600_s1 + $0xd8] sm:$0xff]   ;;  %v123_v35 = vld [vmem:[%s4601_s0 + $0x330] sm:$0xff] }
  0x45   :  { %1937 = vmatprep.subr.bf16.mxu0 %v3288_v0  ;;  %v2675_v54 = vcombine.high %v77_v46, %v81_v47  ;;  %v2674_v1 = vcombine.low %v77_v46, %v81_v47 }
  0x46   :  { %1584 = vmatpush1.bf16.msra.mxu1 %v3256_v49  ;;  %v79_v49 = vld [vmem:[%s4601_s0 + $0x1d0] sm:$0xff] }
  0x47   :  { %1938 = vmatpush1.bf16.msra.mxu0 %v3257_v50  ;;  %1585 = vmatprep.subr.bf16.mxu1 %v3288_v0  ;;  %v83_v50 = vld [vmem:[%s4601_s0 + $0x1f0] sm:$0xff] }
  0x48   :  { %1939 = vmatprep.subr.bf16.mxu0 %v3288_v0  ;;  %v2678_v2 = vcombine.low %v79_v49, %v83_v50 }
  0x49   :  { %1445 = vmatmul.mubr.bf16.gmra.mrb[4].mxu1 %v2626_v55  ;;  %v2679_v55 = vcombine.high %v79_v49, %v83_v50  ;;  %v137_v49 = vld [vmem:[%s4601_s0 + $0x3a0] sm:$0xff]  ;;  %v135_v50 = vld [vmem:[%s4601_s0 + $0x390] sm:$0xff] }
  0x4a   :  { %1799 = vmatmul.mubr.bf16.gmra.mrb[4].mxu0 %v2630_v56  ;;  %1452 = vmatprep.mubr.bf16.mxu1 %v2635_v57  ;;  %v3278_v56 = vld [vmem:[%s4600_s1 + $0xe0] sm:$0xff]  }
  0x4b   :  { %1806 = vmatprep.mubr.bf16.mxu0 %v2639_v58  ;;  %1586 = vmatpush1.bf16.msra.mxu1 %v3258_v59  ;;  %v3279_v57 = vld [vmem:[%s4600_s1 + $0x1e0] sm:$0xff]  }
  0x4c   :  { %1940 = vmatpush1.bf16.msra.mxu0 %v3259_v60  ;;  %1587 = vmatprep.subr.bf16.mxu1 %v3288_v0  ;;  %v85_v58 = vld [vmem:[%s4601_s0 + $0x200] sm:$0xff]  ;;  %v3280_v60 = vld [vmem:[%s4600_s1 + $0xe8] sm:$0xff]  }
  0x4d   :  { %1941 = vmatprep.subr.bf16.mxu0 %v3288_v0  ;;  %v89_v59 = vld [vmem:[%s4601_s0 + $0x220] sm:$0xff] }
  0x4f   :  { %1588 = vmatpush1.bf16.msra.mxu1 %v3260_v63  ;;  %v3281_v63 = vld [vmem:[%s4600_s1 + $0x1e8] sm:$0xff]  }
  0x50   :  { %1942 = vmatpush1.bf16.msra.mxu0 %v3261_v3  ;;  %1589 = vmatprep.subr.bf16.mxu1 %v3288_v0  ;;  %v2683_v3 = vcombine.high %v85_v58, %v89_v59 }
  0x51   :  { %1453 = vmatmul.mubr.bf16.gmra.mrb[8].mxu1 %v2634_v4  ;;  %1943 = vmatprep.subr.bf16.mxu0 %v3288_v0  ;;  %v2687_v4 = vcombine.high %v87_v61, %v91_v62 }
  0x52   :  { %1807 = vmatmul.mubr.bf16.gmra.mrb[8].mxu0 %v2638_v5  ;;  %1460 = vmatprep.mubr.bf16.mxu1 %v2643_v6  ;;  %v3282_v5 = vld [vmem:[%s4600_s1 + $0xf0] sm:$0xff]  }
  0x53   :  { %1814 = vmatprep.mubr.bf16.mxu0 %v2647_v7  ;;  %1590 = vmatpush1.bf16.msra.mxu1 %v3262_v8  ;;  %v3283_v6 = vld [vmem:[%s4600_s1 + $0x1f0] sm:$0xff]   ;;  %v93_v7 = vld [vmem:[%s4601_s0 + $0x240] sm:$0xff] }
  0x54   :  { %1944 = vmatpush1.bf16.msra.mxu0 %v3263_v9  ;;  %1591 = vmatprep.subr.bf16.mxu1 %v3288_v0  ;;  %v97_v8 = vld [vmem:[%s4601_s0 + $0x260] sm:$0xff]  ;;  %v3284_v9 = vld [vmem:[%s4600_s1 + $0xf8] sm:$0xff]  }
  0x55   :  { %1945 = vmatprep.subr.bf16.mxu0 %v3288_v0 }
  0x57   :  { %1592 = vmatpush1.bf16.msra.mxu1 %v3264_v13  ;;  %v2682_v13 = vcombine.low %v85_v58, %v89_v59  ;;  %v143_v58 = vld [vmem:[%s4601_s0 + $0x3d0] sm:$0xff] }
  0x58   :  { %1946 = vmatpush1.bf16.msra.mxu0 %v3265_v15  ;;  %1593 = vmatprep.subr.bf16.mxu1 %v3288_v0  ;;  %v2691_v15 = vcombine.high %v93_v7, %v97_v8  ;;  %v147_v59 = vld [vmem:[%s4601_s0 + $0x3f0] sm:$0xff] }
  0x59   :  { %1461 = vmatmul.mubr.bf16.gmra.mrb[12].mxu1 %v2642_v16  ;;  %1947 = vmatprep.subr.bf16.mxu0 %v3288_v0  ;;  %v2695_v16 = vcombine.high %v95_v10, %v99_v11 }
  0x5a   :  { %1815 = vmatmul.mubr.bf16.gmra.mrb[12].mxu0 %v2646_v17  ;;  %1468 = vmatprep.mubr.bf16.mxu1 %v2651_v18  ;;  %v101_v17 = vld [vmem:[%s4601_s0 + $0x280] sm:$0xff] }
  0x5b   :  { %1822 = vmatprep.mubr.bf16.mxu0 %v2655_v19  ;;  %1594 = vmatpush1.bf16.msra.mxu1 %v3266_v20  ;;  %v105_v18 = vld [vmem:[%s4601_s0 + $0x2a0] sm:$0xff]  ;;  %v107_v19 = vld [vmem:[%s4601_s0 + $0x2b0] sm:$0xff]  ;;  %v2690_v20 = vcombine.low %v93_v7, %v97_v8 }
  0x5c   :  { %1948 = vmatpush1.bf16.msra.mxu0 %v3267_v21  ;;  %1595 = vmatprep.subr.bf16.mxu1 %v3288_v0  ;;  %v2694_v21 = vcombine.low %v95_v10, %v99_v11  ;;  %v2699_v22 = vcombine.high %v101_v17, %v105_v18  ;;  %v161_v10 = vld [vmem:[%s4601_s0 + $0x460] sm:$0xff]  ;;  %v159_v11 = vld [vmem:[%s4601_s0 + $0x450] sm:$0xff] }
  0x5d   :  { %1949 = vmatprep.subr.bf16.mxu0 %v3288_v0 }
  0x5f   :  { %1596 = vmatpush1.bf16.msra.mxu1 %v3268_v24  ;;  %v109_v24 = vld [vmem:[%s4601_s0 + $0x2c0] sm:$0xff] }
  0x60   :  { %1950 = vmatpush1.bf16.msra.mxu0 %v3269_v27  ;;  %1597 = vmatprep.subr.bf16.mxu1 %v3288_v0  ;;  %v115_v27 = vld [vmem:[%s4601_s0 + $0x2f0] sm:$0xff] }
  0x61   :  { %1469 = vmatmul.mubr.bf16.gmra.mrb[16].mxu1 %v2650_v28  ;;  %1951 = vmatprep.subr.bf16.mxu0 %v3288_v0  ;;  %v2698_v28 = vcombine.low %v101_v17, %v105_v18  ;;  %v2710_v37 = vcombine.low %v111_v26, %v115_v27  ;;  %v22_v17 = vld [vmem:[%s4601_s0 + $0x8] sm:$0xff] }
  0x62   :  { %1823 = vmatmul.mubr.bf16.gmra.mrb[16].mxu0 %v2654_v29  ;;  %1476 = vmatprep.mubr.bf16.mxu1 %v2659_v30  ;;  %v2707_v30 = vcombine.high %v109_v24, %v113_v25  ;;  %v26_v18 = vld [vmem:[%s4601_s0 + $0x28] sm:$0xff] }
  0x63   :  { %1830 = vmatprep.mubr.bf16.mxu0 %v2663_v31  ;;  %1598 = vmatpush1.bf16.msra.mxu1 %v3270_v32  ;;  %v2711_v31 = vcombine.high %v111_v26, %v115_v27  ;;  %v117_v32 = vld [vmem:[%s4601_s0 + $0x300] sm:$0xff]  ;;  %v32_v26 = vld [vmem:[%s4601_s0 + $0x58] sm:$0xff] }
  0x64   :  { %1952 = vmatpush1.bf16.msra.mxu0 %v3271_v33  ;;  %1599 = vmatprep.subr.bf16.mxu1 %v3288_v0  ;;  %v121_v33 = vld [vmem:[%s4601_s0 + $0x320] sm:$0xff]  ;;  %v36_v27 = vld [vmem:[%s4601_s0 + $0x78] sm:$0xff] }
  0x65   :  { %1953 = vmatprep.subr.bf16.mxu0 %v3288_v0  ;;  %v2715_v38 = vcombine.high %v117_v32, %v121_v33 }
  0x67   :  { %1600 = vmatpush1.bf16.msra.mxu1 %v3272_v36  ;;  %v2706_v36 = vcombine.low %v109_v24, %v113_v25  ;;  %v30_v24 = vld [vmem:[%s4601_s0 + $0x48] sm:$0xff] }
  0x68   :  { %1954 = vmatpush1.bf16.msra.mxu0 %v3273_v39  ;;  %1601 = vmatprep.subr.bf16.mxu1 %v3288_v0  ;;  %v2719_v39 = vcombine.high %v119_v34, %v123_v35  ;;  %v34_v25 = vld [vmem:[%s4601_s0 + $0x68] sm:$0xff] }
  0x69   :  { %1477 = vmatmul.mubr.bf16.gmra.mrb[20].mxu1 %v2658_v40  ;;  %1955 = vmatprep.subr.bf16.mxu0 %v3288_v0  ;;  %v125_v40 = vld [vmem:[%s4601_s0 + $0x340] sm:$0xff] }
  0x6a   :  { %1831 = vmatmul.mubr.bf16.gmra.mrb[20].mxu0 %v2662_v41  ;;  %1484 = vmatprep.mubr.bf16.mxu1 %v2667_v42  ;;  %v129_v41 = vld [vmem:[%s4601_s0 + $0x360] sm:$0xff]  ;;  %v127_v42 = vld [vmem:[%s4601_s0 + $0x350] sm:$0xff] }
  0x6b   :  { %1838 = vmatprep.mubr.bf16.mxu0 %v2671_v43  ;;  %1602 = vmatpush1.bf16.msra.mxu1 %v3274_v44  ;;  %v131_v43 = vld [vmem:[%s4601_s0 + $0x370] sm:$0xff]  ;;  %v2714_v44 = vcombine.low %v117_v32, %v121_v33  ;;  %v2723_v46 = vcombine.high %v125_v40, %v129_v41  ;;  %v38_v32 = vld [vmem:[%s4601_s0 + $0x88] sm:$0xff] }
  0x6c   :  { %1956 = vmatpush1.bf16.msra.mxu0 %v3275_v45  ;;  %1603 = vmatprep.subr.bf16.mxu1 %v3288_v0  ;;  %v2718_v45 = vcombine.low %v119_v34, %v123_v35  ;;  %v2727_v47 = vcombine.high %v127_v42, %v131_v43  ;;  %v42_v33 = vld [vmem:[%s4601_s0 + $0xa8] sm:$0xff]  ;;  %v40_v34 = vld [vmem:[%s4601_s0 + $0x98] sm:$0xff] }
  0x6d   :  { %1957 = vmatprep.subr.bf16.mxu0 %v3288_v0  ;;  %v44_v35 = vld [vmem:[%s4601_s0 + $0xb8] sm:$0xff] }
  0x6f   :  { %1604 = vmatpush1.bf16.msra.mxu1 %v3276_v48  ;;  %v133_v48 = vld [vmem:[%s4601_s0 + $0x380] sm:$0xff] }
  0x70   :  { %1958 = vmatpush1.bf16.msra.mxu0 %v3277_v51  ;;  %1605 = vmatprep.subr.bf16.mxu1 %v3288_v0  ;;  %v139_v51 = vld [vmem:[%s4601_s0 + $0x3b0] sm:$0xff] }
  0x71   :  { %1485 = vmatmul.mubr.bf16.gmra.mrb[24].mxu1 %v2666_v52  ;;  %1959 = vmatprep.subr.bf16.mxu0 %v3288_v0  ;;  %v2722_v52 = vcombine.low %v125_v40, %v129_v41  ;;  %v2734_v61 = vcombine.low %v135_v50, %v139_v51  ;;  %v46_v40 = vld [vmem:[%s4601_s0 + $0xc8] sm:$0xff] }
  0x72   :  { %1839 = vmatmul.mubr.bf16.gmra.mrb[24].mxu0 %v2670_v53  ;;  %1492 = vmatprep.mubr.bf16.mxu1 %v2675_v54  ;;  %v2726_v53 = vcombine.low %v127_v42, %v131_v43  ;;  %v2731_v54 = vcombine.high %v133_v48, %v137_v49  ;;  %v50_v41 = vld [vmem:[%s4601_s0 + $0xe8] sm:$0xff]  ;;  %v48_v42 = vld [vmem:[%s4601_s0 + $0xd8] sm:$0xff] }
  0x73   :  { %1846 = vmatprep.mubr.bf16.mxu0 %v2679_v55  ;;  %1606 = vmatpush1.bf16.msra.mxu1 %v3278_v56  ;;  %v2735_v55 = vcombine.high %v135_v50, %v139_v51  ;;  %v141_v56 = vld [vmem:[%s4601_s0 + $0x3c0] sm:$0xff]  ;;  %v52_v43 = vld [vmem:[%s4601_s0 + $0xf8] sm:$0xff] }
  0x74   :  { %1960 = vmatpush1.bf16.msra.mxu0 %v3279_v57  ;;  %1607 = vmatprep.subr.bf16.mxu1 %v3288_v0  ;;  %v145_v57 = vld [vmem:[%s4601_s0 + $0x3e0] sm:$0xff]  ;;  %v56_v50 = vld [vmem:[%s4601_s0 + $0x118] sm:$0xff] }
  0x75   :  { %1961 = vmatprep.subr.bf16.mxu0 %v3288_v0  ;;  %v2739_v62 = vcombine.high %v141_v56, %v145_v57  ;;  %v60_v51 = vld [vmem:[%s4601_s0 + $0x138] sm:$0xff] }
  0x77   :  { %1608 = vmatpush1.bf16.msra.mxu1 %v3280_v60  ;;  %v2730_v60 = vcombine.low %v133_v48, %v137_v49  ;;  %v54_v48 = vld [vmem:[%s4601_s0 + $0x108] sm:$0xff] }
  0x78   :  { %1962 = vmatpush1.bf16.msra.mxu0 %v3281_v63  ;;  %1609 = vmatprep.subr.bf16.mxu1 %v3288_v0  ;;  %v2743_v63 = vcombine.high %v143_v58, %v147_v59  ;;  %v58_v49 = vld [vmem:[%s4601_s0 + $0x128] sm:$0xff] }
  0x79   :  { %1493 = vmatmul.mubr.bf16.gmra.mrb[28].mxu1 %v2674_v1  ;;  %1963 = vmatprep.subr.bf16.mxu0 %v3288_v0  ;;  %v149_v1 = vld [vmem:[%s4601_s0 + $0x400] sm:$0xff] }
  0x7a   :  { %1847 = vmatmul.mubr.bf16.gmra.mrb[28].mxu0 %v2678_v2  ;;  %1500 = vmatprep.mubr.bf16.mxu1 %v2683_v3  ;;  %v153_v2 = vld [vmem:[%s4601_s0 + $0x420] sm:$0xff]  ;;  %v151_v3 = vld [vmem:[%s4601_s0 + $0x410] sm:$0xff] }
  0x7b   :  { %1854 = vmatprep.mubr.bf16.mxu0 %v2687_v4  ;;  %1610 = vmatpush1.bf16.msra.mxu1 %v3282_v5  ;;  %v155_v4 = vld [vmem:[%s4601_s0 + $0x430] sm:$0xff]  ;;  %v2738_v5 = vcombine.low %v141_v56, %v145_v57  ;;  %v2747_v7 = vcombine.high %v149_v1, %v153_v2  ;;  %v62_v56 = vld [vmem:[%s4601_s0 + $0x148] sm:$0xff] }
  0x7c   :  { %1964 = vmatpush1.bf16.msra.mxu0 %v3283_v6  ;;  %1611 = vmatprep.subr.bf16.mxu1 %v3288_v0  ;;  %v2742_v6 = vcombine.low %v143_v58, %v147_v59  ;;  %v2751_v8 = vcombine.high %v151_v3, %v155_v4  ;;  %v66_v57 = vld [vmem:[%s4601_s0 + $0x168] sm:$0xff]  ;;  %v64_v58 = vld [vmem:[%s4601_s0 + $0x158] sm:$0xff] }
  0x7d   :  { %1965 = vmatprep.subr.bf16.mxu0 %v3288_v0  ;;  %v103_v0 = vld [vmem:[%s4601_s0 + $0x290] sm:$0xff]  ;;  %v68_v59 = vld [vmem:[%s4601_s0 + $0x178] sm:$0xff] }
  0x7e   :  { %v2703_v23 = vcombine.high %v103_v0, %v107_v19  ;;  %v2702_v29 = vcombine.low %v103_v0, %v107_v19  ;;  %v24_v0 = vld [vmem:[%s4601_s0 + $0x18] sm:$0xff] }
  0x7f   :  { %1612 = vmatpush1.bf16.msra.mxu1 %v3284_v9  ;;  %v157_v9 = vld [vmem:[%s4601_s0 + $0x440] sm:$0xff]  ;;  %v28_v19 = vld [vmem:[%s4601_s0 + $0x38] sm:$0xff] }
  0x80   :  { %1966 = vmatpush1.bf16.msra.mxu0 %v3285_v12  ;;  %v163_v12 = vld [vmem:[%s4601_s0 + $0x470] sm:$0xff] }
  0x81   :  { %1501 = vmatmul.mubr.bf16.gmra.mrb[32].mxu1 %v2682_v13  ;;  %v2746_v13 = vcombine.low %v149_v1, %v153_v2  ;;  %v70_v1 = vld [vmem:[%s4601_s0 + $0x188] sm:$0xff] }
  0x82   :  { %1855 = vmatmul.mubr.bf16.gmra.mrb[32].mxu0 %v2686_v14  ;;  %1508 = vmatprep.mubr.bf16.mxu1 %v2691_v15  ;;  %v2750_v14 = vcombine.low %v151_v3, %v155_v4  ;;  %v2755_v15 = vcombine.high %v157_v9, %v161_v10  ;;  %v74_v2 = vld [vmem:[%s4601_s0 + $0x1a8] sm:$0xff]  ;;  %v72_v3 = vld [vmem:[%s4601_s0 + $0x198] sm:$0xff] }
  0x83   :  { %1862 = vmatprep.mubr.bf16.mxu0 %v2695_v16  ;;  %v2759_v16 = vcombine.high %v159_v11, %v163_v12  ;;  %v76_v4 = vld [vmem:[%s4601_s0 + $0x1b8] sm:$0xff] }
  0x89   :  { %1509 = vmatmul.mubr.bf16.gmra.mrb[36].mxu1 %v2690_v20  ;;  %v2754_v20 = vcombine.low %v157_v9, %v161_v10  ;;  %v78_v9 = vld [vmem:[%s4601_s0 + $0x1c8] sm:$0xff] }
  0x8a   :  { %1863 = vmatmul.mubr.bf16.gmra.mrb[36].mxu0 %v2694_v21  ;;  %1516 = vmatprep.mubr.bf16.mxu1 %v2699_v22  ;;  %v2758_v21 = vcombine.low %v159_v11, %v163_v12  ;;  %v2621_v22 = vcombine.high %v22_v17, %v26_v18  ;;  %v82_v10 = vld [vmem:[%s4601_s0 + $0x1e8] sm:$0xff]  ;;  %v80_v11 = vld [vmem:[%s4601_s0 + $0x1d8] sm:$0xff] }
  0x8b   :  { %1870 = vmatprep.mubr.bf16.mxu0 %v2703_v23  ;;  %v2625_v23 = vcombine.high %v24_v0, %v28_v19  ;;  %v84_v12 = vld [vmem:[%s4601_s0 + $0x1f8] sm:$0xff] }
  0x91   :  { %1517 = vmatmul.mubr.bf16.gmra.mrb[40].mxu1 %v2698_v28  ;;  %v2620_v28 = vcombine.low %v22_v17, %v26_v18  ;;  %v86_v17 = vld [vmem:[%s4601_s0 + $0x208] sm:$0xff] }
  0x92   :  { %1871 = vmatmul.mubr.bf16.gmra.mrb[40].mxu0 %v2702_v29  ;;  %1524 = vmatprep.mubr.bf16.mxu1 %v2707_v30  ;;  %v2624_v29 = vcombine.low %v24_v0, %v28_v19  ;;  %v2629_v30 = vcombine.high %v30_v24, %v34_v25  ;;  %v90_v18 = vld [vmem:[%s4601_s0 + $0x228] sm:$0xff]  ;;  %v88_v0 = vld [vmem:[%s4601_s0 + $0x218] sm:$0xff] }
  0x93   :  { %1878 = vmatprep.mubr.bf16.mxu0 %v2711_v31  ;;  %v2633_v31 = vcombine.high %v32_v26, %v36_v27  ;;  %v92_v19 = vld [vmem:[%s4601_s0 + $0x238] sm:$0xff] }
  0x99   :  { %1525 = vmatmul.mubr.bf16.gmra.mrb[44].mxu1 %v2706_v36  ;;  %v2628_v36 = vcombine.low %v30_v24, %v34_v25  ;;  %v94_v24 = vld [vmem:[%s4601_s0 + $0x248] sm:$0xff] }
  0x9a   :  { %1879 = vmatmul.mubr.bf16.gmra.mrb[44].mxu0 %v2710_v37  ;;  %1532 = vmatprep.mubr.bf16.mxu1 %v2715_v38  ;;  %v2632_v37 = vcombine.low %v32_v26, %v36_v27  ;;  %v2637_v38 = vcombine.high %v38_v32, %v42_v33  ;;  %v98_v25 = vld [vmem:[%s4601_s0 + $0x268] sm:$0xff]  ;;  %v96_v26 = vld [vmem:[%s4601_s0 + $0x258] sm:$0xff] }
  0x9b   :  { %1886 = vmatprep.mubr.bf16.mxu0 %v2719_v39  ;;  %v2641_v39 = vcombine.high %v40_v34, %v44_v35  ;;  %v100_v27 = vld [vmem:[%s4601_s0 + $0x278] sm:$0xff] }
  0xa1   :  { %1533 = vmatmul.mubr.bf16.gmra.mrb[48].mxu1 %v2714_v44  ;;  %v2636_v44 = vcombine.low %v38_v32, %v42_v33  ;;  %v102_v32 = vld [vmem:[%s4601_s0 + $0x288] sm:$0xff] }
  0xa2   :  { %1887 = vmatmul.mubr.bf16.gmra.mrb[48].mxu0 %v2718_v45  ;;  %1540 = vmatprep.mubr.bf16.mxu1 %v2723_v46  ;;  %v2640_v45 = vcombine.low %v40_v34, %v44_v35  ;;  %v2645_v46 = vcombine.high %v46_v40, %v50_v41  ;;  %v106_v33 = vld [vmem:[%s4601_s0 + $0x2a8] sm:$0xff]  ;;  %v104_v34 = vld [vmem:[%s4601_s0 + $0x298] sm:$0xff] }
  0xa3   :  { %1894 = vmatprep.mubr.bf16.mxu0 %v2727_v47  ;;  %v2649_v47 = vcombine.high %v48_v42, %v52_v43  ;;  %v108_v35 = vld [vmem:[%s4601_s0 + $0x2b8] sm:$0xff] }
  0xa9   :  { %1541 = vmatmul.mubr.bf16.gmra.mrb[52].mxu1 %v2722_v52  ;;  %v2644_v52 = vcombine.low %v46_v40, %v50_v41  ;;  %v110_v40 = vld [vmem:[%s4601_s0 + $0x2c8] sm:$0xff] }
  0xaa   :  { %1895 = vmatmul.mubr.bf16.gmra.mrb[52].mxu0 %v2726_v53  ;;  %1548 = vmatprep.mubr.bf16.mxu1 %v2731_v54  ;;  %v2648_v53 = vcombine.low %v48_v42, %v52_v43  ;;  %v2653_v54 = vcombine.high %v54_v48, %v58_v49  ;;  %v114_v41 = vld [vmem:[%s4601_s0 + $0x2e8] sm:$0xff]  ;;  %v112_v42 = vld [vmem:[%s4601_s0 + $0x2d8] sm:$0xff] }
  0xab   :  { %1902 = vmatprep.mubr.bf16.mxu0 %v2735_v55  ;;  %v2657_v55 = vcombine.high %v56_v50, %v60_v51  ;;  %v116_v43 = vld [vmem:[%s4601_s0 + $0x2f8] sm:$0xff] }
  0xb1   :  { %1549 = vmatmul.mubr.bf16.gmra.mrb[56].mxu1 %v2730_v60  ;;  %v2652_v60 = vcombine.low %v54_v48, %v58_v49  ;;  %v118_v48 = vld [vmem:[%s4601_s0 + $0x308] sm:$0xff] }
  0xb2   :  { %1903 = vmatmul.mubr.bf16.gmra.mrb[56].mxu0 %v2734_v61  ;;  %1556 = vmatprep.mubr.bf16.mxu1 %v2739_v62  ;;  %v2656_v61 = vcombine.low %v56_v50, %v60_v51  ;;  %v2661_v62 = vcombine.high %v62_v56, %v66_v57  ;;  %v122_v49 = vld [vmem:[%s4601_s0 + $0x328] sm:$0xff]  ;;  %v120_v50 = vld [vmem:[%s4601_s0 + $0x318] sm:$0xff] }
  0xb3   :  { %1910 = vmatprep.mubr.bf16.mxu0 %v2743_v63  ;;  %v2665_v63 = vcombine.high %v64_v58, %v68_v59  ;;  %v124_v51 = vld [vmem:[%s4601_s0 + $0x338] sm:$0xff] }
  0xb9   :  { %1557 = vmatmul.mubr.bf16.gmra.mrb[60].mxu1 %v2738_v5  ;;  %v2660_v5 = vcombine.low %v62_v56, %v66_v57  ;;  %v126_v56 = vld [vmem:[%s4601_s0 + $0x348] sm:$0xff] }
  0xba   :  { %1911 = vmatmul.mubr.bf16.gmra.mrb[60].mxu0 %v2742_v6  ;;  %1564 = vmatprep.mubr.bf16.mxu1 %v2747_v7  ;;  %v2664_v6 = vcombine.low %v64_v58, %v68_v59  ;;  %v2669_v7 = vcombine.high %v70_v1, %v74_v2  ;;  %v130_v57 = vld [vmem:[%s4601_s0 + $0x368] sm:$0xff]  ;;  %v128_v58 = vld [vmem:[%s4601_s0 + $0x358] sm:$0xff] }
  0xbb   :  { %1918 = vmatprep.mubr.bf16.mxu0 %v2751_v8  ;;  %v2673_v8 = vcombine.high %v72_v3, %v76_v4  ;;  %v132_v59 = vld [vmem:[%s4601_s0 + $0x378] sm:$0xff] }
  0xc1   :  { %1565 = vmatmul.mubr.bf16.gmra.mrb[64].mxu1 %v2746_v13  ;;  %v2668_v13 = vcombine.low %v70_v1, %v74_v2  ;;  %v134_v1 = vld [vmem:[%s4601_s0 + $0x388] sm:$0xff] }
  0xc2   :  { %1919 = vmatmul.mubr.bf16.gmra.mrb[64].mxu0 %v2750_v14  ;;  %1572 = vmatprep.mubr.bf16.mxu1 %v2755_v15  ;;  %v2672_v14 = vcombine.low %v72_v3, %v76_v4  ;;  %v2677_v15 = vcombine.high %v78_v9, %v82_v10  ;;  %v138_v2 = vld [vmem:[%s4601_s0 + $0x3a8] sm:$0xff]  ;;  %v136_v3 = vld [vmem:[%s4601_s0 + $0x398] sm:$0xff] }
  0xc3   :  { %1926 = vmatprep.mubr.bf16.mxu0 %v2759_v16  ;;  %v2681_v16 = vcombine.high %v80_v11, %v84_v12  ;;  %v140_v4 = vld [vmem:[%s4601_s0 + $0x3b8] sm:$0xff] }
  0xc9   :  { %1573 = vmatmul.mubr.bf16.gmra.mrb[68].mxu1 %v2754_v20  ;;  %v2676_v20 = vcombine.low %v78_v9, %v82_v10  ;;  %v142_v9 = vld [vmem:[%s4601_s0 + $0x3c8] sm:$0xff] }
  0xca   :  { %1927 = vmatmul.mubr.bf16.gmra.mrb[68].mxu0 %v2758_v21  ;;  %1613 = vmatprep.mubr.bf16.mxu1 %v2621_v22  ;;  %v2680_v21 = vcombine.low %v80_v11, %v84_v12  ;;  %v2685_v22 = vcombine.high %v86_v17, %v90_v18  ;;  %v146_v10 = vld [vmem:[%s4601_s0 + $0x3e8] sm:$0xff]  ;;  %v144_v11 = vld [vmem:[%s4601_s0 + $0x3d8] sm:$0xff] }
  0xcb   :  { %1967 = vmatprep.mubr.bf16.mxu0 %v2625_v23  ;;  %v2689_v23 = vcombine.high %v88_v0, %v92_v19  ;;  %v148_v12 = vld [vmem:[%s4601_s0 + $0x3f8] sm:$0xff] }
  0xd1   :  { %1614 = vmatmul.mubr.bf16.vlgmr.msra.gmra.mrb[0].mxu1 %v2620_v28  ;;  %v2684_v28 = vcombine.low %v86_v17, %v90_v18  ;;  %v150_v17 = vld [vmem:[%s4601_s0 + $0x408] sm:$0xff] }
  0xd2   :  { %1968 = vmatmul.mubr.bf16.vlgmr.msra.gmra.mrb[0].mxu0 %v2624_v29  ;;  %1621 = vmatprep.mubr.bf16.mxu1 %v2629_v30  ;;  %v2688_v29 = vcombine.low %v88_v0, %v92_v19  ;;  %v2693_v30 = vcombine.high %v94_v24, %v98_v25  ;;  %v154_v18 = vld [vmem:[%s4601_s0 + $0x428] sm:$0xff]  ;;  %v152_v0 = vld [vmem:[%s4601_s0 + $0x418] sm:$0xff] }
  0xd3   :  { %1975 = vmatprep.mubr.bf16.mxu0 %v2633_v31  ;;  %v2697_v31 = vcombine.high %v96_v26, %v100_v27  ;;  %v156_v19 = vld [vmem:[%s4601_s0 + $0x438] sm:$0xff] }
  0xd9   :  { %1622 = vmatmul.mubr.bf16.gmra.mrb[4].mxu1 %v2628_v36  ;;  %v2692_v36 = vcombine.low %v94_v24, %v98_v25  ;;  %v158_v24 = vld [vmem:[%s4601_s0 + $0x448] sm:$0xff] }
  0xda   :  { %1976 = vmatmul.mubr.bf16.gmra.mrb[4].mxu0 %v2632_v37  ;;  %1629 = vmatprep.mubr.bf16.mxu1 %v2637_v38  ;;  %v2696_v37 = vcombine.low %v96_v26, %v100_v27  ;;  %v2701_v38 = vcombine.high %v102_v32, %v106_v33  ;;  %v162_v25 = vld [vmem:[%s4601_s0 + $0x468] sm:$0xff]  ;;  %v160_v26 = vld [vmem:[%s4601_s0 + $0x458] sm:$0xff] }
  0xdb   :  { %1983 = vmatprep.mubr.bf16.mxu0 %v2641_v39  ;;  %v2705_v39 = vcombine.high %v104_v34, %v108_v35  ;;  %v164_v27 = vld [vmem:[%s4601_s0 + $0x478] sm:$0xff] }
  0xe1   :  { %1630 = vmatmul.mubr.bf16.gmra.mrb[8].mxu1 %v2636_v44  ;;  %v2700_v44 = vcombine.low %v102_v32, %v106_v33  ;;  %v2756_v32 = vcombine.low %v158_v24, %v162_v25  ;;  %v2760_v33 = vcombine.low %v160_v26, %v164_v27 }
  0xe2   :  { %1984 = vmatmul.mubr.bf16.gmra.mrb[8].mxu0 %v2640_v45  ;;  %1637 = vmatprep.mubr.bf16.mxu1 %v2645_v46  ;;  %v2704_v45 = vcombine.low %v104_v34, %v108_v35  ;;  %v2709_v46 = vcombine.high %v110_v40, %v114_v41  ;;  %v4022_v34 = vld [vmem:[%s4602_s2] ss:$0 sm:$0xff] }
  0xe3   :  { %1991 = vmatprep.mubr.bf16.mxu0 %v2649_v47  ;;  %v2713_v47 = vcombine.high %v112_v42, %v116_v43 }
  0xe9   :  { %1638 = vmatmul.mubr.bf16.gmra.mrb[12].mxu1 %v2644_v52  ;;  %v2708_v52 = vcombine.low %v110_v40, %v114_v41 }
  0xea   :  { %1992 = vmatmul.mubr.bf16.gmra.mrb[12].mxu0 %v2648_v53  ;;  %1645 = vmatprep.mubr.bf16.mxu1 %v2653_v54  ;;  %v2712_v53 = vcombine.low %v112_v42, %v116_v43  ;;  %v2717_v54 = vcombine.high %v118_v48, %v122_v49 }
  0xeb   :  { %1999 = vmatprep.mubr.bf16.mxu0 %v2657_v55  ;;  %v2721_v55 = vcombine.high %v120_v50, %v124_v51 }
  0xf1   :  { %1646 = vmatmul.mubr.bf16.gmra.mrb[16].mxu1 %v2652_v60  ;;  %v2716_v60 = vcombine.low %v118_v48, %v122_v49 }
  0xf2   :  { %2000 = vmatmul.mubr.bf16.gmra.mrb[16].mxu0 %v2656_v61  ;;  %1653 = vmatprep.mubr.bf16.mxu1 %v2661_v62  ;;  %v2720_v61 = vcombine.low %v120_v50, %v124_v51  ;;  %v2725_v62 = vcombine.high %v126_v56, %v130_v57 }
  0xf3   :  { %2007 = vmatprep.mubr.bf16.mxu0 %v2665_v63  ;;  %v2729_v63 = vcombine.high %v128_v58, %v132_v59 }
  0xf9   :  { %1654 = vmatmul.mubr.bf16.gmra.mrb[20].mxu1 %v2660_v5  ;;  %v2724_v5 = vcombine.low %v126_v56, %v130_v57 }
  0xfa   :  { %2008 = vmatmul.mubr.bf16.gmra.mrb[20].mxu0 %v2664_v6  ;;  %1661 = vmatprep.mubr.bf16.mxu1 %v2669_v7  ;;  %v2728_v6 = vcombine.low %v128_v58, %v132_v59  ;;  %v2733_v7 = vcombine.high %v134_v1, %v138_v2 }
  0xfb   :  { %2015 = vmatprep.mubr.bf16.mxu0 %v2673_v8  ;;  %v2737_v8 = vcombine.high %v136_v3, %v140_v4 }
 0x101   :  { %1662 = vmatmul.mubr.bf16.gmra.mrb[24].mxu1 %v2668_v13  ;;  %v2732_v13 = vcombine.low %v134_v1, %v138_v2 }
 0x102   :  { %2016 = vmatmul.mubr.bf16.gmra.mrb[24].mxu0 %v2672_v14  ;;  %1669 = vmatprep.mubr.bf16.mxu1 %v2677_v15  ;;  %v2736_v14 = vcombine.low %v136_v3, %v140_v4  ;;  %v2741_v15 = vcombine.high %v142_v9, %v146_v10 }
 0x103   :  { %2023 = vmatprep.mubr.bf16.mxu0 %v2681_v16  ;;  %v2745_v16 = vcombine.high %v144_v11, %v148_v12 }
 0x109   :  { %1670 = vmatmul.mubr.bf16.gmra.mrb[28].mxu1 %v2676_v20  ;;  %v2740_v20 = vcombine.low %v142_v9, %v146_v10 }
 0x10a   :  { %2024 = vmatmul.mubr.bf16.gmra.mrb[28].mxu0 %v2680_v21  ;;  %1677 = vmatprep.mubr.bf16.mxu1 %v2685_v22  ;;  %v2744_v21 = vcombine.low %v144_v11, %v148_v12  ;;  %v2749_v22 = vcombine.high %v150_v17, %v154_v18 }
 0x10b   :  { %2031 = vmatprep.mubr.bf16.mxu0 %v2689_v23  ;;  %v2753_v23 = vcombine.high %v152_v0, %v156_v19 }
 0x111   :  { %1678 = vmatmul.mubr.bf16.gmra.mrb[32].mxu1 %v2684_v28  ;;  %v2748_v28 = vcombine.low %v150_v17, %v154_v18 }
 0x112   :  { %2032 = vmatmul.mubr.bf16.gmra.mrb[32].mxu0 %v2688_v29  ;;  %1685 = vmatprep.mubr.bf16.mxu1 %v2693_v30  ;;  %v2752_v29 = vcombine.low %v152_v0, %v156_v19  ;;  %v2757_v30 = vcombine.high %v158_v24, %v162_v25 }
 0x113   :  { %2039 = vmatprep.mubr.bf16.mxu0 %v2697_v31  ;;  %v2761_v31 = vcombine.high %v160_v26, %v164_v27 }
 0x119   :  { %1686 = vmatmul.mubr.bf16.gmra.mrb[36].mxu1 %v2692_v36 }
 0x11a   :  { %2040 = vmatmul.mubr.bf16.gmra.mrb[36].mxu0 %v2696_v37  ;;  %1693 = vmatprep.mubr.bf16.mxu1 %v2701_v38 }
 0x11b   :  { %2047 = vmatprep.mubr.bf16.mxu0 %v2705_v39 }
 0x121   :  { %1694 = vmatmul.mubr.bf16.gmra.mrb[40].mxu1 %v2700_v44 }
 0x122   :  { %2048 = vmatmul.mubr.bf16.gmra.mrb[40].mxu0 %v2704_v45  ;;  %1701 = vmatprep.mubr.bf16.mxu1 %v2709_v46 }
 0x123   :  { %2055 = vmatprep.mubr.bf16.mxu0 %v2713_v47 }
 0x129   :  { %1702 = vmatmul.mubr.bf16.gmra.mrb[44].mxu1 %v2708_v52 }
 0x12a   :  { %2056 = vmatmul.mubr.bf16.gmra.mrb[44].mxu0 %v2712_v53  ;;  %1709 = vmatprep.mubr.bf16.mxu1 %v2717_v54 }
 0x12b   :  { %2063 = vmatprep.mubr.bf16.mxu0 %v2721_v55 }
 0x131   :  { %1710 = vmatmul.mubr.bf16.gmra.mrb[48].mxu1 %v2716_v60 }
 0x132   :  { %2064 = vmatmul.mubr.bf16.gmra.mrb[48].mxu0 %v2720_v61  ;;  %1717 = vmatprep.mubr.bf16.mxu1 %v2725_v62 }
 0x133   :  { %2071 = vmatprep.mubr.bf16.mxu0 %v2729_v63 }
 0x139   :  { %1718 = vmatmul.mubr.bf16.gmra.mrb[52].mxu1 %v2724_v5 }
 0x13a   :  { %2072 = vmatmul.mubr.bf16.gmra.mrb[52].mxu0 %v2728_v6  ;;  %1725 = vmatprep.mubr.bf16.mxu1 %v2733_v7 }
 0x13b   :  { %2079 = vmatprep.mubr.bf16.mxu0 %v2737_v8 }
 0x141   :  { %1726 = vmatmul.mubr.bf16.gmra.mrb[56].mxu1 %v2732_v13 }
 0x142   :  { %2080 = vmatmul.mubr.bf16.gmra.mrb[56].mxu0 %v2736_v14  ;;  %1733 = vmatprep.mubr.bf16.mxu1 %v2741_v15 }
 0x143   :  { %2087 = vmatprep.mubr.bf16.mxu0 %v2745_v16 }
 0x149   :  { %1734 = vmatmul.mubr.bf16.gmra.mrb[60].mxu1 %v2740_v20 }
 0x14a   :  { %2088 = vmatmul.mubr.bf16.gmra.mrb[60].mxu0 %v2744_v21  ;;  %1741 = vmatprep.mubr.bf16.mxu1 %v2749_v22 }
 0x14b   :  { %2095 = vmatprep.mubr.bf16.mxu0 %v2753_v23 }
 0x151   :  { %1742 = vmatmul.mubr.bf16.gmra.mrb[64].mxu1 %v2748_v28 }
 0x152   :  { %2096 = vmatmul.mubr.bf16.gmra.mrb[64].mxu0 %v2752_v29  ;;  %1749 = vmatprep.mubr.bf16.mxu1 %v2757_v30 }
 0x153   :  { %2103 = vmatprep.mubr.bf16.mxu0 %v2761_v31 }
 0x159   :  { %1750 = vmatmul.mubr.bf16.gmra.mrb[68].mxu1 %v2756_v32 }
 0x15a   :  { %2104 = vmatmul.mubr.bf16.gmra.mrb[68].mxu0 %v2760_v33 }
 0x1a4   :  { %v1615_v35 = vpop.f32.mrb[0].mxu1 }
 0x1a5   :  { %v3005_v36 = vadd.f32 %v4022_v34, %v1615_v35  ;;  %v1969_v37 = vpop.f32.mrb[0].mxu0  ;;  %v1617_v38 = vpop.f32.mrb[1].mxu1 }
 0x1a6   :  { %v1971_v39 = vpop.f32.mrb[1].mxu0  ;;  %v1618_v40 = vpop.f32.mrb[2].mxu1 }
 0x1a7   :  { %v4025_v41 = vadd.f32 %v3005_v36, %v1969_v37  ;;  %v3007_v42 = vadd.f32 %v4022_v34, %v1618_v40  ;;  %v1972_v43 = vpop.f32.mrb[2].mxu0  ;;  %v1620_v44 = vpop.f32.mrb[3].mxu1 }
 0x1a8   :  { %v1974_v45 = vpop.f32.mrb[3].mxu0 }
 0x1a9   :  { %v4028_v46 = vadd.f32 %v3007_v42, %v1972_v43  ;;  %v2153_v21 = vmul.f32 %v4025_v41, %v4025_v41 }
 0x1ab   :  { %v2154_v19 = vmul.f32 %v4028_v46, %v4028_v46  ;;  %v2112_v22 = vadd.f32 %v4028_v46, %v4025_v41 }
 0x1ac   :  { %v1623_v47 = vpop.f32.mrb[4].mxu1 }
 0x1ad   :  { %v3009_v48 = vadd.f32 %v4022_v34, %v1623_v47  ;;  %v1977_v49 = vpop.f32.mrb[4].mxu0  ;;  %v1625_v50 = vpop.f32.mrb[5].mxu1  ;;  %v2189_v29 = vadd.f32 %v2154_v19, %v2153_v21 }
 0x1ae   :  { %v1979_v51 = vpop.f32.mrb[5].mxu0  ;;  %v1626_v52 = vpop.f32.mrb[6].mxu1 }
 0x1af   :  { %v4031_v53 = vadd.f32 %v3009_v48, %v1977_v49  ;;  %v3011_v54 = vadd.f32 %v4022_v34, %v1626_v52  ;;  %v1980_v55 = vpop.f32.mrb[6].mxu0  ;;  %v1628_v56 = vpop.f32.mrb[7].mxu1 }
 0x1b0   :  { %v1982_v57 = vpop.f32.mrb[7].mxu0 }
 0x1b1   :  { %v4034_v58 = vadd.f32 %v3011_v54, %v1980_v55  ;;  %v2155_v23 = vmul.f32 %v4031_v53, %v4031_v53  ;;  %v2113_v30 = vadd.f32 %v4031_v53, %v2112_v22 }
 0x1b3   :  { %v2190_v37 = vadd.f32 %v2189_v29, %v2155_v23  ;;  %v2156_v38 = vmul.f32 %v4034_v58, %v4034_v58  ;;  %v2114_v40 = vadd.f32 %v4034_v58, %v2113_v30 }
 0x1b4   :  { %v1631_v59 = vpop.f32.mrb[8].mxu1 }
 0x1b5   :  { %v3013_v60 = vadd.f32 %v4022_v34, %v1631_v59  ;;  %v1985_v61 = vpop.f32.mrb[8].mxu0  ;;  %v1633_v62 = vpop.f32.mrb[9].mxu1  ;;  %v2191_v44 = vadd.f32 %v2190_v37, %v2156_v38 }
 0x1b6   :  { %v1987_v63 = vpop.f32.mrb[9].mxu0  ;;  %v1634_v1 = vpop.f32.mrb[10].mxu1 }
 0x1b7   :  { %v4037_v2 = vadd.f32 %v3013_v60, %v1985_v61  ;;  %v3015_v3 = vadd.f32 %v4022_v34, %v1634_v1  ;;  %v1988_v4 = vpop.f32.mrb[10].mxu0  ;;  %v1636_v5 = vpop.f32.mrb[11].mxu1 }
 0x1b8   :  { %v1990_v6 = vpop.f32.mrb[11].mxu0 }
 0x1b9   :  { %v4040_v7 = vadd.f32 %v3015_v3, %v1988_v4  ;;  %v2157_v42 = vmul.f32 %v4037_v2, %v4037_v2  ;;  %v2115_v45 = vadd.f32 %v4037_v2, %v2114_v40 }
 0x1bb   :  { %v2192_v52 = vadd.f32 %v2191_v44, %v2157_v42  ;;  %v2158_v54 = vmul.f32 %v4040_v7, %v4040_v7  ;;  %v2116_v61 = vadd.f32 %v4040_v7, %v2115_v45 }
 0x1bc   :  { %v1639_v8 = vpop.f32.mrb[12].mxu1 }
 0x1bd   :  { %v3017_v9 = vadd.f32 %v4022_v34, %v1639_v8  ;;  %v1993_v10 = vpop.f32.mrb[12].mxu0  ;;  %v1641_v11 = vpop.f32.mrb[13].mxu1  ;;  %v2193_v1 = vadd.f32 %v2192_v52, %v2158_v54 }
 0x1be   :  { %v1995_v12 = vpop.f32.mrb[13].mxu0  ;;  %v1642_v13 = vpop.f32.mrb[14].mxu1 }
 0x1bf   :  { %v4043_v14 = vadd.f32 %v3017_v9, %v1993_v10  ;;  %v3019_v15 = vadd.f32 %v4022_v34, %v1642_v13  ;;  %v1996_v16 = vpop.f32.mrb[14].mxu0  ;;  %v1644_v17 = vpop.f32.mrb[15].mxu1 }
 0x1c0   :  { %v1998_v18 = vpop.f32.mrb[15].mxu0 }
 0x1c1   :  { %v4046_v0 = vadd.f32 %v3019_v15, %v1996_v16  ;;  %v2159_v62 = vmul.f32 %v4043_v14, %v4043_v14  ;;  %v2117_v3 = vadd.f32 %v4043_v14, %v2116_v61 }
 0x1c3   :  { %v2194_v5 = vadd.f32 %v2193_v1, %v2159_v62  ;;  %v2160_v6 = vmul.f32 %v4046_v0, %v4046_v0  ;;  %v2118_v13 = vadd.f32 %v4046_v0, %v2117_v3 }
 0x1c4   :  { %v1647_v20 = vpop.f32.mrb[16].mxu1 }
 0x1c5   :  { %v3021_v24 = vadd.f32 %v4022_v34, %v1647_v20  ;;  %v2001_v25 = vpop.f32.mrb[16].mxu0  ;;  %v1649_v26 = vpop.f32.mrb[17].mxu1  ;;  %v2195_v21 = vadd.f32 %v2194_v5, %v2160_v6 }
 0x1c6   :  { %v2003_v27 = vpop.f32.mrb[17].mxu0  ;;  %v1650_v28 = vpop.f32.mrb[18].mxu1 }
 0x1c7   :  { %v4058_v31 = vadd.f32 %v3021_v24, %v2001_v25  ;;  %v3023_v32 = vadd.f32 %v4022_v34, %v1650_v28  ;;  %v2004_v33 = vpop.f32.mrb[18].mxu0  ;;  %v1652_v35 = vpop.f32.mrb[19].mxu1 }
 0x1c8   :  { %v2006_v36 = vpop.f32.mrb[19].mxu0 }
 0x1c9   :  { %v4063_v39 = vadd.f32 %v3023_v32, %v2004_v33  ;;  %v2161_v15 = vmul.f32 %v4058_v31, %v4058_v31  ;;  %v2119_v22 = vadd.f32 %v4058_v31, %v2118_v13 }
 0x1cb   :  { %v2196_v24 = vadd.f32 %v2195_v21, %v2161_v15  ;;  %v2162_v25 = vmul.f32 %v4063_v39, %v4063_v39  ;;  %v2120_v27 = vadd.f32 %v4063_v39, %v2119_v22 }
 0x1cc   :  { %v1655_v43 = vpop.f32.mrb[20].mxu1 }
 0x1cd   :  { %v3025_v47 = vadd.f32 %v4022_v34, %v1655_v43  ;;  %v2009_v48 = vpop.f32.mrb[20].mxu0  ;;  %v1657_v49 = vpop.f32.mrb[21].mxu1  ;;  %v2197_v36 = vadd.f32 %v2196_v24, %v2162_v25 }
 0x1ce   :  { %v2011_v50 = vpop.f32.mrb[21].mxu0  ;;  %v1658_v51 = vpop.f32.mrb[22].mxu1 }
 0x1cf   :  { %v4072_v55 = vadd.f32 %v3025_v47, %v2009_v48  ;;  %v3027_v56 = vadd.f32 %v4022_v34, %v1658_v51  ;;  %v2012_v57 = vpop.f32.mrb[22].mxu0  ;;  %v1660_v59 = vpop.f32.mrb[23].mxu1 }
 0x1d0   :  { %v2014_v60 = vpop.f32.mrb[23].mxu0 }
 0x1d1   :  { %v4078_v63 = vadd.f32 %v3027_v56, %v2012_v57  ;;  %v2163_v28 = vmul.f32 %v4072_v55, %v4072_v55  ;;  %v2121_v37 = vadd.f32 %v4072_v55, %v2120_v27 }
 0x1d3   :  { %v2198_v45 = vadd.f32 %v2197_v36, %v2163_v28  ;;  %v2164_v47 = vmul.f32 %v4078_v63, %v4078_v63  ;;  %v2122_v49 = vadd.f32 %v4078_v63, %v2121_v37 }
 0x1d4   :  { %v1663_v4 = vpop.f32.mrb[24].mxu1 }
 0x1d5   :  { %v3029_v8 = vadd.f32 %v4022_v34, %v1663_v4  ;;  %v2017_v9 = vpop.f32.mrb[24].mxu0  ;;  %v1665_v10 = vpop.f32.mrb[25].mxu1  ;;  %v2199_v52 = vadd.f32 %v2198_v45, %v2164_v47 }
 0x1d6   :  { %v2019_v11 = vpop.f32.mrb[25].mxu0  ;;  %v1666_v12 = vpop.f32.mrb[26].mxu1 }
 0x1d7   :  { %v4087_v16 = vadd.f32 %v3029_v8, %v2017_v9  ;;  %v3031_v17 = vadd.f32 %v4022_v34, %v1666_v12  ;;  %v2020_v18 = vpop.f32.mrb[26].mxu0  ;;  %v1668_v19 = vpop.f32.mrb[27].mxu1 }
 0x1d8   :  { %v2022_v20 = vpop.f32.mrb[27].mxu0 }
 0x1d9   :  { %v4091_v23 = vadd.f32 %v3031_v17, %v2020_v18  ;;  %v2165_v50 = vmul.f32 %v4087_v16, %v4087_v16  ;;  %v2123_v54 = vadd.f32 %v4087_v16, %v2122_v49 }
 0x1db   :  { %v2200_v62 = vadd.f32 %v2199_v52, %v2165_v50  ;;  %v2166_v1 = vmul.f32 %v4091_v23, %v4091_v23  ;;  %v2124_v9 = vadd.f32 %v4091_v23, %v2123_v54 }
 0x1dc   :  { %v1671_v26 = vpop.f32.mrb[28].mxu1 }
 0x1dd   :  { %v3033_v29 = vadd.f32 %v4022_v34, %v1671_v26  ;;  %v2025_v30 = vpop.f32.mrb[28].mxu0  ;;  %v1673_v32 = vpop.f32.mrb[29].mxu1  ;;  %v2201_v12 = vadd.f32 %v2200_v62, %v2166_v1 }
 0x1de   :  { %v2027_v33 = vpop.f32.mrb[29].mxu0  ;;  %v1674_v35 = vpop.f32.mrb[30].mxu1 }
 0x1df   :  { %v4100_v38 = vadd.f32 %v3033_v29, %v2025_v30  ;;  %v3035_v40 = vadd.f32 %v4022_v34, %v1674_v35  ;;  %v2028_v42 = vpop.f32.mrb[30].mxu0  ;;  %v1676_v43 = vpop.f32.mrb[31].mxu1 }
 0x1e0   :  { %v2030_v44 = vpop.f32.mrb[31].mxu0 }
 0x1e1   :  { %v4105_v48 = vadd.f32 %v3035_v40, %v2028_v42  ;;  %v2167_v10 = vmul.f32 %v4100_v38, %v4100_v38  ;;  %v2125_v13 = vadd.f32 %v4100_v38, %v2124_v9 }
 0x1e3   :  { %v2202_v17 = vadd.f32 %v2201_v12, %v2167_v10  ;;  %v2168_v18 = vmul.f32 %v4105_v48, %v4105_v48  ;;  %v2126_v25 = vadd.f32 %v4105_v48, %v2125_v13 }
 0x1e4   :  { %v1679_v51 = vpop.f32.mrb[32].mxu1 }
 0x1e5   :  { %v3037_v56 = vadd.f32 %v4022_v34, %v1679_v51  ;;  %v2033_v57 = vpop.f32.mrb[32].mxu0  ;;  %v1681_v59 = vpop.f32.mrb[33].mxu1  ;;  %v2203_v33 = vadd.f32 %v2202_v17, %v2168_v18 }
 0x1e6   :  { %v2035_v60 = vpop.f32.mrb[33].mxu0  ;;  %v1682_v61 = vpop.f32.mrb[34].mxu1 }
 0x1e7   :  { %v4114_v3 = vadd.f32 %v3037_v56, %v2033_v57  ;;  %v3039_v4 = vadd.f32 %v4022_v34, %v1682_v61  ;;  %v2036_v5 = vpop.f32.mrb[34].mxu0  ;;  %v1684_v6 = vpop.f32.mrb[35].mxu1 }
 0x1e8   :  { %v2038_v8 = vpop.f32.mrb[35].mxu0 }
 0x1e9   :  { %v4120_v11 = vadd.f32 %v3039_v4, %v2036_v5  ;;  %v2169_v26 = vmul.f32 %v4114_v3, %v4114_v3  ;;  %v2127_v35 = vadd.f32 %v4114_v3, %v2126_v25 }
 0x1eb   :  { %v2204_v37 = vadd.f32 %v2203_v33, %v2169_v26  ;;  %v2170_v40 = vmul.f32 %v4120_v11, %v4120_v11  ;;  %v2128_v43 = vadd.f32 %v4120_v11, %v2127_v35 }
 0x1ec   :  { %v1687_v15 = vpop.f32.mrb[36].mxu1 }
 0x1ed   :  { %v3041_v19 = vadd.f32 %v4022_v34, %v1687_v15  ;;  %v2041_v20 = vpop.f32.mrb[36].mxu0  ;;  %v1689_v21 = vpop.f32.mrb[37].mxu1  ;;  %v2205_v52 = vadd.f32 %v2204_v37, %v2170_v40 }
 0x1ee   :  { %v2043_v22 = vpop.f32.mrb[37].mxu0  ;;  %v1690_v24 = vpop.f32.mrb[38].mxu1 }
 0x1ef   :  { %v4129_v27 = vadd.f32 %v3041_v19, %v2041_v20  ;;  %v3043_v28 = vadd.f32 %v4022_v34, %v1690_v24  ;;  %v2044_v29 = vpop.f32.mrb[38].mxu0  ;;  %v1692_v30 = vpop.f32.mrb[39].mxu1 }
 0x1f0   :  { %v2046_v32 = vpop.f32.mrb[39].mxu0 }
 0x1f1   :  { %v4133_v36 = vadd.f32 %v3043_v28, %v2044_v29  ;;  %v2171_v44 = vmul.f32 %v4129_v27, %v4129_v27  ;;  %v2129_v54 = vadd.f32 %v4129_v27, %v2128_v43 }
 0x1f3   :  { %v2206_v62 = vadd.f32 %v2205_v52, %v2171_v44  ;;  %v2172_v1 = vmul.f32 %v4133_v36, %v4133_v36  ;;  %v2130_v5 = vadd.f32 %v4133_v36, %v2129_v54 }
 0x1f4   :  { %v1695_v42 = vpop.f32.mrb[40].mxu1 }
 0x1f5   :  { %v3045_v45 = vadd.f32 %v4022_v34, %v1695_v42  ;;  %v2049_v47 = vpop.f32.mrb[40].mxu0  ;;  %v1697_v49 = vpop.f32.mrb[41].mxu1  ;;  %v2207_v9 = vadd.f32 %v2206_v62, %v2172_v1 }
 0x1f6   :  { %v2051_v50 = vpop.f32.mrb[41].mxu0  ;;  %v1698_v51 = vpop.f32.mrb[42].mxu1 }
 0x1f7   :  { %v4142_v56 = vadd.f32 %v3045_v45, %v2049_v47  ;;  %v3047_v57 = vadd.f32 %v4022_v34, %v1698_v51  ;;  %v2052_v59 = vpop.f32.mrb[42].mxu0  ;;  %v1700_v60 = vpop.f32.mrb[43].mxu1 }
 0x1f8   :  { %v2054_v61 = vpop.f32.mrb[43].mxu0 }
 0x1f9   :  { %v4147_v4 = vadd.f32 %v3047_v57, %v2052_v59  ;;  %v2173_v6 = vmul.f32 %v4142_v56, %v4142_v56  ;;  %v2131_v10 = vadd.f32 %v4142_v56, %v2130_v5 }
 0x1fb   :  { %v2208_v19 = vadd.f32 %v2207_v9, %v2173_v6  ;;  %v2174_v20 = vmul.f32 %v4147_v4, %v4147_v4  ;;  %v2132_v28 = vadd.f32 %v4147_v4, %v2131_v10 }
 0x1fc   :  { %v1703_v8 = vpop.f32.mrb[44].mxu1 }
 0x1fd   :  { %v3049_v12 = vadd.f32 %v4022_v34, %v1703_v8  ;;  %v2057_v13 = vpop.f32.mrb[44].mxu0  ;;  %v1705_v15 = vpop.f32.mrb[45].mxu1  ;;  %v2209_v32 = vadd.f32 %v2208_v19, %v2174_v20 }
 0x1fe   :  { %v2059_v17 = vpop.f32.mrb[45].mxu0  ;;  %v1706_v18 = vpop.f32.mrb[46].mxu1 }
 0x1ff   :  { %v4156_v21 = vadd.f32 %v3049_v12, %v2057_v13  ;;  %v3051_v22 = vadd.f32 %v4022_v34, %v1706_v18  ;;  %v2060_v24 = vpop.f32.mrb[46].mxu0  ;;  %v1708_v25 = vpop.f32.mrb[47].mxu1 }
 0x200   :  { %v2062_v26 = vpop.f32.mrb[47].mxu0 }
 0x201   :  { %v2175_v29 = vmul.f32 %v4156_v21, %v4156_v21  ;;  %v4162_v30 = vadd.f32 %v3051_v22, %v2060_v24  ;;  %v2133_v33 = vadd.f32 %v4156_v21, %v2132_v28 }
 0x203   :  { %v2210_v37 = vadd.f32 %v2209_v32, %v2175_v29  ;;  %v2176_v40 = vmul.f32 %v4162_v30, %v4162_v30  ;;  %v2134_v49 = vadd.f32 %v4162_v30, %v2133_v33 }
 0x204   :  { %v1711_v35 = vpop.f32.mrb[48].mxu1 }
 0x205   :  { %v3053_v42 = vadd.f32 %v4022_v34, %v1711_v35  ;;  %v2065_v43 = vpop.f32.mrb[48].mxu0  ;;  %v1713_v44 = vpop.f32.mrb[49].mxu1  ;;  %v2211_v59 = vadd.f32 %v2210_v37, %v2176_v40 }
 0x206   :  { %v2067_v45 = vpop.f32.mrb[49].mxu0  ;;  %v1714_v47 = vpop.f32.mrb[50].mxu1 }
 0x207   :  { %v4169_v50 = vadd.f32 %v3053_v42, %v2065_v43  ;;  %v3055_v51 = vadd.f32 %v4022_v34, %v1714_v47  ;;  %v2068_v52 = vpop.f32.mrb[50].mxu0  ;;  %v1716_v54 = vpop.f32.mrb[51].mxu1 }
 0x208   :  { %v2070_v57 = vpop.f32.mrb[51].mxu0 }
 0x209   :  { %v2135_v60 = vadd.f32 %v4169_v50, %v2134_v49  ;;  %v2177_v61 = vmul.f32 %v4169_v50, %v4169_v50  ;;  %v4175_v62 = vadd.f32 %v3055_v51, %v2068_v52 }
 0x20b   :  { %v2212_v1 = vadd.f32 %v2211_v59, %v2177_v61  ;;  %v2136_v5 = vadd.f32 %v4175_v62, %v2135_v60  ;;  %v2178_v6 = vmul.f32 %v4175_v62, %v4175_v62 }
 0x20c   :  { %v1719_v8 = vpop.f32.mrb[52].mxu1 }
 0x20d   :  { %v2213_v9 = vadd.f32 %v2212_v1, %v2178_v6  ;;  %v3057_v10 = vadd.f32 %v4022_v34, %v1719_v8  ;;  %v2073_v12 = vpop.f32.mrb[52].mxu0  ;;  %v1721_v13 = vpop.f32.mrb[53].mxu1 }
 0x20e   :  { %v2075_v15 = vpop.f32.mrb[53].mxu0  ;;  %v1722_v17 = vpop.f32.mrb[54].mxu1 }
 0x20f   :  { %v4181_v18 = vadd.f32 %v3057_v10, %v2073_v12  ;;  %v3059_v19 = vadd.f32 %v4022_v34, %v1722_v17  ;;  %v2076_v20 = vpop.f32.mrb[54].mxu0  ;;  %v1724_v22 = vpop.f32.mrb[55].mxu1 }
 0x210   :  { %v2078_v24 = vpop.f32.mrb[55].mxu0 }
 0x211   :  { %v2137_v25 = vadd.f32 %v4181_v18, %v2136_v5  ;;  %v2179_v26 = vmul.f32 %v4181_v18, %v4181_v18  ;;  %v4187_v28 = vadd.f32 %v3059_v19, %v2076_v20 }
 0x213   :  { %v2214_v29 = vadd.f32 %v2213_v9, %v2179_v26  ;;  %v2138_v32 = vadd.f32 %v4187_v28, %v2137_v25  ;;  %v2180_v33 = vmul.f32 %v4187_v28, %v4187_v28 }
 0x214   :  { %v1727_v35 = vpop.f32.mrb[56].mxu1 }
 0x215   :  { %v2215_v37 = vadd.f32 %v2214_v29, %v2180_v33  ;;  %v3061_v40 = vadd.f32 %v4022_v34, %v1727_v35  ;;  %v2081_v42 = vpop.f32.mrb[56].mxu0  ;;  %v1729_v43 = vpop.f32.mrb[57].mxu1 }
 0x216   :  { %v2083_v44 = vpop.f32.mrb[57].mxu0  ;;  %v1730_v45 = vpop.f32.mrb[58].mxu1 }
 0x217   :  { %v4193_v47 = vadd.f32 %v3061_v40, %v2081_v42  ;;  %v3063_v49 = vadd.f32 %v4022_v34, %v1730_v45  ;;  %v2084_v51 = vpop.f32.mrb[58].mxu0  ;;  %v1732_v52 = vpop.f32.mrb[59].mxu1 }
 0x218   :  { %v2086_v54 = vpop.f32.mrb[59].mxu0 }
 0x219   :  { %v2139_v57 = vadd.f32 %v4193_v47, %v2138_v32  ;;  %v2181_v59 = vmul.f32 %v4193_v47, %v4193_v47  ;;  %v4199_v60 = vadd.f32 %v3063_v49, %v2084_v51 }
 0x21b   :  { %v2216_v61 = vadd.f32 %v2215_v37, %v2181_v59  ;;  %v2140_v1 = vadd.f32 %v4199_v60, %v2139_v57  ;;  %v2182_v5 = vmul.f32 %v4199_v60, %v4199_v60 }
 0x21c   :  { %v1735_v6 = vpop.f32.mrb[60].mxu1 }
 0x21d   :  { %v2217_v8 = vadd.f32 %v2216_v61, %v2182_v5  ;;  %v3065_v9 = vadd.f32 %v4022_v34, %v1735_v6  ;;  %v2089_v10 = vpop.f32.mrb[60].mxu0  ;;  %v1737_v12 = vpop.f32.mrb[61].mxu1 }
 0x21e   :  { %v2091_v13 = vpop.f32.mrb[61].mxu0  ;;  %v1738_v15 = vpop.f32.mrb[62].mxu1 }
 0x21f   :  { %v4205_v17 = vadd.f32 %v3065_v9, %v2089_v10  ;;  %v3067_v19 = vadd.f32 %v4022_v34, %v1738_v15  ;;  %v2092_v20 = vpop.f32.mrb[62].mxu0  ;;  %v1740_v22 = vpop.f32.mrb[63].mxu1 }
 0x220   :  { %v2094_v24 = vpop.f32.mrb[63].mxu0 }
 0x221   :  { %v2141_v25 = vadd.f32 %v4205_v17, %v2140_v1  ;;  %v2183_v26 = vmul.f32 %v4205_v17, %v4205_v17  ;;  %v4211_v29 = vadd.f32 %v3067_v19, %v2092_v20 }
 0x223   :  { %v2218_v32 = vadd.f32 %v2217_v8, %v2183_v26  ;;  %v2142_v33 = vadd.f32 %v4211_v29, %v2141_v25  ;;  %v2184_v35 = vmul.f32 %v4211_v29, %v4211_v29 }
 0x224   :  { %v1743_v37 = vpop.f32.mrb[64].mxu1 }
 0x225   :  { %v2219_v40 = vadd.f32 %v2218_v32, %v2184_v35  ;;  %v3069_v42 = vadd.f32 %v4022_v34, %v1743_v37  ;;  %v2097_v43 = vpop.f32.mrb[64].mxu0  ;;  %v1745_v44 = vpop.f32.mrb[65].mxu1 }
 0x226   :  { %v2099_v45 = vpop.f32.mrb[65].mxu0  ;;  %v1746_v49 = vpop.f32.mrb[66].mxu1 }
 0x227   :  { %v4217_v51 = vadd.f32 %v3069_v42, %v2097_v43  ;;  %v3071_v52 = vadd.f32 %v4022_v34, %v1746_v49  ;;  %v2100_v54 = vpop.f32.mrb[66].mxu0  ;;  %v1748_v57 = vpop.f32.mrb[67].mxu1 }
 0x228   :  { %v2102_v59 = vpop.f32.mrb[67].mxu0 }
 0x229   :  { %v2143_v61 = vadd.f32 %v4217_v51, %v2142_v33  ;;  %v2185_v1 = vmul.f32 %v4217_v51, %v4217_v51  ;;  %v4223_v5 = vadd.f32 %v3071_v52, %v2100_v54 }
 0x22b   :  { %v2220_v6 = vadd.f32 %v2219_v40, %v2185_v1  ;;  %v2144_v8 = vadd.f32 %v4223_v5, %v2143_v61  ;;  %v2186_v9 = vmul.f32 %v4223_v5, %v4223_v5 }
 0x22c   :  { %v1751_v10 = vpop.f32.mrb[68].mxu1 }
 0x22d   :  { %v2221_v12 = vadd.f32 %v2220_v6, %v2186_v9  ;;  %v3073_v13 = vadd.f32 %v4022_v34, %v1751_v10  ;;  %v2105_v15 = vpop.f32.mrb[68].mxu0  ;;  %v1753_v19 = vpop.f32.mrb[69].mxu1 }
 0x22e   :  { %v2107_v20 = vpop.f32.mrb[69].mxu0  ;;  %v1754_v22 = vpop.f32.mrb[70].mxu1 }
 0x22f   :  { %v4229_v24 = vadd.f32 %v3073_v13, %v2105_v15  ;;  %v3075_v25 = vadd.f32 %v4022_v34, %v1754_v22  ;;  %v2108_v26 = vpop.f32.mrb[70].mxu0  ;;  %v1756_v32 = vpop.f32.mrb[71].mxu1  ;;  %v2242_v22 = vlaneseq }
 0x230   :  { %v2110_v33 = vpop.f32.mrb[71].mxu0 }
 0x231   :  { %v2145_v35 = vadd.f32 %v4229_v24, %v2144_v8  ;;  %v2187_v37 = vmul.f32 %v4229_v24, %v4229_v24  ;;  %v4235_v40 = vadd.f32 %v3075_v25, %v2108_v26  ;;  %v2243_v25 = vshrl.u32 %v2242_v22, 7  ;;  %v2234_v26 = vld [vmem:[%s4603_s3] sm:$0x1] }
 0x233   :  { %v2222_v42 = vadd.f32 %v2221_v12, %v2187_v37  ;;  %v2146_v43 = vadd.f32 %v4235_v40, %v2145_v35  ;;  %v2188_v44 = vmul.f32 %v4235_v40, %v4235_v40  ;;  %v2244_v32 = vsub.s32 0, %v2243_v25  ;;  %v2238_v37 = vld [vmem:[%s4604_s4] sm:$0x1] }
 0x235   :  { %v2147_v45 = vrot.slane %v2146_v43, 4  ;;  %v2223_v49 = vadd.f32 %v2222_v42, %v2188_v44 }
 0x237   :  { %v2148_v52 = vadd.f32 %v2147_v45, %v2146_v43  ;;  %v2224_v34 = vrot.slane %v2223_v49, 4 }
 0x239   :  { %v2149_v54 = vrot.slane %v2148_v52, 2  ;;  %v2225_v57 = vadd.f32 %v2224_v34, %v2223_v49 }
 0x23b   :  { %v2150_v59 = vadd.f32 %v2149_v54, %v2148_v52  ;;  %v2226_v61 = vrot.slane %v2225_v57, 2 }
 0x23d   :  { %v2151_v1 = vrot.slane %v2150_v59, 1  ;;  %v2227_v6 = vadd.f32 %v2226_v61, %v2225_v57 }
 0x23f   :  { %v2152_v8 = vadd.f32 %v2151_v1, %v2150_v59  ;;  %v2228_v9 = vrot.slane %v2227_v6, 1 }
 0x241   :  { %v2229_v10 = vadd.f32 %v2228_v9, %v2227_v6  ;;  %v2230_v13 = vmul.f32 0.0034722222, %v2152_v8 }
 0x243   :  { %v2231_v12 = vmul.f32 0.0034722222, %v2229_v10  ;;  %v2232_v15 = vmul.f32 %v2230_v13, %v2230_v13 }
 0x245   :  { %v2233_v19 = vsub.f32 %v2231_v12, %v2232_v15 }
 0x247   :  { %v2235_v20 = vadd.f32 1e-05, %v2233_v19 }
 0x249   :  { %3286 = vrsqrt.f32 %v2235_v20 }
 0x253   :  { %v3287_v33 = vpop.eup %3286 }
 0x254   :  { %v2237_v35 = vmul.f32 %v3287_v33, %v2234_v26 }
 0x256   :  { %v2239_v42 = vmul.f32 %v2237_v35, %v2230_v13  ;;  %v2245_v43 = vrot.slane %v2237_v35, %v2244_v32 }
 0x258   :  { %v2240_v44 = vsub.f32 %v2238_v37, %v2239_v42  ;;  %v2247_v45 = vmul.f32 %v4025_v41, %v2245_v43  ;;  %v2248_v49 = vmul.f32 %v4028_v46, %v2245_v43  ;;  %v2249_v52 = vmul.f32 %v4031_v53, %v2245_v43 }
 0x259   :  { %v2250_v34 = vmul.f32 %v4034_v58, %v2245_v43  ;;  %v2251_v54 = vmul.f32 %v4037_v2, %v2245_v43  ;;  %v2252_v57 = vmul.f32 %v4040_v7, %v2245_v43  ;;  %v2253_v59 = vmul.f32 %v4043_v14, %v2245_v43 }
 0x25a   :  { %v2254_v61 = vmul.f32 %v4046_v0, %v2245_v43  ;;  %v2255_v1 = vmul.f32 %v4058_v31, %v2245_v43  ;;  %v2256_v6 = vmul.f32 %v4063_v39, %v2245_v43  ;;  %v2257_v41 = vmul.f32 %v4072_v55, %v2245_v43 }
 0x25b   :  { %v2258_v46 = vmul.f32 %v4078_v63, %v2245_v43  ;;  %v2259_v53 = vmul.f32 %v4087_v16, %v2245_v43  ;;  %v2260_v58 = vmul.f32 %v4091_v23, %v2245_v43  ;;  %v2261_v2 = vmul.f32 %v4100_v38, %v2245_v43 }
 0x25c   :  { %v2262_v7 = vmul.f32 %v4105_v48, %v2245_v43  ;;  %v2263_v14 = vmul.f32 %v4114_v3, %v2245_v43  ;;  %v2264_v0 = vmul.f32 %v4120_v11, %v2245_v43  ;;  %v2271_v31 = vmul.f32 %v4169_v50, %v2245_v43 }
 0x25d   :  { %v2272_v39 = vmul.f32 %v4175_v62, %v2245_v43  ;;  %v2273_v55 = vmul.f32 %v4181_v18, %v2245_v43  ;;  %v2274_v63 = vmul.f32 %v4187_v28, %v2245_v43  ;;  %v2275_v16 = vmul.f32 %v4193_v47, %v2245_v43 }
 0x25e   :  { %v2276_v23 = vmul.f32 %v4199_v60, %v2245_v43  ;;  %v2277_v38 = vmul.f32 %v4205_v17, %v2245_v43  ;;  %v2278_v48 = vmul.f32 %v4211_v29, %v2245_v43  ;;  %v2279_v3 = vmul.f32 %v4217_v51, %v2245_v43 }
 0x25f   :  { %v2280_v11 = vmul.f32 %v4223_v5, %v2245_v43  ;;  %v2281_v50 = vmul.f32 %v4229_v24, %v2245_v43  ;;  %v2265_v62 = vmul.f32 %v4129_v27, %v2245_v43  ;;  %v2266_v18 = vmul.f32 %v4133_v36, %v2245_v43 }
 0x260   :  { %v2282_v28 = vmul.f32 %v4235_v40, %v2245_v43  ;;  %v2287_v8 = vrot.slane %v2240_v44, %v2244_v32  ;;  %v2267_v47 = vmul.f32 %v4142_v56, %v2245_v43  ;;  %v2268_v60 = vmul.f32 %v4147_v4, %v2245_v43 }
 0x261   :  { %v2269_v17 = vmul.f32 %v4156_v21, %v2245_v43  ;;  %v2270_v29 = vmul.f32 %v4162_v30, %v2245_v43 }
 0x262   :  { %v4282_v51 = vadd.f32 %v2287_v8, %v2247_v45  ;;  %v4284_v5 = vadd.f32 %v2287_v8, %v2248_v49  ;;  %v4286_v24 = vadd.f32 %v2287_v8, %v2249_v52  ;;  %v4288_v27 = vadd.f32 %v2287_v8, %v2250_v34 }
 0x263   :  { %v4290_v36 = vadd.f32 %v2287_v8, %v2251_v54  ;;  %v4292_v40 = vadd.f32 %v2287_v8, %v2252_v57  ;;  %v4294_v9 = vadd.f32 %v2287_v8, %v2253_v59  ;;  %v4296_v56 = vadd.f32 %v2287_v8, %v2254_v61 }
 0x264   :  { %v4298_v4 = vadd.f32 %v2287_v8, %v2255_v1  ;;  %v4300_v21 = vadd.f32 %v2287_v8, %v2256_v6  ;;  %v4302_v30 = vadd.f32 %v2287_v8, %v2257_v41  ;;  %v4304_v10 = vadd.f32 %v2287_v8, %v2258_v46 }
 0x265   :  { %v4306_v13 = vadd.f32 %v2287_v8, %v2259_v53  ;;  %v4308_v12 = vadd.f32 %v2287_v8, %v2260_v58  ;;  %v4310_v15 = vadd.f32 %v2287_v8, %v2261_v2  ;;  %v4312_v19 = vadd.f32 %v2287_v8, %v2262_v7 }
 0x266   :  { %v4314_v20 = vadd.f32 %v2287_v8, %v2263_v14  ;;  %v4316_v22 = vadd.f32 %v2287_v8, %v2264_v0  ;;  %v4318_v25 = vadd.f32 %v2287_v8, %v2265_v62  ;;  %v4320_v26 = vadd.f32 %v2287_v8, %v2266_v18 }
 0x267   :  { %v4322_v32 = vadd.f32 %v2287_v8, %v2267_v47  ;;  %v4324_v33 = vadd.f32 %v2287_v8, %v2268_v60  ;;  %v4326_v35 = vadd.f32 %v2287_v8, %v2269_v17  ;;  %v4328_v37 = vadd.f32 %v2287_v8, %v2270_v29 }
 0x268   :  { %v4330_v42 = vadd.f32 %v2287_v8, %v2271_v31  ;;  %v4332_v43 = vadd.f32 %v2287_v8, %v2272_v39  ;;  %v4334_v44 = vadd.f32 %v2287_v8, %v2273_v55  ;;  %v4336_v45 = vadd.f32 %v2287_v8, %v2274_v63 }
 0x269   :  { %v4338_v49 = vadd.f32 %v2287_v8, %v2275_v16  ;;  %v4340_v52 = vadd.f32 %v2287_v8, %v2276_v23  ;;  %v4342_v34 = vadd.f32 %v2287_v8, %v2277_v38  ;;  %v4344_v54 = vadd.f32 %v2287_v8, %v2278_v48 }
 0x26a   :  { %v4346_v57 = vadd.f32 %v2287_v8, %v2279_v3  ;;  %v4348_v59 = vadd.f32 %v2287_v8, %v2280_v11  ;;  %v4350_v61 = vadd.f32 %v2287_v8, %v2281_v50  ;;  %v4352_v1 = vadd.f32 %v2287_v8, %v2282_v28 }
 0x26b   :  { %vm2325_vm0 = vcmp.ge.f32.partialorder %v4282_v51, 0.0  ;;  %vm2326_vm1 = vcmp.ge.f32.partialorder %v4284_v5, 0.0  ;;  %vm2327_vm2 = vcmp.ge.f32.partialorder %v4286_v24, 0.0  ;;  %vm2328_vm3 = vcmp.ge.f32.partialorder %v4288_v27, 0.0 }
 0x26c   :  { %vm2329_vm4 = vcmp.ge.f32.partialorder %v4290_v36, 0.0  ;;  %vm2330_vm5 = vcmp.ge.f32.partialorder %v4292_v40, 0.0  ;;  %vm2331_vm6 = vcmp.ge.f32.partialorder %v4294_v9, 0.0  ;;  %vm2332_vm7 = vcmp.ge.f32.partialorder %v4296_v56, 0.0 }
 0x26d   :  { %vm2333_vm8 = vcmp.ge.f32.partialorder %v4298_v4, 0.0  ;;  %v2361_v6 = vmul.f32 0.2, %v4282_v51  ;;  %v2362_v41 = vmul.f32 0.2, %v4284_v5  ;;  %vm2336_vm11 = vcmp.ge.f32.partialorder %v4304_v10, 0.0 }
 0x26e   :  { %v2363_v46 = vmul.f32 0.2, %v4286_v24  ;;  %vm2337_vm12 = vcmp.ge.f32.partialorder %v4306_v13, 0.0  ;;  %v2364_v53 = vmul.f32 0.2, %v4288_v27  ;;  %vm2342_vm10 = vcmp.ge.f32.partialorder %v4316_v22, 0.0 }
 0x26f   :  { %v2365_v58 = vmul.f32 0.2, %v4290_v36  ;;  %v2366_v2 = vmul.f32 0.2, %v4292_v40  ;;  %v2367_v7 = vmul.f32 0.2, %v4294_v9  ;;  %v4384_v31 = vsel %vm2325_vm0, %v4282_v51, %v2361_v6 }
 0x270   :  { %v2368_v14 = vmul.f32 0.2, %v4296_v56  ;;  %v2369_v0 = vmul.f32 0.2, %v4298_v4  ;;  %4606 = vst [vmem:[#allocation2_spill] sm:$0xff] %v4384_v31  ;;  %vm2346_vm9 = vcmp.ge.f32.partialorder %v4324_v33, 0.0  ;;  %v4396_v16 = vsel %vm2326_vm1, %v4284_v5, %v2362_v41 }
 0x271   :  { %v2370_v39 = vmul.f32 0.2, %v4300_v21  ;;  %v2371_v55 = vmul.f32 0.2, %v4302_v30  ;;  %v2372_v63 = vmul.f32 0.2, %v4304_v10  ;;  %v4408_v3 = vsel %vm2327_vm2, %v4286_v24, %v2363_v46 }
 0x272   :  { %4607 = vst [vmem:[#allocation3_spill] sm:$0xff] %v4396_v16  ;;  %vm2350_vm15 = vcmp.ge.f32.partialorder %v4332_v43, 0.0  ;;  %v2373_v23 = vmul.f32 0.2, %v4306_v13  ;;  %v2374_v38 = vmul.f32 0.2, %v4308_v12  ;;  %v4420_v18 = vsel %vm2328_vm3, %v4288_v27, %v2364_v53 }
 0x273   :  { %v2375_v48 = vmul.f32 0.2, %v4310_v15  ;;  %4608 = vst [vmem:[#allocation4_spill] sm:$0xff] %v4408_v3  ;;  %vm2354_vm14 = vcmp.ge.f32.partialorder %v4340_v52, 0.0  ;;  %v2376_v11 = vmul.f32 0.2, %v4312_v19  ;;  %v2401_v60 = vsel %vm2329_vm4, %v4290_v36, %v2365_v58 }
 0x274   :  { %v2377_v50 = vmul.f32 0.2, %v4314_v20  ;;  %v2378_v62 = vmul.f32 0.2, %v4316_v22  ;;  %4609 = vst [vmem:[#allocation5_spill] sm:$0xff] %v4420_v18  ;;  %vm2356_vm1 = vcmp.ge.f32.partialorder %v4344_v54, 0.0  ;;  %v2402_v5 = vsel %vm2330_vm5, %v4292_v40, %v2366_v2 }
 0x275   :  { %vm2357_vm0 = vcmp.ge.f32.partialorder %v4346_v57, 0.0  ;;  %vm2358_vm13 = vcmp.ge.f32.partialorder %v4348_v59, 0.0  ;;  %v2379_v28 = vmul.f32 0.2, %v4318_v25  ;;  %v2380_v8 = vmul.f32 0.2, %v4320_v26 }
 0x276   :  { %v2381_v47 = vmul.f32 0.2, %v4322_v32  ;;  %vm2359_vm3 = vcmp.ge.f32.partialorder %v4350_v61, 0.0  ;;  %vm2360_vm2 = vcmp.ge.f32.partialorder %v4352_v1, 0.0  ;;  %v2382_v17 = vmul.f32 0.2, %v4324_v33 }
 0x277   :  { %v2383_v29 = vmul.f32 0.2, %v4326_v35  ;;  %v2384_v51 = vmul.f32 0.2, %v4328_v37  ;;  %v2385_v24 = vmul.f32 0.2, %v4330_v42  ;;  %v2403_v6 = vsel %vm2331_vm6, %v4294_v9, %v2367_v7 }
 0x278   :  { %v2386_v27 = vmul.f32 0.2, %v4332_v43  ;;  %v2387_v36 = vmul.f32 0.2, %v4334_v44  ;;  %v2388_v41 = vmul.f32 0.2, %v4336_v45  ;;  %v2404_v40 = vsel %vm2332_vm7, %v4296_v56, %v2368_v14 }
 0x279   :  { %v2389_v46 = vmul.f32 0.2, %v4338_v49  ;;  %v2390_v53 = vmul.f32 0.2, %v4340_v52  ;;  %v2391_v58 = vmul.f32 0.2, %v4342_v34  ;;  %v2405_v9 = vsel %vm2333_vm8, %v4298_v4, %v2369_v0 }
 0x27a   :  { %v2392_v2 = vmul.f32 0.2, %v4344_v54  ;;  %v2393_v18 = vmul.f32 0.2, %v4346_v57  ;;  %v2394_v7 = vmul.f32 0.2, %v4348_v59  ;;  %v2408_v31 = vsel %vm2336_vm11, %v4304_v10, %v2372_v63 }
 0x27b   :  { %v2395_v3 = vmul.f32 0.2, %v4350_v61  ;;  %v2396_v16 = vmul.f32 0.2, %v4352_v1  ;;  %vm4610_vm4 = vcmp.ge.f32.partialorder %v4300_v21, 0.0  ;;  %vm4611_vm5 = vcmp.ge.f32.partialorder %v4302_v30, 0.0 }
 0x27c   :  { %v2406_v56 = vsel %vm4610_vm4, %v4300_v21, %v2370_v39  ;;  %v2407_v14 = vsel %vm4611_vm5, %v4302_v30, %v2371_v55  ;;  %v2409_v4 = vsel %vm2337_vm12, %v4306_v13, %v2373_v23  ;;  %vm4612_vm6 = vcmp.ge.f32.partialorder %v4308_v12, 0.0  ;;  %v4626_v39 = vld [vmem:[#allocation2_spill] sm:$0xff]  ;;  %v4627_v55 = vld [vmem:[#allocation3_spill] sm:$0xff]  ;;  %v4629_v23 = vld [vmem:[#allocation5_spill] sm:$0xff] }
 0x27d   :  { %v2410_v0 = vsel %vm4612_vm6, %v4308_v12, %v2374_v38  ;;  %vm4613_vm7 = vcmp.ge.f32.partialorder %v4310_v15, 0.0  ;;  %vm4614_vm8 = vcmp.ge.f32.partialorder %v4312_v19, 0.0  ;;  %vm4615_vm4 = vcmp.ge.f32.partialorder %v4314_v20, 0.0 }
 0x27e   :  { %v2411_v21 = vsel %vm4613_vm7, %v4310_v15, %v2375_v48  ;;  %v2412_v30 = vsel %vm4614_vm8, %v4312_v19, %v2376_v11  ;;  %v2413_v10 = vsel %vm4615_vm4, %v4314_v20, %v2377_v50  ;;  %v2414_v13 = vsel %vm2342_vm10, %v4316_v22, %v2378_v62 }
 0x27f   :  { %vm4616_vm11 = vcmp.ge.f32.partialorder %v4318_v25, 0.0  ;;  %vm4617_vm12 = vcmp.ge.f32.partialorder %v4320_v26, 0.0  ;;  %vm4618_vm5 = vcmp.ge.f32.partialorder %v4322_v32, 0.0  ;;  %v2418_v20 = vsel %vm2346_vm9, %v4324_v33, %v2382_v17 }
 0x280   :  { %v2415_v12 = vsel %vm4616_vm11, %v4318_v25, %v2379_v28  ;;  %v2416_v15 = vsel %vm4617_vm12, %v4320_v26, %v2380_v8  ;;  %v2417_v19 = vsel %vm4618_vm5, %v4322_v32, %v2381_v47  ;;  %vm4619_vm6 = vcmp.ge.f32.partialorder %v4326_v35, 0.0 }
 0x281   :  { %v2419_v22 = vsel %vm4619_vm6, %v4326_v35, %v2383_v29  ;;  %vm4620_vm10 = vcmp.ge.f32.partialorder %v4328_v37, 0.0  ;;  %vm4621_vm7 = vcmp.ge.f32.partialorder %v4330_v42, 0.0  ;;  %v2422_v32 = vsel %vm2350_vm15, %v4332_v43, %v2386_v27 }
 0x282   :  { %v2420_v25 = vsel %vm4620_vm10, %v4328_v37, %v2384_v51  ;;  %v2421_v26 = vsel %vm4621_vm7, %v4330_v42, %v2385_v24  ;;  %vm4622_vm8 = vcmp.ge.f32.partialorder %v4334_v44, 0.0  ;;  %vm4623_vm9 = vcmp.ge.f32.partialorder %v4336_v45, 0.0 }
 0x283   :  { %v2423_v33 = vsel %vm4622_vm8, %v4334_v44, %v2387_v36  ;;  %v2424_v35 = vsel %vm4623_vm9, %v4336_v45, %v2388_v41  ;;  %vm4624_vm4 = vcmp.ge.f32.partialorder %v4338_v49, 0.0  ;;  %v2426_v42 = vsel %vm2354_vm14, %v4340_v52, %v2390_v53 }
 0x284   :  { %v2425_v37 = vsel %vm4624_vm4, %v4338_v49, %v2389_v46  ;;  %vm4625_vm11 = vcmp.ge.f32.partialorder %v4342_v34, 0.0  ;;  %v2428_v44 = vsel %vm2356_vm1, %v4344_v54, %v2392_v2  ;;  %v2429_v45 = vsel %vm2357_vm0, %v4346_v57, %v2393_v18  ;;  %v4628_v54 = vld [vmem:[#allocation4_spill] sm:$0xff] }
 0x285   :  { %v2427_v43 = vsel %vm4625_vm11, %v4342_v34, %v2391_v58  ;;  %v2430_v49 = vsel %vm2358_vm13, %v4348_v59, %v2394_v7  ;;  %v2431_v52 = vsel %vm2359_vm3, %v4350_v61, %v2395_v3  ;;  %v2432_v34 = vsel %vm2360_vm2, %v4352_v1, %v2396_v16 }
 0x286   :  { %v2901_v63 = vpack.c.bf16 %v4627_v55, %v4626_v39  ;;  %v2906_v38 = vpack.c.bf16 %v4629_v23, %v4628_v54  ;;  %v2911_v48 = vpack.c.bf16 %v2402_v5, %v2401_v60  ;;  %v2916_v57 = vpack.c.bf16 %v2404_v40, %v2403_v6 }
 0x287   :  { %v2921_v11 = vpack.c.bf16 %v2406_v56, %v2405_v9  ;;  %v2926_v50 = vpack.c.bf16 %v2408_v31, %v2407_v14  ;;  %v2931_v59 = vpack.c.bf16 %v2410_v0, %v2409_v4  ;;  %v2936_v61 = vpack.c.bf16 %v2412_v30, %v2411_v21 }
 0x288   :  { %2902 = vst [vmem:[%s4605_s5] sm:$0xff] %v2901_v63   ;;  %2988 = vst [vmem:[%s4605_s5 + $0x8] sm:$0xff] %v2906_v38   ;;  %v2941_v1 = vpack.c.bf16 %v2414_v13, %v2413_v10  ;;  %v2946_v16 = vpack.c.bf16 %v2416_v15, %v2415_v12  ;;  %v2951_v31 = vpack.c.bf16 %v2418_v20, %v2417_v19 }
 0x289   :  { %2989 = vst [vmem:[%s4605_s5 + $0x10] sm:$0xff] %v2911_v48   ;;  %2990 = vst [vmem:[%s4605_s5 + $0x18] sm:$0xff] %v2916_v57   ;;  %v2956_v3 = vpack.c.bf16 %v2420_v25, %v2419_v22  ;;  %v2961_v62 = vpack.c.bf16 %v2422_v32, %v2421_v26  ;;  %v2966_v18 = vpack.c.bf16 %v2424_v35, %v2423_v33 }
 0x28a   :  { %2991 = vst [vmem:[%s4605_s5 + $0x20] sm:$0xff] %v2921_v11   ;;  %2992 = vst [vmem:[%s4605_s5 + $0x28] sm:$0xff] %v2926_v50   ;;  %v2971_v28 = vpack.c.bf16 %v2426_v42, %v2425_v37  ;;  %v2976_v8 = vpack.c.bf16 %v2428_v44, %v2427_v43  ;;  %v2981_v47 = vpack.c.bf16 %v2430_v49, %v2429_v45 }
 0x28b   :  { %2993 = vst [vmem:[%s4605_s5 + $0x30] sm:$0xff] %v2931_v59   ;;  %2994 = vst [vmem:[%s4605_s5 + $0x38] sm:$0xff] %v2936_v61   ;;  %v2986_v60 = vpack.c.bf16 %v2432_v34, %v2431_v52 }
 0x28c   :  { %2995 = vst [vmem:[%s4605_s5 + $0x40] sm:$0xff] %v2941_v1   ;;  %2996 = vst [vmem:[%s4605_s5 + $0x48] sm:$0xff] %v2946_v16  }
 0x28d   :  { %2997 = vst [vmem:[%s4605_s5 + $0x50] sm:$0xff] %v2951_v31   ;;  %2998 = vst [vmem:[%s4605_s5 + $0x58] sm:$0xff] %v2956_v3  }
 0x28e   :  { %2999 = vst [vmem:[%s4605_s5 + $0x60] sm:$0xff] %v2961_v62   ;;  %3000 = vst [vmem:[%s4605_s5 + $0x68] sm:$0xff] %v2966_v18  }
 0x28f   :  { %3001 = vst [vmem:[%s4605_s5 + $0x70] sm:$0xff] %v2971_v28   ;;  %3002 = vst [vmem:[%s4605_s5 + $0x78] sm:$0xff] %v2976_v8  }
 0x290   :  { %3003 = vst [vmem:[%s4605_s5 + $0x80] sm:$0xff] %v2981_v47   ;;  %3004 = vst [vmem:[%s4605_s5 + $0x88] sm:$0xff] %v2986_v60  }

// kernel: tile.7
= control target key start
LH: loop header
LB: loop body
LE: loop exit
PB: predicated region body
PF: predicated region fallthrough
CT: control target
= control target key end

     0   :  { %s296_s0 = inlined_call_operand.vmem [shape: f32[2,36,256], index: 0, kind: input, shape index: {}]   ;;  %s297_s1 = inlined_call_operand.vmem [shape: f32[72,256], index: 1, kind: output, shape index: {}]  }
   0x1   :  { %v2_v0 = vld [vmem:[%s296_s0] sm:$0xff]   ;;  %v96_v1 = vld [vmem:[%s296_s0 + $0x8] sm:$0xff]   ;;  %v98_v2 = vld [vmem:[%s296_s0 + $0x10] sm:$0xff]  }
   0x2   :  { %3 = vst [vmem:[%s297_s1] sm:$0xff] %v2_v0   ;;  %97 = vst [vmem:[%s297_s1 + $0x8] sm:$0xff] %v96_v1   ;;  %v100_v3 = vld [vmem:[%s296_s0 + $0x18] sm:$0xff]   ;;  %v102_v4 = vld [vmem:[%s296_s0 + $0x20] sm:$0xff]  }
   0x3   :  { %99 = vst [vmem:[%s297_s1 + $0x10] sm:$0xff] %v98_v2   ;;  %v104_v5 = vld [vmem:[%s296_s0 + $0x28] sm:$0xff]   ;;  %101 = vst [vmem:[%s297_s1 + $0x18] sm:$0xff] %v100_v3   ;;  %v106_v6 = vld [vmem:[%s296_s0 + $0x30] sm:$0xff]  }
   0x4   :  { %103 = vst [vmem:[%s297_s1 + $0x20] sm:$0xff] %v102_v4   ;;  %105 = vst [vmem:[%s297_s1 + $0x28] sm:$0xff] %v104_v5   ;;  %v108_v7 = vld [vmem:[%s296_s0 + $0x38] sm:$0xff]   ;;  %v110_v8 = vld [vmem:[%s296_s0 + $0x40] sm:$0xf]  }
   0x5   :  { %107 = vst [vmem:[%s297_s1 + $0x30] sm:$0xff] %v106_v6   ;;  %109 = vst [vmem:[%s297_s1 + $0x38] sm:$0xff] %v108_v7   ;;  %v112_v9 = vld [vmem:[%s296_s0 + $0x48] sm:$0xf]   ;;  %v114_v10 = vld [vmem:[%s296_s0 + $0x50] sm:$0xff]  }
   0x6   :  { %111 = vst [vmem:[%s297_s1 + $0x40] sm:$0xf] %v110_v8   ;;  %v117_v11 = vld [vmem:[%s296_s0 + $0x58] sm:$0xff]   ;;  %113 = vst [vmem:[%s297_s1 + $0x48] sm:$0xf] %v112_v9   ;;  %v120_v12 = vld [vmem:[%s296_s0 + $0x60] sm:$0xff]  }
   0x7   :  { %115 = vst [vmem:[%s297_s1 + $0x44] sm:$0xf] %v114_v10   ;;  %116 = vst [vmem:[%s297_s1 + $0x4c] sm:$0xf0] %v114_v10   ;;  %v123_v13 = vld [vmem:[%s296_s0 + $0x68] sm:$0xff]   ;;  %v126_v14 = vld [vmem:[%s296_s0 + $0x70] sm:$0xff]  }
   0x8   :  { %118 = vst [vmem:[%s297_s1 + $0x4c] sm:$0xf] %v117_v11   ;;  %119 = vst [vmem:[%s297_s1 + $0x54] sm:$0xf0] %v117_v11   ;;  %v129_v15 = vld [vmem:[%s296_s0 + $0x78] sm:$0xff]   ;;  %v132_v16 = vld [vmem:[%s296_s0 + $0x80] sm:$0xff]  }
   0x9   :  { %121 = vst [vmem:[%s297_s1 + $0x54] sm:$0xf] %v120_v12   ;;  %122 = vst [vmem:[%s297_s1 + $0x5c] sm:$0xf0] %v120_v12   ;;  %v135_v17 = vld [vmem:[%s296_s0 + $0x88] sm:$0xff]  }
   0xa   :  { %124 = vst [vmem:[%s297_s1 + $0x5c] sm:$0xf] %v123_v13   ;;  %125 = vst [vmem:[%s297_s1 + $0x64] sm:$0xf0] %v123_v13   ;;  %v138_v18 = vld [vmem:[%s296_s0 + $0x90] sm:$0xf]  }
   0xb   :  { %127 = vst [vmem:[%s297_s1 + $0x64] sm:$0xf] %v126_v14   ;;  %128 = vst [vmem:[%s297_s1 + $0x6c] sm:$0xf0] %v126_v14   ;;  %v140_v19 = vld [vmem:[%s296_s0 + $0x98] sm:$0xf]  }
   0xc   :  { %130 = vst [vmem:[%s297_s1 + $0x6c] sm:$0xf] %v129_v15   ;;  %131 = vst [vmem:[%s297_s1 + $0x74] sm:$0xf0] %v129_v15  }
   0xd   :  { %133 = vst [vmem:[%s297_s1 + $0x74] sm:$0xf] %v132_v16   ;;  %134 = vst [vmem:[%s297_s1 + $0x7c] sm:$0xf0] %v132_v16  }
   0xe   :  { %136 = vst [vmem:[%s297_s1 + $0x7c] sm:$0xf] %v135_v17   ;;  %137 = vst [vmem:[%s297_s1 + $0x84] sm:$0xf0] %v135_v17  }
   0xf   :  { %139 = vst [vmem:[%s297_s1 + $0x84] sm:$0xf] %v138_v18   ;;  %141 = vst [vmem:[%s297_s1 + $0x8c] sm:$0xf] %v140_v19  }

// kernel: _lambda_.5
= control target key start
LH: loop header
LB: loop body
LE: loop exit
PB: predicated region body
PF: predicated region fallthrough
CT: control target
= control target key end

     0   :  { %s5321_s1 = inlined_call_operand.vmem [shape: bf16[2048,256], index: 1, kind: input, shape index: {}]   ;;  %s5322_s0 = inlined_call_operand.vmem [shape: bf16[72,2048], index: 0, kind: input, shape index: {}]   ;;  %s5323_s2 = inlined_call_operand.vmem [shape: f32[1,256], index: 2, kind: input, shape index: {}]   ;;  %s5324_s3 = inlined_call_operand.vmem [shape: f32[1,256], index: 3, kind: input, shape index: {}]   ;;  %s5325_s4 = inlined_call_operand.vmem [shape: f32[1,256], index: 4, kind: input, shape index: {}]   ;;  %s5326_s5 = inlined_call_operand.vmem [shape: f32[72,256], index: 5, kind: input, shape index: {}]   ;;  %s5327_s6 = inlined_call_operand.vmem [shape: f32[2,72], index: 6, kind: input, shape index: {}]   ;;  %s5328_s7 = inlined_call_operand.<no memory space> [shape: f32[1,1], index: 7, kind: input, shape index: {}]   ;;  %s5329_s8 = inlined_call_operand.vmem [shape: f32[2,1], index: 8, kind: output, shape index: {}]  }
   0x1   :  { %v3565_v0 = vld [vmem:[%s5321_s1 + $0x4] ss:$8 sps:$4 sm:$0xff]   ;;  %v3569_v2 = vld [vmem:[%s5321_s1] ss:$8 sps:$4 sm:$0xff]   ;;  %v3571_v4 = vld [vmem:[%s5321_s1 + $0x14] ss:$8 sps:$4 sm:$0xff]  }
   0x2   :  { %v3567_v1 = vld [vmem:[%s5321_s1 + $0x404] ss:$8 sps:$4 sm:$0xff]   ;;  %2027 = vmatprep.subr.bf16.mxu1 %v3565_v0  ;;  %v3570_v3 = vld [vmem:[%s5321_s1 + $0x400] ss:$8 sps:$4 sm:$0xff]   ;;  %v3573_v5 = vld [vmem:[%s5321_s1 + $0x414] ss:$8 sps:$4 sm:$0xff]  }
   0x3   :  { %2351 = vmatprep.subr.bf16.mxu0 %v3567_v1  ;;  %2028 = vmatpush1.bf16.msra.mxu1 %v3569_v2  ;;  %v3575_v6 = vld [vmem:[%s5321_s1 + $0x10] ss:$8 sps:$4 sm:$0xff]   ;;  %v3577_v8 = vld [vmem:[%s5321_s1 + $0x24] ss:$8 sps:$4 sm:$0xff]   ;;  %v3581_v10 = vld [vmem:[%s5321_s1 + $0x20] ss:$8 sps:$4 sm:$0xff]  }
   0x4   :  { %2352 = vmatpush1.bf16.msra.mxu0 %v3570_v3  ;;  %2029 = vmatprep.subr.bf16.mxu1 %v3571_v4  ;;  %v3576_v7 = vld [vmem:[%s5321_s1 + $0x410] ss:$8 sps:$4 sm:$0xff]   ;;  %v3579_v9 = vld [vmem:[%s5321_s1 + $0x424] ss:$8 sps:$4 sm:$0xff]   ;;  %v3582_v11 = vld [vmem:[%s5321_s1 + $0x420] ss:$8 sps:$4 sm:$0xff]  }
   0x5   :  { %2353 = vmatprep.subr.bf16.mxu0 %v3573_v5  ;;  %v3583_v12 = vld [vmem:[%s5321_s1 + $0x34] ss:$8 sps:$4 sm:$0xff]   ;;  %v3587_v14 = vld [vmem:[%s5321_s1 + $0x30] ss:$8 sps:$4 sm:$0xff]   ;;  %v3589_v16 = vld [vmem:[%s5321_s1 + $0x44] ss:$8 sps:$4 sm:$0xff]  }
   0x6   :  { %v3585_v13 = vld [vmem:[%s5321_s1 + $0x434] ss:$8 sps:$4 sm:$0xff]   ;;  %v3588_v15 = vld [vmem:[%s5321_s1 + $0x430] ss:$8 sps:$4 sm:$0xff]   ;;  %v3591_v17 = vld [vmem:[%s5321_s1 + $0x444] ss:$8 sps:$4 sm:$0xff]  }
   0x7   :  { %2030 = vmatpush1.bf16.msra.mxu1 %v3575_v6  ;;  %v3593_v18 = vld [vmem:[%s5321_s1 + $0x40] ss:$8 sps:$4 sm:$0xff]   ;;  %v3595_v20 = vld [vmem:[%s5321_s1 + $0x54] ss:$8 sps:$4 sm:$0xff]   ;;  %v3599_v22 = vld [vmem:[%s5321_s1 + $0x50] ss:$8 sps:$4 sm:$0xff]  }
   0x8   :  { %2354 = vmatpush1.bf16.msra.mxu0 %v3576_v7  ;;  %2031 = vmatprep.subr.bf16.mxu1 %v3577_v8  ;;  %v3594_v19 = vld [vmem:[%s5321_s1 + $0x440] ss:$8 sps:$4 sm:$0xff]   ;;  %v3597_v21 = vld [vmem:[%s5321_s1 + $0x454] ss:$8 sps:$4 sm:$0xff]   ;;  %v3600_v23 = vld [vmem:[%s5321_s1 + $0x450] ss:$8 sps:$4 sm:$0xff]  }
   0x9   :  { %2355 = vmatprep.subr.bf16.mxu0 %v3579_v9  ;;  %v3601_v24 = vld [vmem:[%s5321_s1 + $0x64] ss:$8 sps:$4 sm:$0xff]   ;;  %v3605_v26 = vld [vmem:[%s5321_s1 + $0x60] ss:$8 sps:$4 sm:$0xff]   ;;  %v3607_v28 = vld [vmem:[%s5321_s1 + $0x74] ss:$8 sps:$4 sm:$0xff]  }
   0xa   :  { %v3603_v25 = vld [vmem:[%s5321_s1 + $0x464] ss:$8 sps:$4 sm:$0xff]   ;;  %v3606_v27 = vld [vmem:[%s5321_s1 + $0x460] ss:$8 sps:$4 sm:$0xff]   ;;  %v3609_v29 = vld [vmem:[%s5321_s1 + $0x474] ss:$8 sps:$4 sm:$0xff]  }
   0xb   :  { %2032 = vmatpush1.bf16.msra.mxu1 %v3581_v10  ;;  %v3611_v30 = vld [vmem:[%s5321_s1 + $0x70] ss:$8 sps:$4 sm:$0xff]   ;;  %v3613_v32 = vld [vmem:[%s5321_s1 + $0x84] ss:$8 sps:$4 sm:$0xff]   ;;  %v3617_v34 = vld [vmem:[%s5321_s1 + $0x80] ss:$8 sps:$4 sm:$0xff]  }
   0xc   :  { %2356 = vmatpush1.bf16.msra.mxu0 %v3582_v11  ;;  %2033 = vmatprep.subr.bf16.mxu1 %v3583_v12  ;;  %v3612_v31 = vld [vmem:[%s5321_s1 + $0x470] ss:$8 sps:$4 sm:$0xff]   ;;  %v3615_v33 = vld [vmem:[%s5321_s1 + $0x484] ss:$8 sps:$4 sm:$0xff]   ;;  %v3618_v35 = vld [vmem:[%s5321_s1 + $0x480] ss:$8 sps:$4 sm:$0xff]  }
   0xd   :  { %2357 = vmatprep.subr.bf16.mxu0 %v3585_v13  ;;  %v3619_v36 = vld [vmem:[%s5321_s1 + $0x94] ss:$8 sps:$4 sm:$0xff]   ;;  %v3623_v38 = vld [vmem:[%s5321_s1 + $0x90] ss:$8 sps:$4 sm:$0xff]   ;;  %v3625_v40 = vld [vmem:[%s5321_s1 + $0xa4] ss:$8 sps:$4 sm:$0xff]  }
   0xe   :  { %v3621_v37 = vld [vmem:[%s5321_s1 + $0x494] ss:$8 sps:$4 sm:$0xff]   ;;  %v3624_v39 = vld [vmem:[%s5321_s1 + $0x490] ss:$8 sps:$4 sm:$0xff]   ;;  %v3627_v41 = vld [vmem:[%s5321_s1 + $0x4a4] ss:$8 sps:$4 sm:$0xff]  }
   0xf   :  { %2034 = vmatpush1.bf16.msra.mxu1 %v3587_v14  ;;  %v3629_v42 = vld [vmem:[%s5321_s1 + $0xa0] ss:$8 sps:$4 sm:$0xff]   ;;  %v3631_v44 = vld [vmem:[%s5321_s1 + $0xb4] ss:$8 sps:$4 sm:$0xff]   ;;  %v3635_v46 = vld [vmem:[%s5321_s1 + $0xb0] ss:$8 sps:$4 sm:$0xff]  }
  0x10   :  { %2358 = vmatpush1.bf16.msra.mxu0 %v3588_v15  ;;  %2035 = vmatprep.subr.bf16.mxu1 %v3589_v16  ;;  %v3630_v43 = vld [vmem:[%s5321_s1 + $0x4a0] ss:$8 sps:$4 sm:$0xff]   ;;  %v3633_v45 = vld [vmem:[%s5321_s1 + $0x4b4] ss:$8 sps:$4 sm:$0xff]   ;;  %v3636_v47 = vld [vmem:[%s5321_s1 + $0x4b0] ss:$8 sps:$4 sm:$0xff]  }
  0x11   :  { %2359 = vmatprep.subr.bf16.mxu0 %v3591_v17  ;;  %v31_v48 = vld [vmem:[%s5322_s0] sm:$0xff]  ;;  %v3643_v58 = vld [vmem:[%s5321_s1 + $0xd4] ss:$8 sps:$4 sm:$0xff]   ;;  %v3647_v60 = vld [vmem:[%s5321_s1 + $0xd0] ss:$8 sps:$4 sm:$0xff]  }
  0x12   :  { %v39_v49 = vld [vmem:[%s5322_s0 + $0x40] sm:$0xff]  ;;  %v3645_v59 = vld [vmem:[%s5321_s1 + $0x4d4] ss:$8 sps:$4 sm:$0xff]   ;;  %v3648_v61 = vld [vmem:[%s5321_s1 + $0x4d0] ss:$8 sps:$4 sm:$0xff]  }
  0x13   :  { %2036 = vmatpush1.bf16.msra.mxu1 %v3593_v18  ;;  %v3637_v50 = vld [vmem:[%s5321_s1 + $0xc4] ss:$8 sps:$4 sm:$0xff]   ;;  %v3054_v52 = vcombine.high %v31_v48, %v39_v49  ;;  %v3641_v56 = vld [vmem:[%s5321_s1 + $0xc0] ss:$8 sps:$4 sm:$0xff]   ;;  %v3655_v2 = vld [vmem:[%s5321_s1 + $0xf4] ss:$8 sps:$4 sm:$0xff]   ;;  %v3053_v8 = vcombine.low %v31_v48, %v39_v49 }
  0x14   :  { %2360 = vmatpush1.bf16.msra.mxu0 %v3594_v19  ;;  %2037 = vmatprep.subr.bf16.mxu1 %v3595_v20  ;;  %v3639_v51 = vld [vmem:[%s5321_s1 + $0x4c4] ss:$8 sps:$4 sm:$0xff]   ;;  %v3642_v57 = vld [vmem:[%s5321_s1 + $0x4c0] ss:$8 sps:$4 sm:$0xff]   ;;  %v3657_v3 = vld [vmem:[%s5321_s1 + $0x4f4] ss:$8 sps:$4 sm:$0xff]  }
  0x15   :  { %2361 = vmatprep.subr.bf16.mxu0 %v3597_v21  ;;  %v35_v53 = vld [vmem:[%s5322_s0 + $0x20] sm:$0xff]  ;;  %2059 = vmatprep.mubr.bf16.mxu1 %v3054_v52  ;;  %v3659_v4 = vld [vmem:[%s5321_s1 + $0xf0] ss:$8 sps:$4 sm:$0xff]   ;;  %v3669_v12 = vld [vmem:[%s5321_s1 + $0x114] ss:$8 sps:$4 sm:$0xff]  }
  0x16   :  { %v43_v54 = vld [vmem:[%s5322_s0 + $0x60] sm:$0xff]  ;;  %v3660_v5 = vld [vmem:[%s5321_s1 + $0x4f0] ss:$8 sps:$4 sm:$0xff]   ;;  %v3672_v13 = vld [vmem:[%s5321_s1 + $0x514] ss:$8 sps:$4 sm:$0xff]  }
  0x17   :  { %2038 = vmatpush1.bf16.msra.mxu1 %v3599_v22  ;;  %v3062_v55 = vcombine.high %v35_v53, %v43_v54  ;;  %v3649_v62 = vld [vmem:[%s5321_s1 + $0xe4] ss:$8 sps:$4 sm:$0xff]   ;;  %v3653_v0 = vld [vmem:[%s5321_s1 + $0xe0] ss:$8 sps:$4 sm:$0xff]   ;;  %v3061_v10 = vcombine.low %v35_v53, %v43_v54  ;;  %v3667_v16 = vld [vmem:[%s5321_s1 + $0x110] ss:$8 sps:$4 sm:$0xff]  }
  0x18   :  { %2362 = vmatpush1.bf16.msra.mxu0 %v3600_v23  ;;  %2039 = vmatprep.subr.bf16.mxu1 %v3601_v24  ;;  %v3651_v63 = vld [vmem:[%s5321_s1 + $0x4e4] ss:$8 sps:$4 sm:$0xff]   ;;  %v3654_v1 = vld [vmem:[%s5321_s1 + $0x4e0] ss:$8 sps:$4 sm:$0xff]   ;;  %v3670_v18 = vld [vmem:[%s5321_s1 + $0x510] ss:$8 sps:$4 sm:$0xff]  }
  0x19   :  { %2363 = vmatprep.subr.bf16.mxu0 %v3603_v25  ;;  %2383 = vmatprep.mubr.bf16.mxu0 %v3062_v55  ;;  %v3663_v6 = vld [vmem:[%s5321_s1 + $0x104] ss:$8 sps:$4 sm:$0xff]   ;;  %v3661_v9 = vld [vmem:[%s5321_s1 + $0x100] ss:$8 sps:$4 sm:$0xff]   ;;  %v3691_v52 = vld [vmem:[%s5321_s1 + $0x150] ss:$8 sps:$4 sm:$0xff]  }
  0x1a   :  { %v3666_v7 = vld [vmem:[%s5321_s1 + $0x504] ss:$8 sps:$4 sm:$0xff]   ;;  %v3664_v11 = vld [vmem:[%s5321_s1 + $0x500] ss:$8 sps:$4 sm:$0xff]   ;;  %v3694_v53 = vld [vmem:[%s5321_s1 + $0x550] ss:$8 sps:$4 sm:$0xff]  }
  0x1b   :  { %2040 = vmatpush1.bf16.msra.mxu1 %v3605_v26  ;;  %v47_v14 = vld [vmem:[%s5322_s0 + $0x80] sm:$0xff] }
  0x1c   :  { %2364 = vmatpush1.bf16.msra.mxu0 %v3606_v27  ;;  %2041 = vmatprep.subr.bf16.mxu1 %v3607_v28  ;;  %v55_v15 = vld [vmem:[%s5322_s0 + $0xc0] sm:$0xff] }
  0x1d   :  { %2365 = vmatprep.subr.bf16.mxu0 %v3609_v29  ;;  %v3070_v17 = vcombine.high %v47_v14, %v55_v15  ;;  %v51_v19 = vld [vmem:[%s5322_s0 + $0xa0] sm:$0xff]  ;;  %v3069_v26 = vcombine.low %v47_v14, %v55_v15  ;;  %v3717_v14 = vld [vmem:[%s5321_s1 + $0x194] ss:$8 sps:$4 sm:$0xff]  }
  0x1e   :  { %v59_v20 = vld [vmem:[%s5322_s0 + $0xe0] sm:$0xff]  ;;  %v3720_v15 = vld [vmem:[%s5321_s1 + $0x594] ss:$8 sps:$4 sm:$0xff]  }
  0x1f   :  { %2042 = vmatpush1.bf16.msra.mxu1 %v3611_v30  ;;  %v3675_v21 = vld [vmem:[%s5321_s1 + $0x124] ss:$8 sps:$4 sm:$0xff]   ;;  %v3078_v22 = vcombine.high %v51_v19, %v59_v20  ;;  %v3673_v24 = vld [vmem:[%s5321_s1 + $0x120] ss:$8 sps:$4 sm:$0xff]   ;;  %v3077_v27 = vcombine.low %v51_v19, %v59_v20  ;;  %v3681_v30 = vld [vmem:[%s5321_s1 + $0x134] ss:$8 sps:$4 sm:$0xff]  }
  0x20   :  { %2366 = vmatpush1.bf16.msra.mxu0 %v3612_v31  ;;  %2043 = vmatprep.subr.bf16.mxu1 %v3613_v32  ;;  %v3678_v23 = vld [vmem:[%s5321_s1 + $0x524] ss:$8 sps:$4 sm:$0xff]   ;;  %v3676_v25 = vld [vmem:[%s5321_s1 + $0x520] ss:$8 sps:$4 sm:$0xff]   ;;  %v3684_v31 = vld [vmem:[%s5321_s1 + $0x534] ss:$8 sps:$4 sm:$0xff]  }
  0x21   :  { %2367 = vmatprep.subr.bf16.mxu0 %v3615_v33  ;;  %v63_v28 = vld [vmem:[%s5322_s0 + $0x100] sm:$0xff]  ;;  %v3718_v19 = vld [vmem:[%s5321_s1 + $0x590] ss:$8 sps:$4 sm:$0xff]  }
  0x22   :  { %v71_v29 = vld [vmem:[%s5322_s0 + $0x140] sm:$0xff] }
  0x23   :  { %2044 = vmatpush1.bf16.msra.mxu1 %v3617_v34  ;;  %v3086_v32 = vcombine.high %v63_v28, %v71_v29  ;;  %v67_v33 = vld [vmem:[%s5322_s0 + $0x120] sm:$0xff] }
  0x24   :  { %2368 = vmatpush1.bf16.msra.mxu0 %v3618_v35  ;;  %2045 = vmatprep.subr.bf16.mxu1 %v3619_v36  ;;  %v75_v34 = vld [vmem:[%s5322_s0 + $0x160] sm:$0xff]  ;;  %v3679_v35 = vld [vmem:[%s5321_s1 + $0x130] ss:$8 sps:$4 sm:$0xff]  }
  0x25   :  { %2369 = vmatprep.subr.bf16.mxu0 %v3621_v37  ;;  %v3682_v36 = vld [vmem:[%s5321_s1 + $0x530] ss:$8 sps:$4 sm:$0xff]   ;;  %v3094_v37 = vcombine.high %v67_v33, %v75_v34  ;;  %v83_v48 = vld [vmem:[%s5322_s0 + $0x1a0] sm:$0xff] }
  0x26   :  { %v91_v49 = vld [vmem:[%s5322_s0 + $0x1e0] sm:$0xff] }
  0x27   :  { %2046 = vmatpush1.bf16.msra.mxu1 %v3623_v38  ;;  %v3687_v38 = vld [vmem:[%s5321_s1 + $0x144] ss:$8 sps:$4 sm:$0xff]  }
  0x28   :  { %2370 = vmatpush1.bf16.msra.mxu0 %v3624_v39  ;;  %2047 = vmatprep.subr.bf16.mxu1 %v3625_v40  ;;  %v3690_v39 = vld [vmem:[%s5321_s1 + $0x544] ss:$8 sps:$4 sm:$0xff]   ;;  %v3685_v40 = vld [vmem:[%s5321_s1 + $0x140] ss:$8 sps:$4 sm:$0xff]  }
  0x29   :  { %2371 = vmatprep.subr.bf16.mxu0 %v3627_v41  ;;  %v3688_v41 = vld [vmem:[%s5321_s1 + $0x540] ss:$8 sps:$4 sm:$0xff]   ;;  %v3699_v54 = vld [vmem:[%s5321_s1 + $0x164] ss:$8 sps:$4 sm:$0xff]  }
  0x2a   :  { %v3702_v55 = vld [vmem:[%s5321_s1 + $0x564] ss:$8 sps:$4 sm:$0xff]  }
  0x2b   :  { %2048 = vmatpush1.bf16.msra.mxu1 %v3629_v42  ;;  %v79_v42 = vld [vmem:[%s5322_s0 + $0x180] sm:$0xff] }
  0x2c   :  { %2372 = vmatpush1.bf16.msra.mxu0 %v3630_v43  ;;  %2049 = vmatprep.subr.bf16.mxu1 %v3631_v44  ;;  %v3085_v43 = vcombine.low %v63_v28, %v71_v29  ;;  %v3093_v44 = vcombine.low %v67_v33, %v75_v34  ;;  %v3723_v20 = vld [vmem:[%s5321_s1 + $0x1a4] ss:$8 sps:$4 sm:$0xff]   ;;  %v3744_v33 = vld [vmem:[%s5321_s1 + $0x5d4] ss:$8 sps:$4 sm:$0xff]   ;;  %v3739_v34 = vld [vmem:[%s5321_s1 + $0x1d0] ss:$8 sps:$4 sm:$0xff]  }
  0x2d   :  { %2373 = vmatprep.subr.bf16.mxu0 %v3633_v45  ;;  %v87_v45 = vld [vmem:[%s5322_s0 + $0x1c0] sm:$0xff] }
  0x2e   :  { %v3735_v28 = vld [vmem:[%s5321_s1 + $0x1c4] ss:$8 sps:$4 sm:$0xff]  }
  0x2f   :  { %2050 = vmatpush1.bf16.msra.mxu1 %v3635_v46  ;;  %v3693_v46 = vld [vmem:[%s5321_s1 + $0x154] ss:$8 sps:$4 sm:$0xff]   ;;  %v3738_v29 = vld [vmem:[%s5321_s1 + $0x5c4] ss:$8 sps:$4 sm:$0xff]  }
  0x30   :  { %2374 = vmatpush1.bf16.msra.mxu0 %v3636_v47  ;;  %2051 = vmatprep.subr.bf16.mxu1 %v3637_v50  ;;  %v3696_v47 = vld [vmem:[%s5321_s1 + $0x554] ss:$8 sps:$4 sm:$0xff]   ;;  %v3102_v50 = vcombine.high %v79_v42, %v87_v45 }
  0x31   :  { %2375 = vmatprep.subr.bf16.mxu0 %v3639_v51  ;;  %v3110_v51 = vcombine.high %v83_v48, %v91_v49 }
  0x33   :  { %2052 = vmatpush1.bf16.msra.mxu1 %v3641_v56  ;;  %v95_v56 = vld [vmem:[%s5322_s0 + $0x200] sm:$0xff] }
  0x34   :  { %2376 = vmatpush1.bf16.msra.mxu0 %v3642_v57  ;;  %2053 = vmatprep.subr.bf16.mxu1 %v3643_v58  ;;  %v3101_v57 = vcombine.low %v79_v42, %v87_v45  ;;  %v3109_v58 = vcombine.low %v83_v48, %v91_v49  ;;  %v3755_v42 = vld [vmem:[%s5321_s1 + $0x1f0] ss:$8 sps:$4 sm:$0xff]   ;;  %v3766_v45 = vld [vmem:[%s5321_s1 + $0x604] ss:$8 sps:$4 sm:$0xff]  }
  0x35   :  { %2377 = vmatprep.subr.bf16.mxu0 %v3645_v59  ;;  %v99_v59 = vld [vmem:[%s5322_s0 + $0x220] sm:$0xff] }
  0x37   :  { %2054 = vmatpush1.bf16.msra.mxu1 %v3647_v60  ;;  %v3697_v60 = vld [vmem:[%s5321_s1 + $0x160] ss:$8 sps:$4 sm:$0xff]  }
  0x38   :  { %2378 = vmatpush1.bf16.msra.mxu0 %v3648_v61  ;;  %2055 = vmatprep.subr.bf16.mxu1 %v3649_v62  ;;  %v3700_v61 = vld [vmem:[%s5321_s1 + $0x560] ss:$8 sps:$4 sm:$0xff]   ;;  %v3705_v62 = vld [vmem:[%s5321_s1 + $0x174] ss:$8 sps:$4 sm:$0xff]  }
  0x39   :  { %2379 = vmatprep.subr.bf16.mxu0 %v3651_v63  ;;  %v3708_v63 = vld [vmem:[%s5321_s1 + $0x574] ss:$8 sps:$4 sm:$0xff]  }
  0x3b   :  { %2056 = vmatpush1.bf16.msra.mxu1 %v3653_v0  ;;  %v3118_v0 = vcombine.high %v95_v56, %v95_v56 }
  0x3c   :  { %2380 = vmatpush1.bf16.msra.mxu0 %v3654_v1  ;;  %2057 = vmatprep.subr.bf16.mxu1 %v3655_v2  ;;  %v3126_v1 = vcombine.high %v99_v59, %v99_v59  ;;  %v3703_v2 = vld [vmem:[%s5321_s1 + $0x170] ss:$8 sps:$4 sm:$0xff]  }
  0x3d   :  { %2381 = vmatprep.subr.bf16.mxu0 %v3657_v3  ;;  %v3706_v3 = vld [vmem:[%s5321_s1 + $0x570] ss:$8 sps:$4 sm:$0xff]  }
  0x3f   :  { %2058 = vmatpush1.bf16.msra.mxu1 %v3659_v4  ;;  %v3711_v4 = vld [vmem:[%s5321_s1 + $0x184] ss:$8 sps:$4 sm:$0xff]  }
  0x40   :  { %2382 = vmatpush1.bf16.msra.mxu0 %v3660_v5  ;;  %2108 = vmatprep.subr.bf16.mxu1 %v3663_v6  ;;  %v3714_v5 = vld [vmem:[%s5321_s1 + $0x584] ss:$8 sps:$4 sm:$0xff]  }
  0x41   :  { %2432 = vmatprep.subr.bf16.mxu0 %v3666_v7  ;;  %v4371_v6 = vld [vmem:[%s5322_s0 + $0x8] sm:$0xff] }
  0x42   :  { %2060 = vmatmul.mubr.bf16.vlgmr.msra.gmra.mrb[0].mxu1 %v3053_v8  ;;  %v4376_v7 = vld [vmem:[%s5322_s0 + $0x48] sm:$0xff] }
  0x43   :  { %2384 = vmatmul.mubr.bf16.vlgmr.msra.gmra.mrb[0].mxu0 %v3061_v10  ;;  %2109 = vmatpush1.bf16.msra.mxu1 %v3661_v9  ;;  %v4381_v8 = vld [vmem:[%s5322_s0 + $0x28] sm:$0xff]  ;;  %v3117_v9 = vcombine.low %v95_v56, %v95_v56  ;;  %v3125_v10 = vcombine.low %v99_v59, %v99_v59  ;;  %v3055_v48 = vcombine.low %v4371_v6, %v4376_v7  ;;  %v3770_v59 = vld [vmem:[%s5321_s1 + $0x610] ss:$8 sps:$4 sm:$0xff]  }
  0x44   :  { %2433 = vmatpush1.bf16.msra.mxu0 %v3664_v11  ;;  %2110 = vmatprep.subr.bf16.mxu1 %v3669_v12  ;;  %v4386_v11 = vld [vmem:[%s5322_s0 + $0x68] sm:$0xff] }
  0x45   :  { %2434 = vmatprep.subr.bf16.mxu0 %v3672_v13  ;;  %2069 = vmatprep.mubr.bf16.mxu1 %v3070_v17  ;;  %v3709_v12 = vld [vmem:[%s5321_s1 + $0x180] ss:$8 sps:$4 sm:$0xff]   ;;  %v3064_v17 = vcombine.high %v4381_v8, %v4386_v11  ;;  %v3063_v49 = vcombine.low %v4381_v8, %v4386_v11  ;;  %v3782_v11 = vld [vmem:[%s5321_s1 + $0x630] ss:$8 sps:$4 sm:$0xff]  }
  0x46   :  { %2393 = vmatprep.mubr.bf16.mxu0 %v3078_v22  ;;  %v3712_v13 = vld [vmem:[%s5321_s1 + $0x580] ss:$8 sps:$4 sm:$0xff]  }
  0x47   :  { %2111 = vmatpush1.bf16.msra.mxu1 %v3667_v16  ;;  %v3056_v16 = vcombine.high %v4371_v6, %v4376_v7  ;;  %v3721_v22 = vld [vmem:[%s5321_s1 + $0x1a0] ss:$8 sps:$4 sm:$0xff]   ;;  %v3781_v6 = vld [vmem:[%s5321_s1 + $0x234] ss:$8 sps:$4 sm:$0xff]  }
  0x48   :  { %2435 = vmatpush1.bf16.msra.mxu0 %v3670_v18  ;;  %2112 = vmatprep.subr.bf16.mxu1 %v3675_v21  ;;  %v3715_v18 = vld [vmem:[%s5321_s1 + $0x190] ss:$8 sps:$4 sm:$0xff]   ;;  %v3726_v21 = vld [vmem:[%s5321_s1 + $0x5a4] ss:$8 sps:$4 sm:$0xff]   ;;  %v3784_v7 = vld [vmem:[%s5321_s1 + $0x634] ss:$8 sps:$4 sm:$0xff]  }
  0x49   :  { %2436 = vmatprep.subr.bf16.mxu0 %v3678_v23  ;;  %v3724_v23 = vld [vmem:[%s5321_s1 + $0x5a0] ss:$8 sps:$4 sm:$0xff]  }
  0x4a   :  { %2070 = vmatmul.mubr.bf16.gmra.mrb[4].mxu1 %v3069_v26  ;;  %v3727_v26 = vld [vmem:[%s5321_s1 + $0x1b0] ss:$8 sps:$4 sm:$0xff]  }
  0x4b   :  { %2394 = vmatmul.mubr.bf16.gmra.mrb[4].mxu0 %v3077_v27  ;;  %2113 = vmatpush1.bf16.msra.mxu1 %v3673_v24  ;;  %v3729_v24 = vld [vmem:[%s5321_s1 + $0x1b4] ss:$8 sps:$4 sm:$0xff]   ;;  %v3730_v27 = vld [vmem:[%s5321_s1 + $0x5b0] ss:$8 sps:$4 sm:$0xff]  }
  0x4c   :  { %2437 = vmatpush1.bf16.msra.mxu0 %v3676_v25  ;;  %2114 = vmatprep.subr.bf16.mxu1 %v3681_v30  ;;  %v3732_v25 = vld [vmem:[%s5321_s1 + $0x5b4] ss:$8 sps:$4 sm:$0xff]   ;;  %v3733_v30 = vld [vmem:[%s5321_s1 + $0x1c0] ss:$8 sps:$4 sm:$0xff]  }
  0x4d   :  { %2438 = vmatprep.subr.bf16.mxu0 %v3684_v31  ;;  %2079 = vmatprep.mubr.bf16.mxu1 %v3086_v32  ;;  %v3736_v31 = vld [vmem:[%s5321_s1 + $0x5c0] ss:$8 sps:$4 sm:$0xff]   ;;  %v3741_v32 = vld [vmem:[%s5321_s1 + $0x1d4] ss:$8 sps:$4 sm:$0xff]  }
  0x4e   :  { %2403 = vmatprep.mubr.bf16.mxu0 %v3094_v37  ;;  %v3752_v37 = vld [vmem:[%s5321_s1 + $0x5e4] ss:$8 sps:$4 sm:$0xff]  }
  0x4f   :  { %2115 = vmatpush1.bf16.msra.mxu1 %v3679_v35  ;;  %v3742_v35 = vld [vmem:[%s5321_s1 + $0x5d0] ss:$8 sps:$4 sm:$0xff]  }
  0x50   :  { %2439 = vmatpush1.bf16.msra.mxu0 %v3682_v36  ;;  %2116 = vmatprep.subr.bf16.mxu1 %v3687_v38  ;;  %v3748_v36 = vld [vmem:[%s5321_s1 + $0x1e4] ss:$8 sps:$4 sm:$0xff]   ;;  %v3746_v38 = vld [vmem:[%s5321_s1 + $0x1e0] ss:$8 sps:$4 sm:$0xff]  }
  0x51   :  { %2440 = vmatprep.subr.bf16.mxu0 %v3690_v39  ;;  %v3750_v39 = vld [vmem:[%s5321_s1 + $0x5e0] ss:$8 sps:$4 sm:$0xff]  }
  0x52   :  { %2080 = vmatmul.mubr.bf16.gmra.mrb[8].mxu1 %v3085_v43  ;;  %v3758_v43 = vld [vmem:[%s5321_s1 + $0x5f0] ss:$8 sps:$4 sm:$0xff]  }
  0x53   :  { %2404 = vmatmul.mubr.bf16.gmra.mrb[8].mxu0 %v3093_v44  ;;  %2117 = vmatpush1.bf16.msra.mxu1 %v3685_v40  ;;  %v3757_v40 = vld [vmem:[%s5321_s1 + $0x1f4] ss:$8 sps:$4 sm:$0xff]   ;;  %v3763_v44 = vld [vmem:[%s5321_s1 + $0x204] ss:$8 sps:$4 sm:$0xff]  }
  0x54   :  { %2441 = vmatpush1.bf16.msra.mxu0 %v3688_v41  ;;  %2118 = vmatprep.subr.bf16.mxu1 %v3693_v46  ;;  %v3760_v41 = vld [vmem:[%s5321_s1 + $0x5f4] ss:$8 sps:$4 sm:$0xff]   ;;  %v3761_v46 = vld [vmem:[%s5321_s1 + $0x200] ss:$8 sps:$4 sm:$0xff]  }
  0x55   :  { %2442 = vmatprep.subr.bf16.mxu0 %v3696_v47  ;;  %2089 = vmatprep.mubr.bf16.mxu1 %v3102_v50  ;;  %v48_v47 = vld [vmem:[%s5322_s0 + $0x88] sm:$0xff] }
  0x56   :  { %2413 = vmatprep.mubr.bf16.mxu0 %v3110_v51  ;;  %v56_v50 = vld [vmem:[%s5322_s0 + $0xc8] sm:$0xff] }
  0x57   :  { %2119 = vmatpush1.bf16.msra.mxu1 %v3691_v52  ;;  %v52_v51 = vld [vmem:[%s5322_s0 + $0xa8] sm:$0xff]  ;;  %v3072_v56 = vcombine.high %v48_v47, %v56_v50 }
  0x58   :  { %2443 = vmatpush1.bf16.msra.mxu0 %v3694_v53  ;;  %2120 = vmatprep.subr.bf16.mxu1 %v3699_v54  ;;  %v60_v52 = vld [vmem:[%s5322_s0 + $0xe8] sm:$0xff]  ;;  %v3769_v54 = vld [vmem:[%s5321_s1 + $0x214] ss:$8 sps:$4 sm:$0xff]  }
  0x59   :  { %2444 = vmatprep.subr.bf16.mxu0 %v3702_v55  ;;  %v3764_v53 = vld [vmem:[%s5321_s1 + $0x600] ss:$8 sps:$4 sm:$0xff]   ;;  %v3772_v55 = vld [vmem:[%s5321_s1 + $0x614] ss:$8 sps:$4 sm:$0xff]  }
  0x5a   :  { %2090 = vmatmul.mubr.bf16.gmra.mrb[12].mxu1 %v3101_v57  ;;  %v3080_v57 = vcombine.high %v52_v51, %v60_v52 }
  0x5b   :  { %2414 = vmatmul.mubr.bf16.gmra.mrb[12].mxu0 %v3109_v58  ;;  %2121 = vmatpush1.bf16.msra.mxu1 %v3697_v60  ;;  %v3767_v58 = vld [vmem:[%s5321_s1 + $0x210] ss:$8 sps:$4 sm:$0xff]   ;;  %v3775_v60 = vld [vmem:[%s5321_s1 + $0x224] ss:$8 sps:$4 sm:$0xff]  }
  0x5c   :  { %2445 = vmatpush1.bf16.msra.mxu0 %v3700_v61  ;;  %2122 = vmatprep.subr.bf16.mxu1 %v3705_v62  ;;  %v3778_v61 = vld [vmem:[%s5321_s1 + $0x624] ss:$8 sps:$4 sm:$0xff]   ;;  %v3773_v62 = vld [vmem:[%s5321_s1 + $0x220] ss:$8 sps:$4 sm:$0xff]  }
  0x5d   :  { %2446 = vmatprep.subr.bf16.mxu0 %v3708_v63  ;;  %2099 = vmatprep.mubr.bf16.mxu1 %v3118_v0  ;;  %v3776_v63 = vld [vmem:[%s5321_s1 + $0x620] ss:$8 sps:$4 sm:$0xff]  }
  0x5e   :  { %2423 = vmatprep.mubr.bf16.mxu0 %v3126_v1  ;;  %v64_v0 = vld [vmem:[%s5322_s0 + $0x108] sm:$0xff]  ;;  %v3071_v1 = vcombine.low %v48_v47, %v56_v50  ;;  %v4644_v47 = vld [vmem:[%s5322_s0 + $0x50] sm:$0xff] }
  0x5f   :  { %2123 = vmatpush1.bf16.msra.mxu1 %v3703_v2  ;;  %v3079_v2 = vcombine.low %v52_v51, %v60_v52  ;;  %v4649_v50 = vld [vmem:[%s5322_s0 + $0x30] sm:$0xff] }
  0x60   :  { %2447 = vmatpush1.bf16.msra.mxu0 %v3706_v3  ;;  %2124 = vmatprep.subr.bf16.mxu1 %v3711_v4  ;;  %v72_v3 = vld [vmem:[%s5322_s0 + $0x148] sm:$0xff]  ;;  %v4654_v51 = vld [vmem:[%s5322_s0 + $0x70] sm:$0xff] }
  0x61   :  { %2448 = vmatprep.subr.bf16.mxu0 %v3714_v5  ;;  %v68_v4 = vld [vmem:[%s5322_s0 + $0x128] sm:$0xff]  ;;  %v3088_v8 = vcombine.high %v64_v0, %v72_v3  ;;  %v3817_v52 = vld [vmem:[%s5321_s1 + $0x294] ss:$8 sps:$4 sm:$0xff]  }
  0x62   :  { %2100 = vmatmul.mubr.bf16.gmra.mrb[16].mxu1 %v3117_v9  ;;  %v76_v5 = vld [vmem:[%s5322_s0 + $0x168] sm:$0xff] }
  0x63   :  { %2424 = vmatmul.mubr.bf16.gmra.mrb[16].mxu0 %v3125_v10  ;;  %2125 = vmatpush1.bf16.msra.mxu1 %v3709_v12  ;;  %v3096_v9 = vcombine.high %v68_v4, %v76_v5  ;;  %v3779_v10 = vld [vmem:[%s5321_s1 + $0x230] ss:$8 sps:$4 sm:$0xff]   ;;  %v3787_v12 = vld [vmem:[%s5321_s1 + $0x244] ss:$8 sps:$4 sm:$0xff]  }
  0x64   :  { %2449 = vmatpush1.bf16.msra.mxu0 %v3712_v13  ;;  %2126 = vmatprep.subr.bf16.mxu1 %v3717_v14  ;;  %v3790_v13 = vld [vmem:[%s5321_s1 + $0x644] ss:$8 sps:$4 sm:$0xff]   ;;  %v3785_v14 = vld [vmem:[%s5321_s1 + $0x240] ss:$8 sps:$4 sm:$0xff]  }
  0x65   :  { %2450 = vmatprep.subr.bf16.mxu0 %v3720_v15  ;;  %2140 = vmatprep.mubr.bf16.mxu1 %v3056_v16  ;;  %v3788_v15 = vld [vmem:[%s5321_s1 + $0x640] ss:$8 sps:$4 sm:$0xff]  }
  0x66   :  { %2464 = vmatprep.mubr.bf16.mxu0 %v3064_v17  ;;  %v80_v16 = vld [vmem:[%s5322_s0 + $0x188] sm:$0xff] }
  0x67   :  { %2127 = vmatpush1.bf16.msra.mxu1 %v3715_v18  ;;  %v88_v17 = vld [vmem:[%s5322_s0 + $0x1c8] sm:$0xff]  ;;  %v3087_v18 = vcombine.low %v64_v0, %v72_v3  ;;  %v3827_v0 = vld [vmem:[%s5321_s1 + $0x2b0] ss:$8 sps:$4 sm:$0xff]  }
  0x68   :  { %2451 = vmatpush1.bf16.msra.mxu0 %v3718_v19  ;;  %2128 = vmatprep.subr.bf16.mxu1 %v3723_v20  ;;  %v3095_v19 = vcombine.low %v68_v4, %v76_v5  ;;  %v84_v20 = vld [vmem:[%s5322_s0 + $0x1a8] sm:$0xff] }
  0x69   :  { %2452 = vmatprep.subr.bf16.mxu0 %v3726_v21  ;;  %v92_v21 = vld [vmem:[%s5322_s0 + $0x1e8] sm:$0xff] }
  0x6a   :  { %v3838_v3 = vld [vmem:[%s5321_s1 + $0x6c4] ss:$8 sps:$4 sm:$0xff]   ;;  %v3833_v4 = vld [vmem:[%s5321_s1 + $0x2c0] ss:$8 sps:$4 sm:$0xff]  }
  0x6b   :  { %2129 = vmatpush1.bf16.msra.mxu1 %v3721_v22  ;;  %v3793_v22 = vld [vmem:[%s5321_s1 + $0x254] ss:$8 sps:$4 sm:$0xff]   ;;  %v3836_v5 = vld [vmem:[%s5321_s1 + $0x6c0] ss:$8 sps:$4 sm:$0xff]  }
  0x6c   :  { %2453 = vmatpush1.bf16.msra.mxu0 %v3724_v23  ;;  %2130 = vmatprep.subr.bf16.mxu1 %v3729_v24  ;;  %v3796_v23 = vld [vmem:[%s5321_s1 + $0x654] ss:$8 sps:$4 sm:$0xff]   ;;  %v3104_v24 = vcombine.high %v80_v16, %v88_v17 }
  0x6d   :  { %2454 = vmatprep.subr.bf16.mxu0 %v3732_v25  ;;  %v3112_v25 = vcombine.high %v84_v20, %v92_v21 }
  0x6f   :  { %2131 = vmatpush1.bf16.msra.mxu1 %v3727_v26  ;;  %v3791_v26 = vld [vmem:[%s5321_s1 + $0x250] ss:$8 sps:$4 sm:$0xff]  }
  0x70   :  { %2455 = vmatpush1.bf16.msra.mxu0 %v3730_v27  ;;  %2132 = vmatprep.subr.bf16.mxu1 %v3735_v28  ;;  %v3794_v27 = vld [vmem:[%s5321_s1 + $0x650] ss:$8 sps:$4 sm:$0xff]   ;;  %v3799_v28 = vld [vmem:[%s5321_s1 + $0x264] ss:$8 sps:$4 sm:$0xff]  }
  0x71   :  { %2456 = vmatprep.subr.bf16.mxu0 %v3738_v29  ;;  %v3802_v29 = vld [vmem:[%s5321_s1 + $0x664] ss:$8 sps:$4 sm:$0xff]  }
  0x73   :  { %2133 = vmatpush1.bf16.msra.mxu1 %v3733_v30  ;;  %v3797_v30 = vld [vmem:[%s5321_s1 + $0x260] ss:$8 sps:$4 sm:$0xff]  }
  0x74   :  { %2457 = vmatpush1.bf16.msra.mxu0 %v3736_v31  ;;  %2134 = vmatprep.subr.bf16.mxu1 %v3741_v32  ;;  %v3800_v31 = vld [vmem:[%s5321_s1 + $0x660] ss:$8 sps:$4 sm:$0xff]   ;;  %v3103_v32 = vcombine.low %v80_v16, %v88_v17  ;;  %v3855_v16 = vld [vmem:[%s5321_s1 + $0x2f0] ss:$8 sps:$4 sm:$0xff]  }
  0x75   :  { %2458 = vmatprep.subr.bf16.mxu0 %v3744_v33  ;;  %v3111_v33 = vcombine.low %v84_v20, %v92_v21  ;;  %v3858_v17 = vld [vmem:[%s5321_s1 + $0x6f0] ss:$8 sps:$4 sm:$0xff]  }
  0x76   :  { %v49_v20 = vld [vmem:[%s5322_s0 + $0x90] sm:$0xff] }
  0x77   :  { %2135 = vmatpush1.bf16.msra.mxu1 %v3739_v34  ;;  %v96_v34 = vld [vmem:[%s5322_s0 + $0x208] sm:$0xff] }
  0x78   :  { %2459 = vmatpush1.bf16.msra.mxu0 %v3742_v35  ;;  %2136 = vmatprep.subr.bf16.mxu1 %v3748_v36  ;;  %v100_v35 = vld [vmem:[%s5322_s0 + $0x228] sm:$0xff]  ;;  %v3805_v36 = vld [vmem:[%s5321_s1 + $0x274] ss:$8 sps:$4 sm:$0xff]  }
  0x79   :  { %2460 = vmatprep.subr.bf16.mxu0 %v3752_v37  ;;  %v3808_v37 = vld [vmem:[%s5321_s1 + $0x674] ss:$8 sps:$4 sm:$0xff]  }
  0x7b   :  { %2137 = vmatpush1.bf16.msra.mxu1 %v3746_v38  ;;  %v3120_v38 = vcombine.high %v96_v34, %v96_v34 }
  0x7c   :  { %2461 = vmatpush1.bf16.msra.mxu0 %v3750_v39  ;;  %2138 = vmatprep.subr.bf16.mxu1 %v3757_v40  ;;  %v3128_v39 = vcombine.high %v100_v35, %v100_v35  ;;  %v3803_v40 = vld [vmem:[%s5321_s1 + $0x270] ss:$8 sps:$4 sm:$0xff]  }
  0x7d   :  { %2462 = vmatprep.subr.bf16.mxu0 %v3760_v41  ;;  %v3806_v41 = vld [vmem:[%s5321_s1 + $0x670] ss:$8 sps:$4 sm:$0xff]  }
  0x7f   :  { %2139 = vmatpush1.bf16.msra.mxu1 %v3755_v42  ;;  %v3811_v42 = vld [vmem:[%s5321_s1 + $0x284] ss:$8 sps:$4 sm:$0xff]  }
  0x80   :  { %2463 = vmatpush1.bf16.msra.mxu0 %v3758_v43  ;;  %2189 = vmatprep.subr.bf16.mxu1 %v3763_v44  ;;  %v3814_v43 = vld [vmem:[%s5321_s1 + $0x684] ss:$8 sps:$4 sm:$0xff]   ;;  %v3809_v44 = vld [vmem:[%s5321_s1 + $0x280] ss:$8 sps:$4 sm:$0xff]  }
  0x81   :  { %2513 = vmatprep.subr.bf16.mxu0 %v3766_v45  ;;  %v3812_v45 = vld [vmem:[%s5321_s1 + $0x680] ss:$8 sps:$4 sm:$0xff]  }
  0x82   :  { %2141 = vmatmul.mubr.bf16.vlgmr.msra.gmra.mrb[0].mxu1 %v3055_v48  ;;  %v3119_v48 = vcombine.low %v96_v34, %v96_v34  ;;  %v3875_v34 = vld [vmem:[%s5321_s1 + $0x324] ss:$8 sps:$4 sm:$0xff]  }
  0x83   :  { %2465 = vmatmul.mubr.bf16.vlgmr.msra.gmra.mrb[0].mxu0 %v3063_v49  ;;  %2190 = vmatpush1.bf16.msra.mxu1 %v3761_v46  ;;  %v4639_v46 = vld [vmem:[%s5322_s0 + $0x10] sm:$0xff]  ;;  %v3127_v49 = vcombine.low %v100_v35, %v100_v35  ;;  %v3878_v35 = vld [vmem:[%s5321_s1 + $0x724] ss:$8 sps:$4 sm:$0xff]  }
  0x84   :  { %2514 = vmatpush1.bf16.msra.mxu0 %v3764_v53  ;;  %2191 = vmatprep.subr.bf16.mxu1 %v3769_v54  ;;  %v3820_v53 = vld [vmem:[%s5321_s1 + $0x694] ss:$8 sps:$4 sm:$0xff]   ;;  %v3058_v54 = vcombine.high %v4639_v46, %v4644_v47  ;;  %v3057_v21 = vcombine.low %v4639_v46, %v4644_v47 }
  0x85   :  { %2515 = vmatprep.subr.bf16.mxu0 %v3772_v55  ;;  %2150 = vmatprep.mubr.bf16.mxu1 %v3072_v56  ;;  %v3066_v55 = vcombine.high %v4649_v50, %v4654_v51  ;;  %v3815_v56 = vld [vmem:[%s5321_s1 + $0x290] ss:$8 sps:$4 sm:$0xff]  }
  0x86   :  { %2474 = vmatprep.mubr.bf16.mxu0 %v3080_v57  ;;  %v3818_v57 = vld [vmem:[%s5321_s1 + $0x690] ss:$8 sps:$4 sm:$0xff]  }
  0x87   :  { %2192 = vmatpush1.bf16.msra.mxu1 %v3767_v58  ;;  %v3823_v58 = vld [vmem:[%s5321_s1 + $0x2a4] ss:$8 sps:$4 sm:$0xff]  }
  0x88   :  { %2516 = vmatpush1.bf16.msra.mxu0 %v3770_v59  ;;  %2193 = vmatprep.subr.bf16.mxu1 %v3775_v60  ;;  %v3826_v59 = vld [vmem:[%s5321_s1 + $0x6a4] ss:$8 sps:$4 sm:$0xff]   ;;  %v3821_v60 = vld [vmem:[%s5321_s1 + $0x2a0] ss:$8 sps:$4 sm:$0xff]  }
  0x89   :  { %2517 = vmatprep.subr.bf16.mxu0 %v3778_v61  ;;  %v3824_v61 = vld [vmem:[%s5321_s1 + $0x6a0] ss:$8 sps:$4 sm:$0xff]  }
  0x8a   :  { %2151 = vmatmul.mubr.bf16.gmra.mrb[4].mxu1 %v3071_v1  ;;  %v3830_v1 = vld [vmem:[%s5321_s1 + $0x6b0] ss:$8 sps:$4 sm:$0xff]  }
  0x8b   :  { %2475 = vmatmul.mubr.bf16.gmra.mrb[4].mxu0 %v3079_v2  ;;  %2194 = vmatpush1.bf16.msra.mxu1 %v3773_v62  ;;  %v3829_v62 = vld [vmem:[%s5321_s1 + $0x2b4] ss:$8 sps:$4 sm:$0xff]   ;;  %v3835_v2 = vld [vmem:[%s5321_s1 + $0x2c4] ss:$8 sps:$4 sm:$0xff]  }
  0x8c   :  { %2518 = vmatpush1.bf16.msra.mxu0 %v3776_v63  ;;  %2195 = vmatprep.subr.bf16.mxu1 %v3781_v6  ;;  %v3832_v63 = vld [vmem:[%s5321_s1 + $0x6b4] ss:$8 sps:$4 sm:$0xff]  }
  0x8d   :  { %2519 = vmatprep.subr.bf16.mxu0 %v3784_v7  ;;  %2160 = vmatprep.mubr.bf16.mxu1 %v3088_v8  ;;  %v3841_v6 = vld [vmem:[%s5321_s1 + $0x2d4] ss:$8 sps:$4 sm:$0xff]   ;;  %v3839_v8 = vld [vmem:[%s5321_s1 + $0x2d0] ss:$8 sps:$4 sm:$0xff]  }
  0x8e   :  { %2484 = vmatprep.mubr.bf16.mxu0 %v3096_v9  ;;  %v3844_v7 = vld [vmem:[%s5321_s1 + $0x6d4] ss:$8 sps:$4 sm:$0xff]   ;;  %v3842_v9 = vld [vmem:[%s5321_s1 + $0x6d0] ss:$8 sps:$4 sm:$0xff]  }
  0x8f   :  { %2196 = vmatpush1.bf16.msra.mxu1 %v3779_v10  ;;  %v3848_v10 = vld [vmem:[%s5321_s1 + $0x2e4] ss:$8 sps:$4 sm:$0xff]  }
  0x90   :  { %2520 = vmatpush1.bf16.msra.mxu0 %v3782_v11  ;;  %2197 = vmatprep.subr.bf16.mxu1 %v3787_v12  ;;  %v3852_v11 = vld [vmem:[%s5321_s1 + $0x6e4] ss:$8 sps:$4 sm:$0xff]   ;;  %v3846_v12 = vld [vmem:[%s5321_s1 + $0x2e0] ss:$8 sps:$4 sm:$0xff]  }
  0x91   :  { %2521 = vmatprep.subr.bf16.mxu0 %v3790_v13  ;;  %v3850_v13 = vld [vmem:[%s5321_s1 + $0x6e0] ss:$8 sps:$4 sm:$0xff]  }
  0x92   :  { %2161 = vmatmul.mubr.bf16.gmra.mrb[8].mxu1 %v3087_v18  ;;  %v3863_v18 = vld [vmem:[%s5321_s1 + $0x304] ss:$8 sps:$4 sm:$0xff]  }
  0x93   :  { %2485 = vmatmul.mubr.bf16.gmra.mrb[8].mxu0 %v3095_v19  ;;  %2198 = vmatpush1.bf16.msra.mxu1 %v3785_v14  ;;  %v3857_v14 = vld [vmem:[%s5321_s1 + $0x2f4] ss:$8 sps:$4 sm:$0xff]   ;;  %v3866_v19 = vld [vmem:[%s5321_s1 + $0x704] ss:$8 sps:$4 sm:$0xff]  }
  0x94   :  { %2522 = vmatpush1.bf16.msra.mxu0 %v3788_v15  ;;  %2199 = vmatprep.subr.bf16.mxu1 %v3793_v22  ;;  %v3860_v15 = vld [vmem:[%s5321_s1 + $0x6f4] ss:$8 sps:$4 sm:$0xff]   ;;  %v3065_v22 = vcombine.low %v4649_v50, %v4654_v51  ;;  %v3887_v50 = vld [vmem:[%s5321_s1 + $0x344] ss:$8 sps:$4 sm:$0xff]  }
  0x95   :  { %2523 = vmatprep.subr.bf16.mxu0 %v3796_v23  ;;  %2170 = vmatprep.mubr.bf16.mxu1 %v3104_v24  ;;  %v57_v23 = vld [vmem:[%s5322_s0 + $0xd0] sm:$0xff]  ;;  %v3890_v51 = vld [vmem:[%s5321_s1 + $0x744] ss:$8 sps:$4 sm:$0xff]  }
  0x96   :  { %2494 = vmatprep.mubr.bf16.mxu0 %v3112_v25  ;;  %v53_v24 = vld [vmem:[%s5322_s0 + $0xb0] sm:$0xff] }
  0x97   :  { %2200 = vmatpush1.bf16.msra.mxu1 %v3791_v26  ;;  %v61_v25 = vld [vmem:[%s5322_s0 + $0xf0] sm:$0xff]  ;;  %v3861_v26 = vld [vmem:[%s5321_s1 + $0x300] ss:$8 sps:$4 sm:$0xff]  }
  0x98   :  { %2524 = vmatpush1.bf16.msra.mxu0 %v3794_v27  ;;  %2201 = vmatprep.subr.bf16.mxu1 %v3799_v28  ;;  %v3864_v27 = vld [vmem:[%s5321_s1 + $0x700] ss:$8 sps:$4 sm:$0xff]   ;;  %v3869_v28 = vld [vmem:[%s5321_s1 + $0x314] ss:$8 sps:$4 sm:$0xff]  }
  0x99   :  { %2525 = vmatprep.subr.bf16.mxu0 %v3802_v29  ;;  %v3872_v29 = vld [vmem:[%s5321_s1 + $0x714] ss:$8 sps:$4 sm:$0xff]  }
  0x9a   :  { %2171 = vmatmul.mubr.bf16.gmra.mrb[12].mxu1 %v3103_v32  ;;  %v3867_v32 = vld [vmem:[%s5321_s1 + $0x310] ss:$8 sps:$4 sm:$0xff]  }
  0x9b   :  { %2495 = vmatmul.mubr.bf16.gmra.mrb[12].mxu0 %v3111_v33  ;;  %2202 = vmatpush1.bf16.msra.mxu1 %v3797_v30  ;;  %v3074_v30 = vcombine.high %v49_v20, %v57_v23  ;;  %v3870_v33 = vld [vmem:[%s5321_s1 + $0x710] ss:$8 sps:$4 sm:$0xff]  }
  0x9c   :  { %2526 = vmatpush1.bf16.msra.mxu0 %v3800_v31  ;;  %2203 = vmatprep.subr.bf16.mxu1 %v3805_v36  ;;  %v3082_v31 = vcombine.high %v53_v24, %v61_v25  ;;  %v65_v36 = vld [vmem:[%s5322_s0 + $0x110] sm:$0xff] }
  0x9d   :  { %2527 = vmatprep.subr.bf16.mxu0 %v3808_v37  ;;  %2180 = vmatprep.mubr.bf16.mxu1 %v3120_v38  ;;  %v3073_v37 = vcombine.low %v49_v20, %v57_v23  ;;  %v3081_v38 = vcombine.low %v53_v24, %v61_v25  ;;  %v4910_v23 = vld [vmem:[%s5322_s0 + $0x78] sm:$0xff]  ;;  %v3909_v24 = vld [vmem:[%s5321_s1 + $0x380] ss:$8 sps:$4 sm:$0xff]  }
  0x9e   :  { %2504 = vmatprep.mubr.bf16.mxu0 %v3128_v39  ;;  %v73_v39 = vld [vmem:[%s5322_s0 + $0x150] sm:$0xff]  ;;  %v3912_v25 = vld [vmem:[%s5321_s1 + $0x780] ss:$8 sps:$4 sm:$0xff]  }
  0x9f   :  { %2204 = vmatpush1.bf16.msra.mxu1 %v3803_v40  ;;  %v69_v40 = vld [vmem:[%s5322_s0 + $0x130] sm:$0xff]  ;;  %v3090_v46 = vcombine.high %v65_v36, %v73_v39 }
  0xa0   :  { %2528 = vmatpush1.bf16.msra.mxu0 %v3806_v41  ;;  %2205 = vmatprep.subr.bf16.mxu1 %v3811_v42  ;;  %v77_v41 = vld [vmem:[%s5322_s0 + $0x170] sm:$0xff]  ;;  %v3873_v42 = vld [vmem:[%s5321_s1 + $0x320] ss:$8 sps:$4 sm:$0xff]  }
  0xa1   :  { %2529 = vmatprep.subr.bf16.mxu0 %v3814_v43  ;;  %v3876_v43 = vld [vmem:[%s5321_s1 + $0x720] ss:$8 sps:$4 sm:$0xff]   ;;  %v3098_v47 = vcombine.high %v69_v40, %v77_v41 }
  0xa2   :  { %2181 = vmatmul.mubr.bf16.gmra.mrb[16].mxu1 %v3119_v48  ;;  %v3879_v48 = vld [vmem:[%s5321_s1 + $0x330] ss:$8 sps:$4 sm:$0xff]  }
  0xa3   :  { %2505 = vmatmul.mubr.bf16.gmra.mrb[16].mxu0 %v3127_v49  ;;  %2206 = vmatpush1.bf16.msra.mxu1 %v3809_v44  ;;  %v3881_v44 = vld [vmem:[%s5321_s1 + $0x334] ss:$8 sps:$4 sm:$0xff]   ;;  %v3882_v49 = vld [vmem:[%s5321_s1 + $0x730] ss:$8 sps:$4 sm:$0xff]  }
  0xa4   :  { %2530 = vmatpush1.bf16.msra.mxu0 %v3812_v45  ;;  %2207 = vmatprep.subr.bf16.mxu1 %v3817_v52  ;;  %v3884_v45 = vld [vmem:[%s5321_s1 + $0x734] ss:$8 sps:$4 sm:$0xff]  }
  0xa5   :  { %2531 = vmatprep.subr.bf16.mxu0 %v3820_v53  ;;  %2221 = vmatprep.mubr.bf16.mxu1 %v3058_v54  ;;  %v81_v52 = vld [vmem:[%s5322_s0 + $0x190] sm:$0xff]  ;;  %v3089_v53 = vcombine.low %v65_v36, %v73_v39  ;;  %v3097_v54 = vcombine.low %v69_v40, %v77_v41  ;;  %v3935_v40 = vld [vmem:[%s5321_s1 + $0x3c4] ss:$8 sps:$4 sm:$0xff]  }
  0xa6   :  { %2545 = vmatprep.mubr.bf16.mxu0 %v3066_v55  ;;  %v89_v55 = vld [vmem:[%s5322_s0 + $0x1d0] sm:$0xff]  ;;  %v3938_v41 = vld [vmem:[%s5321_s1 + $0x7c4] ss:$8 sps:$4 sm:$0xff]  }
  0xa7   :  { %2208 = vmatpush1.bf16.msra.mxu1 %v3815_v56  ;;  %v85_v56 = vld [vmem:[%s5322_s0 + $0x1b0] sm:$0xff] }
  0xa8   :  { %2532 = vmatpush1.bf16.msra.mxu0 %v3818_v57  ;;  %2209 = vmatprep.subr.bf16.mxu1 %v3823_v58  ;;  %v93_v57 = vld [vmem:[%s5322_s0 + $0x1f0] sm:$0xff]  ;;  %v3885_v58 = vld [vmem:[%s5321_s1 + $0x340] ss:$8 sps:$4 sm:$0xff]  }
  0xa9   :  { %2533 = vmatprep.subr.bf16.mxu0 %v3826_v59  ;;  %v3888_v59 = vld [vmem:[%s5321_s1 + $0x740] ss:$8 sps:$4 sm:$0xff]   ;;  %v3929_v36 = vld [vmem:[%s5321_s1 + $0x3b4] ss:$8 sps:$4 sm:$0xff]   ;;  %v3930_v39 = vld [vmem:[%s5321_s1 + $0x7b0] ss:$8 sps:$4 sm:$0xff]  }
  0xab   :  { %2210 = vmatpush1.bf16.msra.mxu1 %v3821_v60  ;;  %v3893_v60 = vld [vmem:[%s5321_s1 + $0x354] ss:$8 sps:$4 sm:$0xff]  }
  0xac   :  { %2534 = vmatpush1.bf16.msra.mxu0 %v3824_v61  ;;  %2211 = vmatprep.subr.bf16.mxu1 %v3829_v62  ;;  %v3896_v61 = vld [vmem:[%s5321_s1 + $0x754] ss:$8 sps:$4 sm:$0xff]   ;;  %v3106_v62 = vcombine.high %v81_v52, %v89_v55 }
  0xad   :  { %2535 = vmatprep.subr.bf16.mxu0 %v3832_v63  ;;  %v3114_v63 = vcombine.high %v85_v56, %v93_v57 }
  0xaf   :  { %2212 = vmatpush1.bf16.msra.mxu1 %v3827_v0  ;;  %v3891_v0 = vld [vmem:[%s5321_s1 + $0x350] ss:$8 sps:$4 sm:$0xff]  }
  0xb0   :  { %2536 = vmatpush1.bf16.msra.mxu0 %v3830_v1  ;;  %2213 = vmatprep.subr.bf16.mxu1 %v3835_v2  ;;  %v3894_v1 = vld [vmem:[%s5321_s1 + $0x750] ss:$8 sps:$4 sm:$0xff]   ;;  %v3899_v2 = vld [vmem:[%s5321_s1 + $0x364] ss:$8 sps:$4 sm:$0xff]  }
  0xb1   :  { %2537 = vmatprep.subr.bf16.mxu0 %v3838_v3  ;;  %v3902_v3 = vld [vmem:[%s5321_s1 + $0x764] ss:$8 sps:$4 sm:$0xff]  }
  0xb3   :  { %2214 = vmatpush1.bf16.msra.mxu1 %v3833_v4  ;;  %v3105_v4 = vcombine.low %v81_v52, %v89_v55  ;;  %v3957_v52 = vld [vmem:[%s5321_s1 + $0x3f4] ss:$8 sps:$4 sm:$0xff]   ;;  %v3958_v55 = vld [vmem:[%s5321_s1 + $0x7f0] ss:$8 sps:$4 sm:$0xff]  }
  0xb4   :  { %2538 = vmatpush1.bf16.msra.mxu0 %v3836_v5  ;;  %2215 = vmatprep.subr.bf16.mxu1 %v3841_v6  ;;  %v3113_v5 = vcombine.low %v85_v56, %v93_v57  ;;  %v97_v6 = vld [vmem:[%s5322_s0 + $0x210] sm:$0xff]  ;;  %v50_v56 = vld [vmem:[%s5322_s0 + $0x98] sm:$0xff] }
  0xb5   :  { %2539 = vmatprep.subr.bf16.mxu0 %v3844_v7  ;;  %v101_v7 = vld [vmem:[%s5322_s0 + $0x230] sm:$0xff]  ;;  %v58_v57 = vld [vmem:[%s5322_s0 + $0xd8] sm:$0xff] }
  0xb6   :  { %v3129_v20 = vcombine.low %v101_v7, %v101_v7 }
  0xb7   :  { %2216 = vmatpush1.bf16.msra.mxu1 %v3839_v8  ;;  %v3897_v8 = vld [vmem:[%s5321_s1 + $0x360] ss:$8 sps:$4 sm:$0xff]  }
  0xb8   :  { %2540 = vmatpush1.bf16.msra.mxu0 %v3842_v9  ;;  %2217 = vmatprep.subr.bf16.mxu1 %v3848_v10  ;;  %v3900_v9 = vld [vmem:[%s5321_s1 + $0x760] ss:$8 sps:$4 sm:$0xff]   ;;  %v3905_v10 = vld [vmem:[%s5321_s1 + $0x374] ss:$8 sps:$4 sm:$0xff]  }
  0xb9   :  { %2541 = vmatprep.subr.bf16.mxu0 %v3852_v11  ;;  %v3908_v11 = vld [vmem:[%s5321_s1 + $0x774] ss:$8 sps:$4 sm:$0xff]  }
  0xbb   :  { %2218 = vmatpush1.bf16.msra.mxu1 %v3846_v12  ;;  %v3122_v12 = vcombine.high %v97_v6, %v97_v6 }
  0xbc   :  { %2542 = vmatpush1.bf16.msra.mxu0 %v3850_v13  ;;  %2219 = vmatprep.subr.bf16.mxu1 %v3857_v14  ;;  %v3130_v13 = vcombine.high %v101_v7, %v101_v7  ;;  %v3903_v14 = vld [vmem:[%s5321_s1 + $0x370] ss:$8 sps:$4 sm:$0xff]  }
  0xbd   :  { %2543 = vmatprep.subr.bf16.mxu0 %v3860_v15  ;;  %v3906_v15 = vld [vmem:[%s5321_s1 + $0x770] ss:$8 sps:$4 sm:$0xff]  }
  0xbf   :  { %2220 = vmatpush1.bf16.msra.mxu1 %v3855_v16  ;;  %v3911_v16 = vld [vmem:[%s5321_s1 + $0x384] ss:$8 sps:$4 sm:$0xff]  }
  0xc0   :  { %2544 = vmatpush1.bf16.msra.mxu0 %v3858_v17  ;;  %2270 = vmatprep.subr.bf16.mxu1 %v3863_v18  ;;  %v3914_v17 = vld [vmem:[%s5321_s1 + $0x784] ss:$8 sps:$4 sm:$0xff]   ;;  %v4895_v18 = vld [vmem:[%s5322_s0 + $0x18] sm:$0xff] }
  0xc1   :  { %2594 = vmatprep.subr.bf16.mxu0 %v3866_v19  ;;  %v3121_v19 = vcombine.low %v97_v6, %v97_v6 }
  0xc2   :  { %2222 = vmatmul.mubr.bf16.vlgmr.msra.gmra.mrb[0].mxu1 %v3057_v21  ;;  %v4900_v21 = vld [vmem:[%s5322_s0 + $0x58] sm:$0xff] }
  0xc3   :  { %2546 = vmatmul.mubr.bf16.vlgmr.msra.gmra.mrb[0].mxu0 %v3065_v22  ;;  %2271 = vmatpush1.bf16.msra.mxu1 %v3861_v26  ;;  %v4905_v22 = vld [vmem:[%s5322_s0 + $0x38] sm:$0xff] }
  0xc4   :  { %2595 = vmatpush1.bf16.msra.mxu0 %v3864_v27  ;;  %2272 = vmatprep.subr.bf16.mxu1 %v3869_v28  ;;  %v3917_v26 = vld [vmem:[%s5321_s1 + $0x394] ss:$8 sps:$4 sm:$0xff]   ;;  %v3060_v28 = vcombine.high %v4895_v18, %v4900_v21 }
  0xc5   :  { %2596 = vmatprep.subr.bf16.mxu0 %v3872_v29  ;;  %2231 = vmatprep.mubr.bf16.mxu1 %v3074_v30  ;;  %v3920_v27 = vld [vmem:[%s5321_s1 + $0x794] ss:$8 sps:$4 sm:$0xff]   ;;  %v3068_v29 = vcombine.high %v4905_v22, %v4910_v23  ;;  %v3915_v30 = vld [vmem:[%s5321_s1 + $0x390] ss:$8 sps:$4 sm:$0xff]  }
  0xc6   :  { %2555 = vmatprep.mubr.bf16.mxu0 %v3082_v31  ;;  %v3918_v31 = vld [vmem:[%s5321_s1 + $0x790] ss:$8 sps:$4 sm:$0xff]  }
  0xc7   :  { %2273 = vmatpush1.bf16.msra.mxu1 %v3867_v32  ;;  %v3923_v32 = vld [vmem:[%s5321_s1 + $0x3a4] ss:$8 sps:$4 sm:$0xff]  }
  0xc8   :  { %2597 = vmatpush1.bf16.msra.mxu0 %v3870_v33  ;;  %2274 = vmatprep.subr.bf16.mxu1 %v3875_v34  ;;  %v3926_v33 = vld [vmem:[%s5321_s1 + $0x7a4] ss:$8 sps:$4 sm:$0xff]   ;;  %v3921_v34 = vld [vmem:[%s5321_s1 + $0x3a0] ss:$8 sps:$4 sm:$0xff]  }
  0xc9   :  { %2598 = vmatprep.subr.bf16.mxu0 %v3878_v35  ;;  %v3924_v35 = vld [vmem:[%s5321_s1 + $0x7a0] ss:$8 sps:$4 sm:$0xff]  }
  0xca   :  { %2232 = vmatmul.mubr.bf16.gmra.mrb[4].mxu1 %v3073_v37  ;;  %v3932_v37 = vld [vmem:[%s5321_s1 + $0x7b4] ss:$8 sps:$4 sm:$0xff]  }
  0xcb   :  { %2556 = vmatmul.mubr.bf16.gmra.mrb[4].mxu0 %v3081_v38  ;;  %2275 = vmatpush1.bf16.msra.mxu1 %v3873_v42  ;;  %v3927_v38 = vld [vmem:[%s5321_s1 + $0x3b0] ss:$8 sps:$4 sm:$0xff]   ;;  %v3933_v42 = vld [vmem:[%s5321_s1 + $0x3c0] ss:$8 sps:$4 sm:$0xff]  }
  0xcc   :  { %2599 = vmatpush1.bf16.msra.mxu0 %v3876_v43  ;;  %2276 = vmatprep.subr.bf16.mxu1 %v3881_v44  ;;  %v3936_v43 = vld [vmem:[%s5321_s1 + $0x7c0] ss:$8 sps:$4 sm:$0xff]   ;;  %v3941_v44 = vld [vmem:[%s5321_s1 + $0x3d4] ss:$8 sps:$4 sm:$0xff]  }
  0xcd   :  { %2600 = vmatprep.subr.bf16.mxu0 %v3884_v45  ;;  %2241 = vmatprep.mubr.bf16.mxu1 %v3090_v46  ;;  %v3944_v45 = vld [vmem:[%s5321_s1 + $0x7d4] ss:$8 sps:$4 sm:$0xff]   ;;  %v3939_v46 = vld [vmem:[%s5321_s1 + $0x3d0] ss:$8 sps:$4 sm:$0xff]  }
  0xce   :  { %2565 = vmatprep.mubr.bf16.mxu0 %v3098_v47  ;;  %v3942_v47 = vld [vmem:[%s5321_s1 + $0x7d0] ss:$8 sps:$4 sm:$0xff]  }
  0xcf   :  { %2277 = vmatpush1.bf16.msra.mxu1 %v3879_v48  ;;  %v3950_v48 = vld [vmem:[%s5321_s1 + $0x3e4] ss:$8 sps:$4 sm:$0xff]  }
  0xd0   :  { %2601 = vmatpush1.bf16.msra.mxu0 %v3882_v49  ;;  %2278 = vmatprep.subr.bf16.mxu1 %v3887_v50  ;;  %v3954_v49 = vld [vmem:[%s5321_s1 + $0x7e4] ss:$8 sps:$4 sm:$0xff]   ;;  %v3948_v50 = vld [vmem:[%s5321_s1 + $0x3e0] ss:$8 sps:$4 sm:$0xff]  }
  0xd1   :  { %2602 = vmatprep.subr.bf16.mxu0 %v3890_v51  ;;  %v3952_v51 = vld [vmem:[%s5321_s1 + $0x7e0] ss:$8 sps:$4 sm:$0xff]  }
  0xd2   :  { %2242 = vmatmul.mubr.bf16.gmra.mrb[8].mxu1 %v3089_v53  ;;  %v3960_v53 = vld [vmem:[%s5321_s1 + $0x7f4] ss:$8 sps:$4 sm:$0xff]  }
  0xd3   :  { %2566 = vmatmul.mubr.bf16.gmra.mrb[8].mxu0 %v3097_v54  ;;  %2279 = vmatpush1.bf16.msra.mxu1 %v3885_v58  ;;  %v3955_v54 = vld [vmem:[%s5321_s1 + $0x3f0] ss:$8 sps:$4 sm:$0xff]  }
  0xd4   :  { %2603 = vmatpush1.bf16.msra.mxu0 %v3888_v59  ;;  %2280 = vmatprep.subr.bf16.mxu1 %v3893_v60  ;;  %v54_v58 = vld [vmem:[%s5322_s0 + $0xb8] sm:$0xff]  ;;  %v3059_v60 = vcombine.low %v4895_v18, %v4900_v21 }
  0xd5   :  { %2604 = vmatprep.subr.bf16.mxu0 %v3896_v61  ;;  %2251 = vmatprep.mubr.bf16.mxu1 %v3106_v62  ;;  %v62_v59 = vld [vmem:[%s5322_s0 + $0xf8] sm:$0xff]  ;;  %v3067_v61 = vcombine.low %v4905_v22, %v4910_v23  ;;  %v3076_v62 = vcombine.high %v50_v56, %v58_v57 }
  0xd6   :  { %2575 = vmatprep.mubr.bf16.mxu0 %v3114_v63  ;;  %v3084_v63 = vcombine.high %v54_v58, %v62_v59 }
  0xd7   :  { %2281 = vmatpush1.bf16.msra.mxu1 %v3891_v0  ;;  %v66_v0 = vld [vmem:[%s5322_s0 + $0x118] sm:$0xff] }
  0xd8   :  { %2605 = vmatpush1.bf16.msra.mxu0 %v3894_v1  ;;  %2282 = vmatprep.subr.bf16.mxu1 %v3899_v2  ;;  %v74_v1 = vld [vmem:[%s5322_s0 + $0x158] sm:$0xff] }
  0xd9   :  { %2606 = vmatprep.subr.bf16.mxu0 %v3902_v3  ;;  %v70_v2 = vld [vmem:[%s5322_s0 + $0x138] sm:$0xff]  ;;  %v3092_v6 = vcombine.high %v66_v0, %v74_v1 }
  0xda   :  { %2252 = vmatmul.mubr.bf16.gmra.mrb[12].mxu1 %v3105_v4  ;;  %v78_v3 = vld [vmem:[%s5322_s0 + $0x178] sm:$0xff]  ;;  %v3075_v4 = vcombine.low %v50_v56, %v58_v57 }
  0xdb   :  { %2576 = vmatmul.mubr.bf16.gmra.mrb[12].mxu0 %v3113_v5  ;;  %2283 = vmatpush1.bf16.msra.mxu1 %v3897_v8  ;;  %v3083_v5 = vcombine.low %v54_v58, %v62_v59  ;;  %v3100_v7 = vcombine.high %v70_v2, %v78_v3  ;;  %v82_v8 = vld [vmem:[%s5322_s0 + $0x198] sm:$0xff] }
  0xdc   :  { %2607 = vmatpush1.bf16.msra.mxu0 %v3900_v9  ;;  %2284 = vmatprep.subr.bf16.mxu1 %v3905_v10  ;;  %v90_v9 = vld [vmem:[%s5322_s0 + $0x1d8] sm:$0xff] }
  0xdd   :  { %2608 = vmatprep.subr.bf16.mxu0 %v3908_v11  ;;  %2261 = vmatprep.mubr.bf16.mxu1 %v3122_v12  ;;  %v86_v10 = vld [vmem:[%s5322_s0 + $0x1b8] sm:$0xff]  ;;  %v3091_v12 = vcombine.low %v66_v0, %v74_v1  ;;  %v3107_v18 = vcombine.low %v82_v8, %v90_v9 }
  0xde   :  { %2585 = vmatprep.mubr.bf16.mxu0 %v3130_v13  ;;  %v94_v11 = vld [vmem:[%s5322_s0 + $0x1f8] sm:$0xff]  ;;  %v3099_v13 = vcombine.low %v70_v2, %v78_v3 }
  0xdf   :  { %2285 = vmatpush1.bf16.msra.mxu1 %v3903_v14  ;;  %v3108_v14 = vcombine.high %v82_v8, %v90_v9 }
  0xe0   :  { %2609 = vmatpush1.bf16.msra.mxu0 %v3906_v15  ;;  %2286 = vmatprep.subr.bf16.mxu1 %v3911_v16  ;;  %v3116_v15 = vcombine.high %v86_v10, %v94_v11  ;;  %v98_v16 = vld [vmem:[%s5322_s0 + $0x218] sm:$0xff] }
  0xe1   :  { %2610 = vmatprep.subr.bf16.mxu0 %v3914_v17  ;;  %v102_v17 = vld [vmem:[%s5322_s0 + $0x238] sm:$0xff]  ;;  %v3123_v22 = vcombine.low %v98_v16, %v98_v16 }
  0xe2   :  { %2262 = vmatmul.mubr.bf16.gmra.mrb[16].mxu1 %v3121_v19  ;;  %v3115_v19 = vcombine.low %v86_v10, %v94_v11  ;;  %v3132_v21 = vcombine.high %v102_v17, %v102_v17  ;;  %v3131_v23 = vcombine.low %v102_v17, %v102_v17 }
  0xe3   :  { %2586 = vmatmul.mubr.bf16.gmra.mrb[16].mxu0 %v3129_v20  ;;  %2287 = vmatpush1.bf16.msra.mxu1 %v3909_v24  ;;  %v3124_v20 = vcombine.high %v98_v16, %v98_v16  ;;  %v361_v24 = vlaneseq }
  0xe4   :  { %2611 = vmatpush1.bf16.msra.mxu0 %v3912_v25  ;;  %2288 = vmatprep.subr.bf16.mxu1 %v3917_v26 }
  0xe5   :  { %2612 = vmatprep.subr.bf16.mxu0 %v3920_v27  ;;  %2302 = vmatprep.mubr.bf16.mxu1 %v3060_v28  ;;  %v5052_v25 = vshrl.u32 %v361_v24, 7  ;;  %v359_v27 = vld [vmem:[%s5323_s2] sm:$0x3] }
  0xe6   :  { %2626 = vmatprep.mubr.bf16.mxu0 %v3068_v29 }
  0xe7   :  { %2289 = vmatpush1.bf16.msra.mxu1 %v3915_v30  ;;  %v5055_v26 = vsub.s32 0, %v5052_v25  ;;  %v5061_v28 = vsub.s32 1, %v5052_v25  ;;  %v3973_v30 = vmov 0.0  }
  0xe8   :  { %2613 = vmatpush1.bf16.msra.mxu0 %v3918_v31  ;;  %2290 = vmatprep.subr.bf16.mxu1 %v3923_v32 }
  0xe9   :  { %2614 = vmatprep.subr.bf16.mxu0 %v3926_v33  ;;  %v5064_v29 = vrot.slane %v359_v27, %v5055_v26  ;;  %v5067_v31 = vrot.slane %v359_v27, %v5061_v28 }
  0xeb   :  { %2291 = vmatpush1.bf16.msra.mxu1 %v3921_v34 }
  0xec   :  { %2615 = vmatpush1.bf16.msra.mxu0 %v3924_v35  ;;  %2292 = vmatprep.subr.bf16.mxu1 %v3929_v36 }
  0xed   :  { %2616 = vmatprep.subr.bf16.mxu0 %v3932_v37 }
  0xef   :  { %2293 = vmatpush1.bf16.msra.mxu1 %v3927_v38 }
  0xf0   :  { %2617 = vmatpush1.bf16.msra.mxu0 %v3930_v39  ;;  %2294 = vmatprep.subr.bf16.mxu1 %v3935_v40 }
  0xf1   :  { %2618 = vmatprep.subr.bf16.mxu0 %v3938_v41 }
  0xf3   :  { %2295 = vmatpush1.bf16.msra.mxu1 %v3933_v42 }
  0xf4   :  { %2619 = vmatpush1.bf16.msra.mxu0 %v3936_v43  ;;  %2296 = vmatprep.subr.bf16.mxu1 %v3941_v44 }
  0xf5   :  { %2620 = vmatprep.subr.bf16.mxu0 %v3944_v45 }
  0xf7   :  { %2297 = vmatpush1.bf16.msra.mxu1 %v3939_v46 }
  0xf8   :  { %2621 = vmatpush1.bf16.msra.mxu0 %v3942_v47  ;;  %2298 = vmatprep.subr.bf16.mxu1 %v3950_v48 }
  0xf9   :  { %2622 = vmatprep.subr.bf16.mxu0 %v3954_v49 }
  0xfb   :  { %2299 = vmatpush1.bf16.msra.mxu1 %v3948_v50 }
  0xfc   :  { %2623 = vmatpush1.bf16.msra.mxu0 %v3952_v51  ;;  %2300 = vmatprep.subr.bf16.mxu1 %v3957_v52 }
  0xfd   :  { %2624 = vmatprep.subr.bf16.mxu0 %v3960_v53 }
  0xff   :  { %2301 = vmatpush1.bf16.msra.mxu1 %v3955_v54 }
 0x100   :  { %2625 = vmatpush1.bf16.msra.mxu0 %v3958_v55 }
 0x102   :  { %2303 = vmatmul.mubr.bf16.vlgmr.msra.gmra.mrb[0].mxu1 %v3059_v60 }
 0x103   :  { %2627 = vmatmul.mubr.bf16.vlgmr.msra.gmra.mrb[0].mxu0 %v3067_v61  ;;  %2312 = vmatprep.mubr.bf16.mxu1 %v3076_v62 }
 0x104   :  { %2636 = vmatprep.mubr.bf16.mxu0 %v3084_v63 }
 0x10a   :  { %2313 = vmatmul.mubr.bf16.gmra.mrb[4].mxu1 %v3075_v4 }
 0x10b   :  { %2637 = vmatmul.mubr.bf16.gmra.mrb[4].mxu0 %v3083_v5  ;;  %2322 = vmatprep.mubr.bf16.mxu1 %v3092_v6 }
 0x10c   :  { %2646 = vmatprep.mubr.bf16.mxu0 %v3100_v7 }
 0x112   :  { %2323 = vmatmul.mubr.bf16.gmra.mrb[8].mxu1 %v3091_v12 }
 0x113   :  { %2647 = vmatmul.mubr.bf16.gmra.mrb[8].mxu0 %v3099_v13  ;;  %2332 = vmatprep.mubr.bf16.mxu1 %v3108_v14 }
 0x114   :  { %2656 = vmatprep.mubr.bf16.mxu0 %v3116_v15 }
 0x11a   :  { %2333 = vmatmul.mubr.bf16.gmra.mrb[12].mxu1 %v3107_v18 }
 0x11b   :  { %2657 = vmatmul.mubr.bf16.gmra.mrb[12].mxu0 %v3115_v19  ;;  %2342 = vmatprep.mubr.bf16.mxu1 %v3124_v20 }
 0x11c   :  { %2666 = vmatprep.mubr.bf16.mxu0 %v3132_v21 }
 0x122   :  { %2343 = vmatmul.mubr.bf16.gmra.mrb[16].mxu1 %v3123_v22 }
 0x123   :  { %2667 = vmatmul.mubr.bf16.gmra.mrb[16].mxu0 %v3131_v23  ;;  %3020 = vmatprep.mubr.f32.mxu1 %v3973_v30 }
 0x1d5   :  { %v2304_v32 = vpop.f32.mrb[0].mxu1 }
 0x1d6   :  { %v2628_v33 = vpop.f32.mrb[0].mxu0  ;;  %v3407_v34 = vadd.f32 %v2304_v32, %v5064_v29  ;;  %v2306_v35 = vpop.f32.mrb[1].mxu1 }
 0x1d7   :  { %v2630_v36 = vpop.f32.mrb[1].mxu0  ;;  %v3409_v37 = vadd.f32 %v2306_v35, %v5067_v31  ;;  %v2308_v38 = vpop.f32.mrb[2].mxu1 }
 0x1d8   :  { %v2632_v39 = vpop.f32.mrb[2].mxu0  ;;  %v5071_v40 = vadd.f32 %v3407_v34, %v2628_v33  ;;  %v3411_v41 = vadd.f32 %v2308_v38, %v5064_v29  ;;  %v2310_v42 = vpop.f32.mrb[3].mxu1 }
 0x1d9   :  { %v2634_v43 = vpop.f32.mrb[3].mxu0  ;;  %v5074_v44 = vadd.f32 %v3409_v37, %v2630_v36  ;;  %v3413_v45 = vadd.f32 %v2310_v42, %v5067_v31 }
 0x1da   :  { %v5077_v46 = vadd.f32 %v3411_v41, %v2632_v39  ;;  %v2703_v0 = vmul.f32 %v5071_v40, %v5071_v40 }
 0x1db   :  { %v5079_v47 = vadd.f32 %v3413_v45, %v2634_v43  ;;  %v2704_v4 = vmul.f32 %v5074_v44, %v5074_v44 }
 0x1dc   :  { %v2705_v56 = vmul.f32 %v5077_v46, %v5077_v46  ;;  %v2675_v1 = vadd.f32 %v5077_v46, %v5071_v40 }
 0x1dd   :  { %v2314_v48 = vpop.f32.mrb[4].mxu1  ;;  %v2706_v61 = vmul.f32 %v5079_v47, %v5079_v47  ;;  %v2689_v5 = vadd.f32 %v5079_v47, %v5074_v44 }
 0x1de   :  { %v2638_v49 = vpop.f32.mrb[4].mxu0  ;;  %v3415_v50 = vadd.f32 %v2314_v48, %v5064_v29  ;;  %v2316_v51 = vpop.f32.mrb[5].mxu1  ;;  %v2721_v8 = vadd.f32 %v2705_v56, %v2703_v0 }
 0x1df   :  { %v2640_v52 = vpop.f32.mrb[5].mxu0  ;;  %v3417_v53 = vadd.f32 %v2316_v51, %v5067_v31  ;;  %v2318_v54 = vpop.f32.mrb[6].mxu1  ;;  %v2735_v10 = vadd.f32 %v2706_v61, %v2704_v4 }
 0x1e0   :  { %v2642_v55 = vpop.f32.mrb[6].mxu0  ;;  %v5085_v57 = vadd.f32 %v3415_v50, %v2638_v49  ;;  %v3419_v58 = vadd.f32 %v2318_v54, %v5064_v29  ;;  %v2320_v59 = vpop.f32.mrb[7].mxu1 }
 0x1e1   :  { %v2644_v60 = vpop.f32.mrb[7].mxu0  ;;  %v5090_v62 = vadd.f32 %v3417_v53, %v2640_v52  ;;  %v3421_v63 = vadd.f32 %v2320_v59, %v5067_v31 }
 0x1e2   :  { %v2707_v2 = vmul.f32 %v5085_v57, %v5085_v57  ;;  %v5099_v3 = vadd.f32 %v3419_v58, %v2642_v55  ;;  %v2676_v9 = vadd.f32 %v5085_v57, %v2675_v1 }
 0x1e3   :  { %v2708_v6 = vmul.f32 %v5090_v62, %v5090_v62  ;;  %v5107_v7 = vadd.f32 %v3421_v63, %v2644_v60  ;;  %v2690_v11 = vadd.f32 %v5090_v62, %v2689_v5 }
 0x1e4   :  { %v2722_v14 = vadd.f32 %v2721_v8, %v2707_v2  ;;  %v2709_v15 = vmul.f32 %v5099_v3, %v5099_v3  ;;  %v2677_v24 = vadd.f32 %v5099_v3, %v2676_v9 }
 0x1e5   :  { %v2324_v12 = vpop.f32.mrb[8].mxu1  ;;  %v2736_v19 = vadd.f32 %v2735_v10, %v2708_v6  ;;  %v2710_v20 = vmul.f32 %v5107_v7, %v5107_v7  ;;  %v2691_v34 = vadd.f32 %v5107_v7, %v2690_v11 }
 0x1e6   :  { %v2648_v13 = vpop.f32.mrb[8].mxu0  ;;  %v3423_v16 = vadd.f32 %v2324_v12, %v5064_v29  ;;  %v2326_v17 = vpop.f32.mrb[9].mxu1  ;;  %v2723_v37 = vadd.f32 %v2722_v14, %v2709_v15 }
 0x1e7   :  { %v2650_v18 = vpop.f32.mrb[9].mxu0  ;;  %v3425_v21 = vadd.f32 %v2326_v17, %v5067_v31  ;;  %v2328_v22 = vpop.f32.mrb[10].mxu1  ;;  %v2737_v42 = vadd.f32 %v2736_v19, %v2710_v20 }
 0x1e8   :  { %v2652_v23 = vpop.f32.mrb[10].mxu0  ;;  %v5118_v27 = vadd.f32 %v3423_v16, %v2648_v13  ;;  %v3427_v30 = vadd.f32 %v2328_v22, %v5064_v29  ;;  %v2330_v32 = vpop.f32.mrb[11].mxu1 }
 0x1e9   :  { %v2654_v33 = vpop.f32.mrb[11].mxu0  ;;  %v5122_v35 = vadd.f32 %v3425_v21, %v2650_v18  ;;  %v3429_v36 = vadd.f32 %v2330_v32, %v5067_v31 }
 0x1ea   :  { %v2678_v38 = vadd.f32 %v5118_v27, %v2677_v24  ;;  %v2711_v39 = vmul.f32 %v5118_v27, %v5118_v27  ;;  %v5128_v41 = vadd.f32 %v3427_v30, %v2652_v23 }
 0x1eb   :  { %v2692_v43 = vadd.f32 %v5122_v35, %v2691_v34  ;;  %v2712_v45 = vmul.f32 %v5122_v35, %v5122_v35  ;;  %v5133_v48 = vadd.f32 %v3429_v36, %v2654_v33 }
 0x1ec   :  { %v2724_v49 = vadd.f32 %v2723_v37, %v2711_v39  ;;  %v2679_v50 = vadd.f32 %v5128_v41, %v2678_v38  ;;  %v2713_v51 = vmul.f32 %v5128_v41, %v5128_v41 }
 0x1ed   :  { %v2738_v52 = vadd.f32 %v2737_v42, %v2712_v45  ;;  %v2693_v53 = vadd.f32 %v5133_v48, %v2692_v43  ;;  %v2714_v54 = vmul.f32 %v5133_v48, %v5133_v48  ;;  %v2334_v55 = vpop.f32.mrb[12].mxu1 }
 0x1ee   :  { %v2658_v56 = vpop.f32.mrb[12].mxu0  ;;  %v2725_v58 = vadd.f32 %v2724_v49, %v2713_v51  ;;  %v3431_v59 = vadd.f32 %v2334_v55, %v5064_v29  ;;  %v2336_v60 = vpop.f32.mrb[13].mxu1 }
 0x1ef   :  { %v2660_v61 = vpop.f32.mrb[13].mxu0  ;;  %v2739_v63 = vadd.f32 %v2738_v52, %v2714_v54  ;;  %v3433_v0 = vadd.f32 %v2336_v60, %v5067_v31  ;;  %v2338_v1 = vpop.f32.mrb[14].mxu1 }
 0x1f0   :  { %v2662_v2 = vpop.f32.mrb[14].mxu0  ;;  %v5143_v4 = vadd.f32 %v3431_v59, %v2658_v56  ;;  %v3435_v5 = vadd.f32 %v2338_v1, %v5064_v29  ;;  %v2340_v6 = vpop.f32.mrb[15].mxu1 }
 0x1f1   :  { %v2664_v8 = vpop.f32.mrb[15].mxu0  ;;  %v5146_v9 = vadd.f32 %v3433_v0, %v2660_v61  ;;  %v3437_v10 = vadd.f32 %v2340_v6, %v5067_v31 }
 0x1f2   :  { %v2680_v11 = vadd.f32 %v5143_v4, %v2679_v50  ;;  %v2715_v12 = vmul.f32 %v5143_v4, %v5143_v4  ;;  %v5152_v13 = vadd.f32 %v3435_v5, %v2662_v2 }
 0x1f3   :  { %v2694_v14 = vadd.f32 %v5146_v9, %v2693_v53  ;;  %v2716_v15 = vmul.f32 %v5146_v9, %v5146_v9  ;;  %v5157_v16 = vadd.f32 %v3437_v10, %v2664_v8 }
 0x1f4   :  { %v2726_v17 = vadd.f32 %v2725_v58, %v2715_v12  ;;  %v2681_v18 = vadd.f32 %v5152_v13, %v2680_v11  ;;  %v2717_v19 = vmul.f32 %v5152_v13, %v5152_v13 }
 0x1f5   :  { %v2740_v20 = vadd.f32 %v2739_v63, %v2716_v15  ;;  %v2695_v21 = vadd.f32 %v5157_v16, %v2694_v14  ;;  %v2718_v22 = vmul.f32 %v5157_v16, %v5157_v16  ;;  %v2344_v23 = vpop.f32.mrb[16].mxu1 }
 0x1f6   :  { %v2668_v24 = vpop.f32.mrb[16].mxu0  ;;  %v2727_v30 = vadd.f32 %v2726_v17, %v2717_v19  ;;  %v3439_v32 = vadd.f32 %v2344_v23, %v5064_v29  ;;  %v2346_v33 = vpop.f32.mrb[17].mxu1 }
 0x1f7   :  { %v2670_v34 = vpop.f32.mrb[17].mxu0  ;;  %v2741_v36 = vadd.f32 %v2740_v20, %v2718_v22  ;;  %v3441_v37 = vadd.f32 %v2346_v33, %v5067_v31  ;;  %v2348_v38 = vpop.f32.mrb[18].mxu1 }
 0x1f8   :  { %v2672_v39 = vpop.f32.mrb[18].mxu0  ;;  %v5167_v42 = vadd.f32 %v3439_v32, %v2668_v24  ;;  %v2349_v43 = vpop.f32.mrb[19].mxu1 }
 0x1f9   :  { %v2673_v45 = vpop.f32.mrb[19].mxu0  ;;  %v3442_v49 = vadd.f32 %v3441_v37, %v2670_v34  ;;  %v3974_v39 = vmov 1966171168  }
 0x1fa   :  { %v2682_v50 = vadd.f32 %v5167_v42, %v2681_v18  ;;  %v2719_v51 = vmul.f32 %v5167_v42, %v5167_v42  ;;  %v2766_v43 = vunpack.c.l.s4 %v3974_v39 }
 0x1fb   :  { %v2696_v52 = vadd.f32 %v3442_v49, %v2695_v21  ;;  %v2720_v53 = vmul.f32 %v3442_v49, %v3442_v49 }
 0x1fc   :  { %v2683_v29 = vrot.slane %v2682_v50, 4  ;;  %v2728_v54 = vadd.f32 %v2727_v30, %v2719_v51  ;;  %v2767_v45 = vunpack.c.0.s8 %v2766_v43 }
 0x1fd   :  { %v2697_v55 = vrot.slane %v2696_v52, 4  ;;  %v2742_v56 = vadd.f32 %v2741_v36, %v2720_v53 }
 0x1fe   :  { %v2684_v58 = vadd.f32 %v2683_v29, %v2682_v50  ;;  %v2729_v31 = vrot.slane %v2728_v54, 4  ;;  %v2770_v51 = vsub.s32 %v2767_v45, %v5052_v25  ;;  %v2920_v45 = vld [vmem:[%s5326_s5 + $0x28] sm:$0xff] }
 0x1ff   :  { %v2698_v59 = vadd.f32 %v2697_v55, %v2696_v52  ;;  %v2743_v60 = vrot.slane %v2742_v56, 4 }
 0x200   :  { %v2685_v61 = vrot.slane %v2684_v58, 2  ;;  %v2730_v63 = vadd.f32 %v2729_v31, %v2728_v54  ;;  %v2757_v54 = vld [vmem:[%s5324_s3] sm:$0x3] }
 0x201   :  { %v2699_v0 = vrot.slane %v2698_v59, 2  ;;  %v2744_v1 = vadd.f32 %v2743_v60, %v2742_v56 }
 0x202   :  { %v2686_v2 = vadd.f32 %v2685_v61, %v2684_v58  ;;  %v2731_v5 = vrot.slane %v2730_v63, 2 }
 0x203   :  { %v2700_v6 = vadd.f32 %v2699_v0, %v2698_v59  ;;  %v2745_v8 = vrot.slane %v2744_v1, 2 }
 0x204   :  { %v2687_v10 = vrot.slane %v2686_v2, 1  ;;  %v2732_v11 = vadd.f32 %v2731_v5, %v2730_v63 }
 0x205   :  { %v2701_v12 = vrot.slane %v2700_v6, 1  ;;  %v2746_v14 = vadd.f32 %v2745_v8, %v2744_v1 }
 0x206   :  { %v2688_v15 = vadd.f32 %v2687_v10, %v2686_v2  ;;  %v2733_v17 = vrot.slane %v2732_v11, 1 }
 0x207   :  { %v2702_v18 = vadd.f32 %v2701_v12, %v2700_v6  ;;  %v2747_v19 = vrot.slane %v2746_v14, 1 }
 0x208   :  { %v2734_v20 = vadd.f32 %v2733_v17, %v2732_v11  ;;  %v2749_v21 = vmul.f32 0.013888889, %v2688_v15 }
 0x209   :  { %v2748_v22 = vadd.f32 %v2747_v19, %v2746_v14  ;;  %v2750_v23 = vmul.f32 0.013888889, %v2702_v18 }
 0x20a   :  { %v2751_v24 = vmul.f32 0.013888889, %v2734_v20  ;;  %v2753_v30 = vmul.f32 %v2749_v21, %v2749_v21 }
 0x20b   :  { %v2752_v32 = vmul.f32 0.013888889, %v2748_v22  ;;  %v2754_v33 = vmul.f32 %v2750_v23, %v2750_v23 }
 0x20c   :  { %v2755_v34 = vsub.f32 %v2751_v24, %v2753_v30 }
 0x20d   :  { %v2756_v36 = vsub.f32 %v2752_v32, %v2754_v33 }
 0x20e   :  { %v2758_v37 = vadd.f32 1e-05, %v2755_v34 }
 0x20f   :  { %v2759_v38 = vadd.f32 1e-05, %v2756_v36 }
 0x210   :  { %3965 = vrsqrt.f32 %v2758_v37 }
 0x211   :  { %3967 = vrsqrt.f32 %v2759_v38 }
 0x21a   :  { %v3966_v50 = vpop.eup %3965 }
 0x21b   :  { %v3968_v52 = vpop.eup %3967 }
 0x21c   :  { %v2764_v53 = vcombine.low %v3966_v50, %v3968_v52  ;;  %v2922_v50 = vld [vmem:[%s5326_s5 + $0x38] sm:$0xff] }
 0x21e   :  { %v2771_v29 = vrot.slane %v2764_v53, %v2770_v51 }
 0x220   :  { %v2778_v55 = vrot.slane %v2771_v29, %v2770_v51 }
 0x222   :  { %v2780_v56 = vmul.f32 %v2778_v55, %v2757_v54 }
 0x224   :  { %v2786_v58 = vrot.slane %v2780_v56, %v5055_v26  ;;  %v2790_v31 = vrot.slane %v2780_v56, %v5061_v28  ;;  %v2919_v56 = vld [vmem:[%s5326_s5 + $0x20] sm:$0xff] }
 0x226   :  { %v2793_v59 = vmul.f32 %v2786_v58, %v2749_v21  ;;  %v2794_v60 = vmul.f32 %v2790_v31, %v2750_v23  ;;  %v2831_v61 = vmul.f32 %v3442_v49, %v2790_v31  ;;  %v5179_v0 = vmul.f32 %v5122_v35, %v2790_v31  ;;  %v2781_v35 = vld [vmem:[%s5325_s4] sm:$0x3] }
 0x227   :  { %v5182_v25 = vmul.f32 %v5133_v48, %v2790_v31  ;;  %v5185_v1 = vmul.f32 %v5118_v27, %v2786_v58  ;;  %v5188_v2 = vmul.f32 %v5128_v41, %v2786_v58  ;;  %v5191_v6 = vmul.f32 %v5146_v9, %v2790_v31 }
 0x228   :  { %v2797_v63 = vcombine.low %v2793_v59, %v2794_v60  ;;  %v5194_v8 = vmul.f32 %v5157_v16, %v2790_v31  ;;  %v5197_v49 = vmul.f32 %v5143_v4, %v2786_v58  ;;  %v5203_v27 = vmul.f32 %v5152_v13, %v2786_v58 }
 0x229   :  { %v5206_v41 = vmul.f32 %v5167_v42, %v2786_v58  ;;  %v2815_v9 = vmul.f32 %v5074_v44, %v2790_v31  ;;  %v2817_v16 = vmul.f32 %v5079_v47, %v2790_v31  ;;  %v2814_v12 = vmul.f32 %v5071_v40, %v2786_v58  ;;  %v2916_v40 = vld [vmem:[%s5326_s5 + $0x8] sm:$0xff] }
 0x22a   :  { %v2804_v5 = vrot.slane %v2797_v63, %v2770_v51  ;;  %v2816_v13 = vmul.f32 %v5077_v46, %v2786_v58  ;;  %v2819_v14 = vmul.f32 %v5090_v62, %v2790_v31  ;;  %v2821_v42 = vmul.f32 %v5107_v7, %v2790_v31  ;;  %v2918_v62 = vld [vmem:[%s5326_s5 + $0x18] sm:$0xff]  ;;  %v2917_v7 = vld [vmem:[%s5326_s5 + $0x10] sm:$0xff] }
 0x22b   :  { %v2818_v15 = vmul.f32 %v5085_v57, %v2786_v58  ;;  %v2820_v44 = vmul.f32 %v5099_v3, %v2786_v58  ;;  %v2915_v3 = vld [vmem:[%s5326_s5] sm:$0xff] }
 0x22c   :  { %v2811_v48 = vrot.slane %v2804_v5, %v2770_v51 }
 0x22e   :  { %v2813_v10 = vsub.f32 %v2781_v35, %v2811_v48 }
 0x230   :  { %v5211_v11 = vrot.slane %v2813_v10, %v5055_v26  ;;  %v5214_v4 = vrot.slane %v2813_v10, %v5061_v28 }
 0x232   :  { %v5223_v47 = vadd.f32 %v5214_v4, %v2831_v61  ;;  %v2844_v26 = vadd.f32 %v5214_v4, %v2815_v9  ;;  %v2846_v28 = vadd.f32 %v5214_v4, %v2817_v16  ;;  %v2843_v46 = vadd.f32 %v5211_v11, %v2814_v12  ;;  %v2921_v61 = vld [vmem:[%s5326_s5 + $0x30] sm:$0xff] }
 0x233   :  { %v2845_v57 = vadd.f32 %v5211_v11, %v2816_v13  ;;  %v2848_v17 = vadd.f32 %v5214_v4, %v2819_v14  ;;  %v2850_v18 = vadd.f32 %v5214_v4, %v2821_v42  ;;  %v2847_v19 = vadd.f32 %v5211_v11, %v2818_v15 }
 0x234   :  { %vm2862_vm0 = vcmp.ge.f32.partialorder %v2844_v26, 0.0  ;;  %vm2864_vm1 = vcmp.ge.f32.partialorder %v2846_v28, 0.0  ;;  %v2880_v20 = vmul.f32 0.2, %v2844_v26  ;;  %v2882_v21 = vmul.f32 0.2, %v2846_v28 }
 0x235   :  { %vm2861_vm2 = vcmp.ge.f32.partialorder %v2843_v46, 0.0  ;;  %vm2863_vm3 = vcmp.ge.f32.partialorder %v2845_v57, 0.0  ;;  %v2879_v22 = vmul.f32 0.2, %v2843_v46  ;;  %v2881_v23 = vmul.f32 0.2, %v2845_v57 }
 0x236   :  { %v2898_v24 = vsel %vm2862_vm0, %v2844_v26, %v2880_v20  ;;  %v2900_v30 = vsel %vm2864_vm1, %v2846_v28, %v2882_v21  ;;  %vm2866_vm4 = vcmp.ge.f32.partialorder %v2848_v17, 0.0  ;;  %vm2868_vm5 = vcmp.ge.f32.partialorder %v2850_v18, 0.0  ;;  %v2923_v26 = vld [vmem:[%s5326_s5 + $0x40] sm:$0xff] }
 0x237   :  { %v2934_v32 = vmul.f32 %v2916_v40, %v2898_v24  ;;  %v2936_v33 = vmul.f32 %v2918_v62, %v2900_v30  ;;  %v2897_v34 = vsel %vm2861_vm2, %v2843_v46, %v2879_v22  ;;  %v2899_v36 = vsel %vm2863_vm3, %v2845_v57, %v2881_v23 }
 0x238   :  { %v2933_v37 = vmul.f32 %v2915_v3, %v2897_v34  ;;  %v2935_v38 = vmul.f32 %v2917_v7, %v2899_v36  ;;  %v2884_v39 = vmul.f32 0.2, %v2848_v17  ;;  %v2886_v43 = vmul.f32 0.2, %v2850_v18 }
 0x239   :  { %v3391_v51 = vpack.c.bf16 %v2936_v33, %v2934_v32  ;;  %v2849_v52 = vadd.f32 %v5211_v11, %v2820_v44  ;;  %vm2865_vm6 = vcmp.ge.f32.partialorder %v2847_v19, 0.0  ;;  %v2883_v53 = vmul.f32 0.2, %v2847_v19  ;;  %v2927_v33 = vld [vmem:[%s5326_s5 + $0x60] sm:$0xff] }
 0x23a   :  { %v3393_v29 = vpack.c.bf16 %v2935_v38, %v2933_v37  ;;  %v2902_v54 = vsel %vm2866_vm4, %v2848_v17, %v2884_v39  ;;  %v2904_v55 = vsel %vm2868_vm5, %v2850_v18, %v2886_v43  ;;  %v2852_v58 = vadd.f32 %v5214_v4, %v5179_v0  ;;  %v2924_v0 = vld [vmem:[%s5326_s5 + $0x48] sm:$0xff]  ;;  %v2929_v37 = vld [vmem:[%s5326_s5 + $0x70] sm:$0xff] }
 0x23b   :  { %3392 = vmatprep.subr.bf16.mxu1 %v3391_v51  ;;  %v2938_v31 = vmul.f32 %v2920_v45, %v2902_v54  ;;  %v2940_v59 = vmul.f32 %v2922_v50, %v2904_v55  ;;  %vm2867_vm7 = vcmp.ge.f32.partialorder %v2849_v52, 0.0  ;;  %v2885_v60 = vmul.f32 0.2, %v2849_v52 }
 0x23c   :  { %3394 = vmatpush1.bf16.msra.mxu1 %v3393_v29  ;;  %v2901_v63 = vsel %vm2865_vm6, %v2847_v19, %v2883_v53  ;;  %v2854_v5 = vadd.f32 %v5214_v4, %v5182_v25  ;;  %vm2870_vm8 = vcmp.ge.f32.partialorder %v2852_v58, 0.0  ;;  %v2888_v35 = vmul.f32 0.2, %v2852_v58  ;;  %v2926_v25 = vld [vmem:[%s5326_s5 + $0x58] sm:$0xff]  ;;  %v2932_v53 = vld [vmem:[%s5326_s5 + $0x88] sm:$0xff] }
 0x23d   :  { %v3395_v48 = vpack.c.bf16 %v2940_v59, %v2938_v31  ;;  %v2903_v10 = vsel %vm2867_vm7, %v2849_v52, %v2885_v60  ;;  %v2937_v9 = vmul.f32 %v2919_v56, %v2901_v63  ;;  %v2851_v16 = vadd.f32 %v5211_v11, %v5185_v1 }
 0x23e   :  { %v2939_v12 = vmul.f32 %v2921_v61, %v2903_v10  ;;  %vm2872_vm9 = vcmp.ge.f32.partialorder %v2854_v5, 0.0  ;;  %v2890_v13 = vmul.f32 0.2, %v2854_v5  ;;  %v2906_v14 = vsel %vm2870_vm8, %v2852_v58, %v2888_v35 }
 0x23f   :  { %3396 = vmatprep.subr.bf16.mxu1 %v3395_v48  ;;  %v2942_v42 = vmul.f32 %v2924_v0, %v2906_v14  ;;  %v2853_v15 = vadd.f32 %v5211_v11, %v5188_v2  ;;  %vm2869_vm10 = vcmp.ge.f32.partialorder %v2851_v16, 0.0  ;;  %v2887_v44 = vmul.f32 0.2, %v2851_v16  ;;  %v2925_v2 = vld [vmem:[%s5326_s5 + $0x50] sm:$0xff] }
 0x240   :  { %v3397_v1 = vpack.c.bf16 %v2939_v12, %v2937_v9  ;;  %v2908_v28 = vsel %vm2872_vm9, %v2854_v5, %v2890_v13  ;;  %v2856_v40 = vadd.f32 %v5214_v4, %v5191_v6  ;;  %v2858_v46 = vadd.f32 %v5214_v4, %v5194_v8  ;;  %v2928_v6 = vld [vmem:[%s5326_s5 + $0x68] sm:$0xff]  ;;  %v2930_v4 = vld [vmem:[%s5326_s5 + $0x78] sm:$0xff] }
 0x241   :  { %v2944_v62 = vmul.f32 %v2926_v25, %v2908_v28  ;;  %vm2871_vm11 = vcmp.ge.f32.partialorder %v2853_v15, 0.0  ;;  %v2889_v57 = vmul.f32 0.2, %v2853_v15  ;;  %v2905_v3 = vsel %vm2869_vm10, %v2851_v16, %v2887_v44 }
 0x242   :  { %3398 = vmatpush1.bf16.msra.mxu1 %v3397_v1  ;;  %v2941_v7 = vmul.f32 %v2923_v26, %v2905_v3  ;;  %vm2874_vm12 = vcmp.ge.f32.partialorder %v2856_v40, 0.0  ;;  %vm2876_vm13 = vcmp.ge.f32.partialorder %v2858_v46, 0.0  ;;  %v2892_v17 = vmul.f32 0.2, %v2856_v40 }
 0x243   :  { %v3399_v18 = vpack.c.bf16 %v2944_v62, %v2942_v42  ;;  %v2907_v19 = vsel %vm2871_vm11, %v2853_v15, %v2889_v57  ;;  %v2894_v8 = vmul.f32 0.2, %v2858_v46  ;;  %v2855_v20 = vadd.f32 %v5211_v11, %v5197_v49 }
 0x244   :  { %v2943_v21 = vmul.f32 %v2925_v2, %v2907_v19  ;;  %v2910_v22 = vsel %vm2874_vm12, %v2856_v40, %v2892_v17  ;;  %v2857_v23 = vadd.f32 %v5211_v11, %v5203_v27  ;;  %vm2878_vm14 = vcmp.ge.f32.partialorder %v5223_v47, 0.0 }
 0x245   :  { %3400 = vmatprep.subr.bf16.mxu1 %v3399_v18  ;;  %v2912_v24 = vsel %vm2876_vm13, %v2858_v46, %v2894_v8  ;;  %v2946_v30 = vmul.f32 %v2928_v6, %v2910_v22  ;;  %vm2873_vm15 = vcmp.ge.f32.partialorder %v2855_v20, 0.0  ;;  %v2891_v32 = vmul.f32 0.2, %v2855_v20 }
 0x246   :  { %v3401_v34 = vpack.c.bf16 %v2943_v21, %v2941_v7  ;;  %v2948_v36 = vmul.f32 %v2930_v4, %v2912_v24  ;;  %vm2875_vm0 = vcmp.ge.f32.partialorder %v2857_v23, 0.0  ;;  %v2893_v49 = vmul.f32 0.2, %v2857_v23 }
 0x247   :  { %v2909_v27 = vsel %vm2873_vm15, %v2855_v20, %v2891_v32  ;;  %v2896_v38 = vmul.f32 0.2, %v5223_v47  ;;  %v2859_v39 = vadd.f32 %v5211_v11, %v5206_v41  ;;  %v2931_v41 = vld [vmem:[%s5326_s5 + $0x80] sm:$0xff]  ;;  %vm2952_vm2 = vcmask 588800  }
 0x248   :  { %3402 = vmatpush1.bf16.msra.mxu1 %v3401_v34  ;;  %v3403_v43 = vpack.c.bf16 %v2948_v36, %v2946_v30  ;;  %v2911_v45 = vsel %vm2875_vm0, %v2857_v23, %v2893_v49  ;;  %v2945_v50 = vmul.f32 %v2927_v33, %v2909_v27  ;;  %v13_v58 = vstv %s5328_s7 }
 0x249   :  { %v2947_v51 = vmul.f32 %v2929_v37, %v2911_v45  ;;  %v2914_v52 = vsel %vm2878_vm14, %v5223_v47, %v2896_v38  ;;  %vm2877_vm1 = vcmp.ge.f32.partialorder %v2859_v39, 0.0  ;;  %v2895_v29 = vmul.f32 0.2, %v2859_v39  ;;  %v2951_v47 = vld [vmem:[%s5327_s6] sm:$0x3] }
 0x24a   :  { %3404 = vmatprep.subr.bf16.mxu1 %v3403_v43  ;;  %v2950_v55 = vmul.f32 %v2932_v53, %v2914_v52  ;;  %14 = vst [vmem:[#allocation2] sm:$0x1] %v13_v58  ;;  %vm3027_vm3 = vcmask 1041408   ;;  %vm3047_vm4 = vcmask 1024  }
 0x24b   :  { %v3405_v54 = vpack.c.bf16 %v2947_v51, %v2945_v50  ;;  %v2913_v56 = vsel %vm2877_vm1, %v2859_v39, %v2895_v29 }
 0x24c   :  { %v2949_v11 = vmul.f32 %v2931_v41, %v2913_v56 }
 0x24d   :  { %3406 = vmatpush1.bf16.msra.mxu1 %v3405_v54 }
 0x24e   :  { %2972 = vmatprep.subr.mxu1 %v2950_v55 }
 0x251   :  { %2973 = vmatpush1.msra.mxu1 %v2949_v11  ;;  %v3390_v5 = vld [vmem:[#allocation2] ss:$0 sm:$0xff] }
 0x252   :  { %3389 = vmatmul.mubr.msk.f32.vlgmr.msra.gmra.mrb[20].mxu1 %vm2952_vm2, %v2951_v47 }
 0x325   :  { %v3022_v31 = vpop.f32.mrb[20].mxu1 }
 0x326   :  { %v3028_v59 = vsel %vm3027_vm3, %v3022_v31, 0.0  ;;  %v3024_v60 = vpop.f32.mrb[21].mxu1 }
 0x327   :  { %v3029_v61 = vsel %vm3027_vm3, %v3024_v60, 0.0 }
 0x328   :  { %v3030_v63 = vadd.f32 %v3029_v61, %v3028_v59 }
 0x32a   :  { %3031 = vadd.xlane.f32.xlu0 %v3030_v63 }
 0x3b7   :  { %v3032_v35 = vpop.xlane.xlu0 %3031 }
 0x3b8   :  { %v3040_v0 = vadd.f32 %v3390_v5, %v3032_v35 }
 0x3ba   :  { %v3041_v48 = vsub.f32 0.0, %v3040_v0 }
 0x3bc   :  { %v3042_v10 = vmul.f32 1.442695, %v3041_v48 }
 0x3be   :  { %3969 = vpow2.f32 %v3042_v10 }
 0x3c8   :  { %v3970_v9 = vpop.eup %3969 }
 0x3c9   :  { %v3044_v16 = vadd.f32 1.0, %v3970_v9 }
 0x3cb   :  { %3971 = vrcp.f32 %v3044_v16 }
 0x3d5   :  { %v3972_v12 = vpop.eup %3971 }
 0x3d6   :  { %3048 = vst.msk [vmem:[%s5329_s8] sm:$0x3] %vm3047_vm4, %v3972_v12 }

</bundles_post_ra>
